<compile_context>
chip_gen: v6e
topology: v6e:2x2x1
jax: 0.10.0
libtpu: 0.0.40
codegen_flags: <defaults>
</compile_context>

<pallas_src>
import numpy as np
import jax
import jax.numpy as jnp
from jax.experimental import pallas as pl
from jax.experimental.pallas import tpu as pltpu


# ----------------------------- Pallas kernel --------------------------------

def _make_adown_kernel(B, C1, cout, tap_has_pad):
    cin = C1 // 2

    def kernel(x_ref, s_ref, nb_ref, w1_ref, b1_ref, w2_ref, b2_ref, o_ref):
        # x_ref : (B, C1, H*W)       B images, channels on sublanes
        # s_ref : (9, H*W, Ho*Wo)    avgpool folded into tap-(kh,kw) selection (bf16)
        # nb_ref: (9, 1, Ho*Wo)      -1e30 where the tap falls in max-pool padding (f32)
        # w1_ref: (cout, 9*cin)      BN-folded 3x3 conv weights, tap-major K (bf16)
        # b1_ref: (cout, 1)          BN-folded bias cv1 (f32)
        # w2_ref: (cout, cin)        BN-folded 1x1 conv weights (bf16)
        # b2_ref: (cout, 1)          BN-folded bias cv2 (f32)
        # o_ref : (B, 2*cout, Ho*Wo) fused output (concat of both branches)
        HW = x_ref.shape[-1]

        # (B, C1, HW) -> (B*C1, HW): row-major merge of leading dims, layout-free.
        x_all = x_ref[...].reshape(B * C1, HW).astype(jnp.bfloat16)

        # One selection matmul per tap, shared by BOTH branches and all B images:
        # M = B*C1, K = H*W, N = Ho*Wo, bf16 operands, f32 accumulation.
        sel = [jnp.dot(x_all, s_ref[t], preferred_element_type=jnp.float32)
               for t in range(9)]

        for b in range(B):                                # static unroll, B small
            o1 = b * C1                                   # x1 rows of image b
            o2 = b * C1 + cin                             # x2 rows of image b

            # -- branch 1: conv3x3 s2 p1 on avg-pooled x1 (BN folded) + SiLU --
            taps = jnp.concatenate([sel[t][o1:o1 + cin] for t in range(9)], axis=0)
            y1 = jnp.dot(w1_ref[...], taps.astype(jnp.bfloat16),
                         preferred_element_type=jnp.float32) + b1_ref[...]
            y1 = y1 * pl.reciprocal(1.0 + jnp.exp(-y1), approx=True)     # SiLU (EUP)

            # -- branch 2: maxpool3x3 s2 p1 on avg-pooled x2 -> conv1x1 + SiLU --
            m = sel[4][o2:o2 + cin]                       # center tap: never padded
            for t in range(9):
                if t == 4:
                    continue
                cand = sel[t][o2:o2 + cin]
                if tap_has_pad[t]:
                    cand = cand + nb_ref[t]               # -1e30 at padded positions
                m = jnp.maximum(m, cand)
            y2 = jnp.dot(w2_ref[...], m.astype(jnp.bfloat16),
                         preferred_element_type=jnp.float32) + b2_ref[...]
            y2 = y2 * pl.reciprocal(1.0 + jnp.exp(-y2), approx=True)     # SiLU (EUP)

            # fused channel concat: one store per image
            o_ref[b] = jnp.concatenate([y1, y2], axis=0).astype(o_ref.dtype)

    return kernel


# --------------------------- host-side precompute ----------------------------

def _adown_spatial_matrices(H, W):
    """S[t] (H*W, Ho*Wo): flattened input plane -> tap-t sample of a 3x3/s2/p1
    window on the 2x2/s1 average-pooled plane (avg-pool folded in, entries are
    exact multiples of 0.25).  NB[t] is -1e30 at output positions whose tap-t
    sample lies in the max-pool padding.  tap_has_pad[t] is True iff NB[t] has
    any masked position (so pad-free taps skip the add entirely)."""
    Hp, Wp = H - 1, W - 1
    Ho, Wo = (Hp - 1) // 2 + 1, (Wp - 1) // 2 + 1

    A = np.zeros((H * W, Hp * Wp), np.float32)            # 2x2 s1 avg pool
    for i in range(Hp):
        for j in range(Wp):
            for di in (0, 1):
                for dj in (0, 1):
                    A[(i + di) * W + (j + dj), i * Wp + j] += 0.25

    S = np.zeros((9, H * W, Ho * Wo), np.float32)
    NB = np.zeros((9, 1, Ho * Wo), np.float32)
    for kh in range(3):
        for kw in range(3):
            t = kh * 3 + kw
            T = np.zeros((Hp * Wp, Ho * Wo), np.float32)
            for oh in range(Ho):
                for ow in range(Wo):
                    ih, iw = 2 * oh + kh - 1, 2 * ow + kw - 1
                    p = oh * Wo + ow
                    if 0 <= ih < Hp and 0 <= iw < Wp:
                        T[ih * Wp + iw, p] = 1.0
                    else:
                        NB[t, 0, p] = -1e30               # -inf surrogate (f32/bf16 safe)
            S[t] = A @ T
    tap_has_pad = tuple(bool((NB[t] < 0).any()) for t in range(9))
    return S, NB, tap_has_pad, (Ho, Wo)


def _fold_bn(w, gamma, beta, mean, var, eps=1e-3):
    """Fold eval-mode BatchNorm into conv weights/bias (float32)."""
    s = gamma / np.sqrt(var + eps)
    return w * s[:, None, None, None], beta - mean * s


def _pick_batch_block(N, C1, target_rows=256):
    """Images per grid step: fill ~target_rows MXU sublanes with B*C1 channel
    rows, keep >= 2 grid steps when possible (two v7x TensorCores), and require
    an exact split of N so every block is full."""
    B = max(1, min(N, target_rows // max(C1, 1)))
    while B > 1 and (N + B - 1) // B < 2:
        B -= 1
    while N % B:
        B -= 1
    return B


def adown_pallas(x, w1, bn1, w2, bn2, eps=1e-3):
    """ADown.forward. x: (N, C1, H, W); w1: (c, C1//2, 3, 3); w2: (c, C1//2, 1, 1);
    bn1/bn2: (gamma, beta, running_mean, running_var) of cv1/cv2; eps: BN eps."""
    N, C1, H, W = x.shape
    cin = C1 // 2
    cout = w1.shape[0]
    assert cin % 8 == 0 and cout % 8 == 0, (
        "sublane-aligned channel slicing assumes c1//2 and c2//2 are multiples of 8")

    S, NB, tap_has_pad, (Ho, Wo) = _adown_spatial_matrices(H, W)
    HW, HWo = H * W, Ho * Wo

    w1f, b1 = _fold_bn(np.asarray(w1, np.float32), *bn1, eps=eps)
    w2f, b2 = _fold_bn(np.asarray(w2, np.float32), *bn2, eps=eps)
    # tap-major K layout: W1[o, (kh*3+kw)*cin + k] = w1[o, k, kh, kw]
    w1_flat = np.transpose(w1f, (0, 2, 3, 1)).reshape(cout, 9 * cin)
    w2_mat = w2f.reshape(cout, cin)
    b1 = b1.reshape(cout, 1).astype(np.float32)
    b2 = b2.reshape(cout, 1).astype(np.float32)

    B = _pick_batch_block(N, C1)
    xf = x.reshape(N, C1, HW)                     # lane-dense, free NCHW reshape
    kernel = _make_adown_kernel(B, C1, cout, tap_has_pad)

    # bf16 MXU feeds (S entries exactly representable); biases / masks stay f32.
    s_dev = jnp.asarray(S, jnp.bfloat16)
    nb_dev = jnp.asarray(NB, jnp.float32)
    w1_dev = jnp.asarray(w1_flat, jnp.bfloat16)
    w2_dev = jnp.asarray(w2_mat, jnp.bfloat16)
    b1_dev = jnp.asarray(b1)
    b2_dev = jnp.asarray(b2)

    # Explicit scoped-VMEM budget (S dominates); clamp under v7x's 64 MiB physical.
    need = (2 * (B * C1 * HW * x.dtype.itemsize + B * 2 * cout * HWo * 4)
            + 2 * (S.size * 2 + NB.size * 4 + w1_flat.size * 2
                   + w2_mat.size * 2 + (b1.size + b2.size) * 4))
    vmem_limit = int(min(max(2 * need, 32 << 20), 48 << 20))

    out_shape = jax.ShapeDtypeStruct((N, 2 * cout, HWo), x.dtype)
    cparams = pltpu.CompilerParams(dimension_semantics=("parallel",),
                                   vmem_limit_bytes=vmem_limit)

    def call(single_buffer_invariants):
        def const_spec(shape):
            if single_buffer_invariants:
                return pl.BlockSpec(shape, lambda n: (0,) * len(shape),
                                    pipeline_mode=pl.Buffered(1))
            return pl.BlockSpec(shape, lambda n: (0,) * len(shape))

        return pl.pallas_call(
            kernel,
            out_shape=out_shape,
            grid=(N // B,),
            in_specs=[
                pl.BlockSpec((B, C1, HW), lambda n: (n, 0, 0)),   # B images / step
                const_spec((9, HW, HWo)),                         # S   (VMEM-resident)
                const_spec((9, 1, HWo)),                          # NB
                const_spec((cout, 9 * cin)),                      # cv1 weights
                const_spec((cout, 1)),                            # cv1 bias
                const_spec((cout, cin)),                          # cv2 weights
                const_spec((cout, 1)),                            # cv2 bias
            ],
            out_specs=pl.BlockSpec((B, 2 * cout, HWo), lambda n: (n, 0, 0)),
            compiler_params=cparams,
        )(xf, s_dev, nb_dev, w1_dev, b1_dev, w2_dev, b2_dev)

    try:
        out = call(True)      # single-buffer the grid-invariant operands
    except Exception:         # pipeline_mode=pl.Buffered(1) unsupported -> default buffering
        out = call(False)

    return out.reshape(N, 2 * cout, Ho, Wo)


# ------------------------------ numpy reference ------------------------------

def _ref_conv2d(x, w, stride, pad):
    N, Ci, Hi, Wi = x.shape
    Co, _, k, _ = w.shape
    Ho = (Hi + 2 * pad - k) // stride + 1
    Wo = (Wi + 2 * pad - k) // stride + 1
    xp = np.zeros((N, Ci, Hi + 2 * pad, Wi + 2 * pad), np.float32)
    xp[:, :, pad:pad + Hi, pad:pad + Wi] = x
    out = np.zeros((N, Co, Ho, Wo), np.float32)
    for oh in range(Ho):
        for ow in range(Wo):
            patch = xp[:, :, oh * stride:oh * stride + k, ow * stride:ow * stride + k]
            out[:, :, oh, ow] = np.einsum('ncij,ocij->no', patch, w)
    return out


def _ref_maxpool(x, k=3, stride=2, pad=1):
    N, Ci, Hi, Wi = x.shape
    Ho = (Hi + 2 * pad - k) // stride + 1
    Wo = (Wi + 2 * pad - k) // stride + 1
    xp = np.full((N, Ci, Hi + 2 * pad, Wi + 2 * pad), -np.inf, np.float32)
    xp[:, :, pad:pad + Hi, pad:pad + Wi] = x
    out = np.zeros((N, Ci, Ho, Wo), np.float32)
    for oh in range(Ho):
        for ow in range(Wo):
            out[:, :, oh, ow] = xp[:, :, oh * stride:oh * stride + k,
                                   ow * stride:ow * stride + k].max(axis=(2, 3))
    return out


def _ref_bn_silu(z, gamma, beta, mean, var, eps=1e-3):
    s = gamma / np.sqrt(var + eps)
    z = z * s[None, :, None, None] + (beta - mean * s)[None, :, None, None]
    return z / (1.0 + np.exp(-z))


def _ref_adown(x, w1, bn1, w2, bn2, eps=1e-3):
    x = np.asarray(x, np.float32)
    a = 0.25 * (x[:, :, :-1, :-1] + x[:, :, 1:, :-1] + x[:, :, :-1, 1:] + x[:, :, 1:, 1:])
    c = x.shape[1] // 2
    a1, a2 = a[:, :c], a[:, c:]
    y1 = _ref_bn_silu(_ref_conv2d(a1, np.asarray(w1, np.float32), 2, 1), *bn1, eps=eps)
    y2 = _ref_bn_silu(_ref_conv2d(_ref_maxpool(a2), np.asarray(w2, np.float32), 1, 0),
                      *bn2, eps=eps)
    return np.concatenate([y1, y2], axis=1)


# ------------------------------------ main -----------------------------------

if __name__ == "__main__":
    key = jax.random.PRNGKey(0)
    ks = jax.random.split(key, 11)
    N, C1, C2, H, W = 8, 16, 16, 16, 16
    c, cin = C2 // 2, C1 // 2

    # bf16-representable activations (the kernel feeds the MXU in bf16).
    x = jax.random.normal(ks[0], (N, C1, H, W), dtype=jnp.float32)
    x = x.astype(jnp.bfloat16).astype(jnp.float32)

    w1 = np.asarray(jax.random.normal(ks[1], (c, cin, 3, 3)), np.float32) * 0.2
    w2 = np.asarray(jax.random.normal(ks[2], (c, cin, 1, 1)), np.float32) * 0.2
    bn1 = (np.asarray(jax.random.uniform(ks[3], (c,), minval=0.5, maxval=1.5), np.float32),
           np.asarray(jax.random.normal(ks[4], (c,)), np.float32) * 0.1,
           np.asarray(jax.random.normal(ks[5], (c,)), np.float32) * 0.1,
           np.asarray(jax.random.uniform(ks[6], (c,), minval=0.5, maxval=1.5), np.float32))
    bn2 = (np.asarray(jax.random.uniform(ks[7], (c,), minval=0.5, maxval=1.5), np.float32),
           np.asarray(jax.random.normal(ks[8], (c,)), np.float32) * 0.1,
           np.asarray(jax.random.normal(ks[9], (c,)), np.float32) * 0.1,
           np.asarray(jax.random.uniform(ks[10], (c,), minval=0.5, maxval=1.5), np.float32))

    out = adown_pallas(x, w1, bn1, w2, bn2)
    out = jax.block_until_ready(out)

    ref = _ref_adown(np.asarray(x), w1, bn1, w2, bn2)
    assert out.shape == ref.shape == (N, C2, 8, 8), (out.shape, ref.shape)
    # Tolerance reflects bf16 MXU feeds (weights / intermediate taps) vs f32 reference.
    np.testing.assert_allclose(np.asarray(out), ref, rtol=3e-2, atol=3e-2)

    print("KERNEL_OK")
</pallas_src>

<mosaic_0001>
module attributes {stable_mosaic.version = 11 : i64} {
  func.func @kernel(%arg0: i32, %arg1: memref<4x16x256xf32, #tpu.memory_space<vmem>>, %arg2: memref<9x256x64xbf16, #tpu.memory_space<vmem>>, %arg3: memref<9x1x64xf32, #tpu.memory_space<vmem>>, %arg4: memref<8x72xbf16, #tpu.memory_space<vmem>>, %arg5: memref<8x1xf32, #tpu.memory_space<vmem>>, %arg6: memref<8x8xbf16, #tpu.memory_space<vmem>>, %arg7: memref<8x1xf32, #tpu.memory_space<vmem>>, %arg8: memref<4x16x64xf32, #tpu.memory_space<vmem>>) attributes {dimension_semantics = [#tpu.dimension_semantics<parallel>], iteration_bounds = array<i64: 2>, scalar_prefetch = 0 : i64, scratch_operands = 0 : i64, tpu.core_type = #tpu.core_type<tc>, window_params = [{transform_indices = @transform_0, window_bounds = array<i64: 4, 16, 256>}, {pipeline_mode = #tpu.pipeline_mode<synchronous>, transform_indices = @transform_1, window_bounds = array<i64: 9, 256, 64>}, {pipeline_mode = #tpu.pipeline_mode<synchronous>, transform_indices = @transform_2, window_bounds = array<i64: 9, 1, 64>}, {pipeline_mode = #tpu.pipeline_mode<synchronous>, transform_indices = @transform_3, window_bounds = array<i64: 8, 72>}, {pipeline_mode = #tpu.pipeline_mode<synchronous>, transform_indices = @transform_4, window_bounds = array<i64: 8, 1>}, {pipeline_mode = #tpu.pipeline_mode<synchronous>, transform_indices = @transform_5, window_bounds = array<i64: 8, 8>}, {pipeline_mode = #tpu.pipeline_mode<synchronous>, transform_indices = @transform_6, window_bounds = array<i64: 8, 1>}, {transform_indices = @transform_7, window_bounds = array<i64: 4, 16, 64>}]} {
    %c0 = arith.constant 0 : index
    %c0_0 = arith.constant 0 : index
    %c0_1 = arith.constant 0 : index
    %0 = vector.load %arg1[%c0, %c0_0, %c0_1] : memref<4x16x256xf32, #tpu.memory_space<vmem>>, vector<4x16x256xf32>
    %1 = vector.shape_cast %0 : vector<4x16x256xf32> to vector<64x256xf32>
    %2 = arith.truncf %1 : vector<64x256xf32> to vector<64x256xbf16>
    %c0_2 = arith.constant 0 : index
    %c0_3 = arith.constant 0 : index
    %c0_4 = arith.constant 0 : index
    %3 = vector.load %arg2[%c0_2, %c0_3, %c0_4] : memref<9x256x64xbf16, #tpu.memory_space<vmem>>, vector<1x256x64xbf16>
    %4 = vector.shape_cast %3 : vector<1x256x64xbf16> to vector<256x64xbf16>
    %cst = arith.constant dense<0.000000e+00> : vector<64x64xf32>
    %5 = tpu.matmul %2, %4, %cst {dimension_numbers = #tpu.dot_dimension_numbers<[1], [0], [0], [1], [0, 0, 1, 1], [], []>} : vector<64x256xbf16>, vector<256x64xbf16>, vector<64x64xf32> -> vector<64x64xf32>
    %c1 = arith.constant 1 : index
    %c0_5 = arith.constant 0 : index
    %c0_6 = arith.constant 0 : index
    %6 = vector.load %arg2[%c1, %c0_5, %c0_6] : memref<9x256x64xbf16, #tpu.memory_space<vmem>>, vector<1x256x64xbf16>
    %7 = vector.shape_cast %6 : vector<1x256x64xbf16> to vector<256x64xbf16>
    %cst_7 = arith.constant dense<0.000000e+00> : vector<64x64xf32>
    %8 = tpu.matmul %2, %7, %cst_7 {dimension_numbers = #tpu.dot_dimension_numbers<[1], [0], [0], [1], [0, 0, 1, 1], [], []>} : vector<64x256xbf16>, vector<256x64xbf16>, vector<64x64xf32> -> vector<64x64xf32>
    %c2 = arith.constant 2 : index
    %c0_8 = arith.constant 0 : index
    %c0_9 = arith.constant 0 : index
    %9 = vector.load %arg2[%c2, %c0_8, %c0_9] : memref<9x256x64xbf16, #tpu.memory_space<vmem>>, vector<1x256x64xbf16>
    %10 = vector.shape_cast %9 : vector<1x256x64xbf16> to vector<256x64xbf16>
    %cst_10 = arith.constant dense<0.000000e+00> : vector<64x64xf32>
    %11 = tpu.matmul %2, %10, %cst_10 {dimension_numbers = #tpu.dot_dimension_numbers<[1], [0], [0], [1], [0, 0, 1, 1], [], []>} : vector<64x256xbf16>, vector<256x64xbf16>, vector<64x64xf32> -> vector<64x64xf32>
    %c3 = arith.constant 3 : index
    %c0_11 = arith.constant 0 : index
    %c0_12 = arith.constant 0 : index
    %12 = vector.load %arg2[%c3, %c0_11, %c0_12] : memref<9x256x64xbf16, #tpu.memory_space<vmem>>, vector<1x256x64xbf16>
    %13 = vector.shape_cast %12 : vector<1x256x64xbf16> to vector<256x64xbf16>
    %cst_13 = arith.constant dense<0.000000e+00> : vector<64x64xf32>
    %14 = tpu.matmul %2, %13, %cst_13 {dimension_numbers = #tpu.dot_dimension_numbers<[1], [0], [0], [1], [0, 0, 1, 1], [], []>} : vector<64x256xbf16>, vector<256x64xbf16>, vector<64x64xf32> -> vector<64x64xf32>
    %c4 = arith.constant 4 : index
    %c0_14 = arith.constant 0 : index
    %c0_15 = arith.constant 0 : index
    %15 = vector.load %arg2[%c4, %c0_14, %c0_15] : memref<9x256x64xbf16, #tpu.memory_space<vmem>>, vector<1x256x64xbf16>
    %16 = vector.shape_cast %15 : vector<1x256x64xbf16> to vector<256x64xbf16>
    %cst_16 = arith.constant dense<0.000000e+00> : vector<64x64xf32>
    %17 = tpu.matmul %2, %16, %cst_16 {dimension_numbers = #tpu.dot_dimension_numbers<[1], [0], [0], [1], [0, 0, 1, 1], [], []>} : vector<64x256xbf16>, vector<256x64xbf16>, vector<64x64xf32> -> vector<64x64xf32>
    %c5 = arith.constant 5 : index
    %c0_17 = arith.constant 0 : index
    %c0_18 = arith.constant 0 : index
    %18 = vector.load %arg2[%c5, %c0_17, %c0_18] : memref<9x256x64xbf16, #tpu.memory_space<vmem>>, vector<1x256x64xbf16>
    %19 = vector.shape_cast %18 : vector<1x256x64xbf16> to vector<256x64xbf16>
    %cst_19 = arith.constant dense<0.000000e+00> : vector<64x64xf32>
    %20 = tpu.matmul %2, %19, %cst_19 {dimension_numbers = #tpu.dot_dimension_numbers<[1], [0], [0], [1], [0, 0, 1, 1], [], []>} : vector<64x256xbf16>, vector<256x64xbf16>, vector<64x64xf32> -> vector<64x64xf32>
    %c6 = arith.constant 6 : index
    %c0_20 = arith.constant 0 : index
    %c0_21 = arith.constant 0 : index
    %21 = vector.load %arg2[%c6, %c0_20, %c0_21] : memref<9x256x64xbf16, #tpu.memory_space<vmem>>, vector<1x256x64xbf16>
    %22 = vector.shape_cast %21 : vector<1x256x64xbf16> to vector<256x64xbf16>
    %cst_22 = arith.constant dense<0.000000e+00> : vector<64x64xf32>
    %23 = tpu.matmul %2, %22, %cst_22 {dimension_numbers = #tpu.dot_dimension_numbers<[1], [0], [0], [1], [0, 0, 1, 1], [], []>} : vector<64x256xbf16>, vector<256x64xbf16>, vector<64x64xf32> -> vector<64x64xf32>
    %c7 = arith.constant 7 : index
    %c0_23 = arith.constant 0 : index
    %c0_24 = arith.constant 0 : index
    %24 = vector.load %arg2[%c7, %c0_23, %c0_24] : memref<9x256x64xbf16, #tpu.memory_space<vmem>>, vector<1x256x64xbf16>
    %25 = vector.shape_cast %24 : vector<1x256x64xbf16> to vector<256x64xbf16>
    %cst_25 = arith.constant dense<0.000000e+00> : vector<64x64xf32>
    %26 = tpu.matmul %2, %25, %cst_25 {dimension_numbers = #tpu.dot_dimension_numbers<[1], [0], [0], [1], [0, 0, 1, 1], [], []>} : vector<64x256xbf16>, vector<256x64xbf16>, vector<64x64xf32> -> vector<64x64xf32>
    %c8 = arith.constant 8 : index
    %c0_26 = arith.constant 0 : index
    %c0_27 = arith.constant 0 : index
    %27 = vector.load %arg2[%c8, %c0_26, %c0_27] : memref<9x256x64xbf16, #tpu.memory_space<vmem>>, vector<1x256x64xbf16>
    %28 = vector.shape_cast %27 : vector<1x256x64xbf16> to vector<256x64xbf16>
    %cst_28 = arith.constant dense<0.000000e+00> : vector<64x64xf32>
    %29 = tpu.matmul %2, %28, %cst_28 {dimension_numbers = #tpu.dot_dimension_numbers<[1], [0], [0], [1], [0, 0, 1, 1], [], []>} : vector<64x256xbf16>, vector<256x64xbf16>, vector<64x64xf32> -> vector<64x64xf32>
    %30 = vector.extract_strided_slice %5 {offsets = [0, 0], sizes = [8, 64], strides = [1, 1]} : vector<64x64xf32> to vector<8x64xf32>
    %31 = vector.extract_strided_slice %8 {offsets = [0, 0], sizes = [8, 64], strides = [1, 1]} : vector<64x64xf32> to vector<8x64xf32>
    %32 = vector.extract_strided_slice %11 {offsets = [0, 0], sizes = [8, 64], strides = [1, 1]} : vector<64x64xf32> to vector<8x64xf32>
    %33 = vector.extract_strided_slice %14 {offsets = [0, 0], sizes = [8, 64], strides = [1, 1]} : vector<64x64xf32> to vector<8x64xf32>
    %34 = vector.extract_strided_slice %17 {offsets = [0, 0], sizes = [8, 64], strides = [1, 1]} : vector<64x64xf32> to vector<8x64xf32>
    %35 = vector.extract_strided_slice %20 {offsets = [0, 0], sizes = [8, 64], strides = [1, 1]} : vector<64x64xf32> to vector<8x64xf32>
    %36 = vector.extract_strided_slice %23 {offsets = [0, 0], sizes = [8, 64], strides = [1, 1]} : vector<64x64xf32> to vector<8x64xf32>
    %37 = vector.extract_strided_slice %26 {offsets = [0, 0], sizes = [8, 64], strides = [1, 1]} : vector<64x64xf32> to vector<8x64xf32>
    %38 = vector.extract_strided_slice %29 {offsets = [0, 0], sizes = [8, 64], strides = [1, 1]} : vector<64x64xf32> to vector<8x64xf32>
    %39 = tpu.concatenate %30, %31, %32, %33, %34, %35, %36, %37, %38 in 0 : vector<8x64xf32>, vector<8x64xf32>, vector<8x64xf32>, vector<8x64xf32>, vector<8x64xf32>, vector<8x64xf32>, vector<8x64xf32>, vector<8x64xf32>, vector<8x64xf32> -> vector<72x64xf32>
    %c0_29 = arith.constant 0 : index
    %c0_30 = arith.constant 0 : index
    %40 = vector.load %arg4[%c0_29, %c0_30] : memref<8x72xbf16, #tpu.memory_space<vmem>>, vector<8x72xbf16>
    %41 = arith.truncf %39 : vector<72x64xf32> to vector<72x64xbf16>
    %cst_31 = arith.constant dense<0.000000e+00> : vector<8x64xf32>
    %42 = tpu.matmul %40, %41, %cst_31 {dimension_numbers = #tpu.dot_dimension_numbers<[1], [0], [0], [1], [0, 0, 1, 1], [], []>} : vector<8x72xbf16>, vector<72x64xbf16>, vector<8x64xf32> -> vector<8x64xf32>
    %c0_32 = arith.constant 0 : index
    %c0_33 = arith.constant 0 : index
    %43 = vector.load %arg5[%c0_32, %c0_33] : memref<8x1xf32, #tpu.memory_space<vmem>>, vector<8x1xf32>
    %44 = vector.broadcast %43 : vector<8x1xf32> to vector<8x64xf32>
    %45 = arith.addf %42, %44 : vector<8x64xf32>
    %cst_34 = arith.constant 0.000000e+00 : f32
    %46 = vector.broadcast %cst_34 : f32 to vector<8x64xf32>
    %47 = arith.subf %46, %45 : vector<8x64xf32>
    %48 = math.exp %47 : vector<8x64xf32>
    %cst_35 = arith.constant 1.000000e+00 : f32
    %49 = vector.broadcast %cst_35 : f32 to vector<8x64xf32>
    %50 = arith.addf %49, %48 : vector<8x64xf32>
    %51 = tpu.reciprocal %50 {approx = true} : vector<8x64xf32> -> vector<8x64xf32>
    %52 = arith.mulf %45, %51 : vector<8x64xf32>
    %53 = vector.extract_strided_slice %17 {offsets = [8, 0], sizes = [8, 64], strides = [1, 1]} : vector<64x64xf32> to vector<8x64xf32>
    %54 = vector.extract_strided_slice %5 {offsets = [8, 0], sizes = [8, 64], strides = [1, 1]} : vector<64x64xf32> to vector<8x64xf32>
    %c0_36 = arith.constant 0 : index
    %c0_37 = arith.constant 0 : index
    %c0_38 = arith.constant 0 : index
    %55 = vector.load %arg3[%c0_36, %c0_37, %c0_38] : memref<9x1x64xf32, #tpu.memory_space<vmem>>, vector<1x1x64xf32>
    %56 = vector.shape_cast %55 : vector<1x1x64xf32> to vector<1x64xf32>
    %57 = vector.broadcast %56 : vector<1x64xf32> to vector<8x64xf32>
    %58 = arith.addf %54, %57 : vector<8x64xf32>
    %59 = arith.maximumf %53, %58 : vector<8x64xf32>
    %60 = vector.extract_strided_slice %8 {offsets = [8, 0], sizes = [8, 64], strides = [1, 1]} : vector<64x64xf32> to vector<8x64xf32>
    %c1_39 = arith.constant 1 : index
    %c0_40 = arith.constant 0 : index
    %c0_41 = arith.constant 0 : index
    %61 = vector.load %arg3[%c1_39, %c0_40, %c0_41] : memref<9x1x64xf32, #tpu.memory_space<vmem>>, vector<1x1x64xf32>
    %62 = vector.shape_cast %61 : vector<1x1x64xf32> to vector<1x64xf32>
    %63 = vector.broadcast %62 : vector<1x64xf32> to vector<8x64xf32>
    %64 = arith.addf %60, %63 : vector<8x64xf32>
    %65 = arith.maximumf %59, %64 : vector<8x64xf32>
    %66 = vector.extract_strided_slice %11 {offsets = [8, 0], sizes = [8, 64], strides = [1, 1]} : vector<64x64xf32> to vector<8x64xf32>
    %c2_42 = arith.constant 2 : index
    %c0_43 = arith.constant 0 : index
    %c0_44 = arith.constant 0 : index
    %67 = vector.load %arg3[%c2_42, %c0_43, %c0_44] : memref<9x1x64xf32, #tpu.memory_space<vmem>>, vector<1x1x64xf32>
    %68 = vector.shape_cast %67 : vector<1x1x64xf32> to vector<1x64xf32>
    %69 = vector.broadcast %68 : vector<1x64xf32> to vector<8x64xf32>
    %70 = arith.addf %66, %69 : vector<8x64xf32>
    %71 = arith.maximumf %65, %70 : vector<8x64xf32>
    %72 = vector.extract_strided_slice %14 {offsets = [8, 0], sizes = [8, 64], strides = [1, 1]} : vector<64x64xf32> to vector<8x64xf32>
    %c3_45 = arith.constant 3 : index
    %c0_46 = arith.constant 0 : index
    %c0_47 = arith.constant 0 : index
    %73 = vector.load %arg3[%c3_45, %c0_46, %c0_47] : memref<9x1x64xf32, #tpu.memory_space<vmem>>, vector<1x1x64xf32>
    %74 = vector.shape_cast %73 : vector<1x1x64xf32> to vector<1x64xf32>
    %75 = vector.broadcast %74 : vector<1x64xf32> to vector<8x64xf32>
    %76 = arith.addf %72, %75 : vector<8x64xf32>
    %77 = arith.maximumf %71, %76 : vector<8x64xf32>
    %78 = vector.extract_strided_slice %20 {offsets = [8, 0], sizes = [8, 64], strides = [1, 1]} : vector<64x64xf32> to vector<8x64xf32>
    %c5_48 = arith.constant 5 : index
    %c0_49 = arith.constant 0 : index
    %c0_50 = arith.constant 0 : index
    %79 = vector.load %arg3[%c5_48, %c0_49, %c0_50] : memref<9x1x64xf32, #tpu.memory_space<vmem>>, vector<1x1x64xf32>
    %80 = vector.shape_cast %79 : vector<1x1x64xf32> to vector<1x64xf32>
    %81 = vector.broadcast %80 : vector<1x64xf32> to vector<8x64xf32>
    %82 = arith.addf %78, %81 : vector<8x64xf32>
    %83 = arith.maximumf %77, %82 : vector<8x64xf32>
    %84 = vector.extract_strided_slice %23 {offsets = [8, 0], sizes = [8, 64], strides = [1, 1]} : vector<64x64xf32> to vector<8x64xf32>
    %c6_51 = arith.constant 6 : index
    %c0_52 = arith.constant 0 : index
    %c0_53 = arith.constant 0 : index
    %85 = vector.load %arg3[%c6_51, %c0_52, %c0_53] : memref<9x1x64xf32, #tpu.memory_space<vmem>>, vector<1x1x64xf32>
    %86 = vector.shape_cast %85 : vector<1x1x64xf32> to vector<1x64xf32>
    %87 = vector.broadcast %86 : vector<1x64xf32> to vector<8x64xf32>
    %88 = arith.addf %84, %87 : vector<8x64xf32>
    %89 = arith.maximumf %83, %88 : vector<8x64xf32>
    %90 = vector.extract_strided_slice %26 {offsets = [8, 0], sizes = [8, 64], strides = [1, 1]} : vector<64x64xf32> to vector<8x64xf32>
    %c7_54 = arith.constant 7 : index
    %c0_55 = arith.constant 0 : index
    %c0_56 = arith.constant 0 : index
    %91 = vector.load %arg3[%c7_54, %c0_55, %c0_56] : memref<9x1x64xf32, #tpu.memory_space<vmem>>, vector<1x1x64xf32>
    %92 = vector.shape_cast %91 : vector<1x1x64xf32> to vector<1x64xf32>
    %93 = vector.broadcast %92 : vector<1x64xf32> to vector<8x64xf32>
    %94 = arith.addf %90, %93 : vector<8x64xf32>
    %95 = arith.maximumf %89, %94 : vector<8x64xf32>
    %96 = vector.extract_strided_slice %29 {offsets = [8, 0], sizes = [8, 64], strides = [1, 1]} : vector<64x64xf32> to vector<8x64xf32>
    %c8_57 = arith.constant 8 : index
    %c0_58 = arith.constant 0 : index
    %c0_59 = arith.constant 0 : index
    %97 = vector.load %arg3[%c8_57, %c0_58, %c0_59] : memref<9x1x64xf32, #tpu.memory_space<vmem>>, vector<1x1x64xf32>
    %98 = vector.shape_cast %97 : vector<1x1x64xf32> to vector<1x64xf32>
    %99 = vector.broadcast %98 : vector<1x64xf32> to vector<8x64xf32>
    %100 = arith.addf %96, %99 : vector<8x64xf32>
    %101 = arith.maximumf %95, %100 : vector<8x64xf32>
    %c0_60 = arith.constant 0 : index
    %c0_61 = arith.constant 0 : index
    %102 = vector.load %arg6[%c0_60, %c0_61] : memref<8x8xbf16, #tpu.memory_space<vmem>>, vector<8x8xbf16>
    %103 = arith.truncf %101 : vector<8x64xf32> to vector<8x64xbf16>
    %cst_62 = arith.constant dense<0.000000e+00> : vector<8x64xf32>
    %104 = tpu.matmul %102, %103, %cst_62 {dimension_numbers = #tpu.dot_dimension_numbers<[1], [0], [0], [1], [0, 0, 1, 1], [], []>} : vector<8x8xbf16>, vector<8x64xbf16>, vector<8x64xf32> -> vector<8x64xf32>
    %c0_63 = arith.constant 0 : index
    %c0_64 = arith.constant 0 : index
    %105 = vector.load %arg7[%c0_63, %c0_64] : memref<8x1xf32, #tpu.memory_space<vmem>>, vector<8x1xf32>
    %106 = vector.broadcast %105 : vector<8x1xf32> to vector<8x64xf32>
    %107 = arith.addf %104, %106 : vector<8x64xf32>
    %cst_65 = arith.constant 0.000000e+00 : f32
    %108 = vector.broadcast %cst_65 : f32 to vector<8x64xf32>
    %109 = arith.subf %108, %107 : vector<8x64xf32>
    %110 = math.exp %109 : vector<8x64xf32>
    %cst_66 = arith.constant 1.000000e+00 : f32
    %111 = vector.broadcast %cst_66 : f32 to vector<8x64xf32>
    %112 = arith.addf %111, %110 : vector<8x64xf32>
    %113 = tpu.reciprocal %112 {approx = true} : vector<8x64xf32> -> vector<8x64xf32>
    %114 = arith.mulf %107, %113 : vector<8x64xf32>
    %115 = tpu.concatenate %52, %114 in 0 : vector<8x64xf32>, vector<8x64xf32> -> vector<16x64xf32>
    %c0_67 = arith.constant 0 : index
    %c0_68 = arith.constant 0 : index
    %c0_69 = arith.constant 0 : index
    %116 = vector.load %arg8[%c0_67, %c0_68, %c0_69] : memref<4x16x64xf32, #tpu.memory_space<vmem>>, vector<1x16x64xf32>
    %117 = vector.shape_cast %116 : vector<1x16x64xf32> to vector<16x64xf32>
    %118 = vector.shape_cast %115 : vector<16x64xf32> to vector<1x16x64xf32>
    tpu.vector_store %arg8[%c0_67, %c0_68, %c0_69], %118 {strides = array<i32>} : memref<4x16x64xf32, #tpu.memory_space<vmem>>, vector<1x16x64xf32>,
    %119 = vector.extract_strided_slice %5 {offsets = [16, 0], sizes = [8, 64], strides = [1, 1]} : vector<64x64xf32> to vector<8x64xf32>
    %120 = vector.extract_strided_slice %8 {offsets = [16, 0], sizes = [8, 64], strides = [1, 1]} : vector<64x64xf32> to vector<8x64xf32>
    %121 = vector.extract_strided_slice %11 {offsets = [16, 0], sizes = [8, 64], strides = [1, 1]} : vector<64x64xf32> to vector<8x64xf32>
    %122 = vector.extract_strided_slice %14 {offsets = [16, 0], sizes = [8, 64], strides = [1, 1]} : vector<64x64xf32> to vector<8x64xf32>
    %123 = vector.extract_strided_slice %17 {offsets = [16, 0], sizes = [8, 64], strides = [1, 1]} : vector<64x64xf32> to vector<8x64xf32>
    %124 = vector.extract_strided_slice %20 {offsets = [16, 0], sizes = [8, 64], strides = [1, 1]} : vector<64x64xf32> to vector<8x64xf32>
    %125 = vector.extract_strided_slice %23 {offsets = [16, 0], sizes = [8, 64], strides = [1, 1]} : vector<64x64xf32> to vector<8x64xf32>
    %126 = vector.extract_strided_slice %26 {offsets = [16, 0], sizes = [8, 64], strides = [1, 1]} : vector<64x64xf32> to vector<8x64xf32>
    %127 = vector.extract_strided_slice %29 {offsets = [16, 0], sizes = [8, 64], strides = [1, 1]} : vector<64x64xf32> to vector<8x64xf32>
    %128 = tpu.concatenate %119, %120, %121, %122, %123, %124, %125, %126, %127 in 0 : vector<8x64xf32>, vector<8x64xf32>, vector<8x64xf32>, vector<8x64xf32>, vector<8x64xf32>, vector<8x64xf32>, vector<8x64xf32>, vector<8x64xf32>, vector<8x64xf32> -> vector<72x64xf32>
    %c0_70 = arith.constant 0 : index
    %c0_71 = arith.constant 0 : index
    %129 = vector.load %arg4[%c0_70, %c0_71] : memref<8x72xbf16, #tpu.memory_space<vmem>>, vector<8x72xbf16>
    %130 = arith.truncf %128 : vector<72x64xf32> to vector<72x64xbf16>
    %cst_72 = arith.constant dense<0.000000e+00> : vector<8x64xf32>
    %131 = tpu.matmul %129, %130, %cst_72 {dimension_numbers = #tpu.dot_dimension_numbers<[1], [0], [0], [1], [0, 0, 1, 1], [], []>} : vector<8x72xbf16>, vector<72x64xbf16>, vector<8x64xf32> -> vector<8x64xf32>
    %c0_73 = arith.constant 0 : index
    %c0_74 = arith.constant 0 : index
    %132 = vector.load %arg5[%c0_73, %c0_74] : memref<8x1xf32, #tpu.memory_space<vmem>>, vector<8x1xf32>
    %133 = vector.broadcast %132 : vector<8x1xf32> to vector<8x64xf32>
    %134 = arith.addf %131, %133 : vector<8x64xf32>
    %cst_75 = arith.constant 0.000000e+00 : f32
    %135 = vector.broadcast %cst_75 : f32 to vector<8x64xf32>
    %136 = arith.subf %135, %134 : vector<8x64xf32>
    %137 = math.exp %136 : vector<8x64xf32>
    %cst_76 = arith.constant 1.000000e+00 : f32
    %138 = vector.broadcast %cst_76 : f32 to vector<8x64xf32>
    %139 = arith.addf %138, %137 : vector<8x64xf32>
    %140 = tpu.reciprocal %139 {approx = true} : vector<8x64xf32> -> vector<8x64xf32>
    %141 = arith.mulf %134, %140 : vector<8x64xf32>
    %142 = vector.extract_strided_slice %17 {offsets = [24, 0], sizes = [8, 64], strides = [1, 1]} : vector<64x64xf32> to vector<8x64xf32>
    %143 = vector.extract_strided_slice %5 {offsets = [24, 0], sizes = [8, 64], strides = [1, 1]} : vector<64x64xf32> to vector<8x64xf32>
    %c0_77 = arith.constant 0 : index
    %c0_78 = arith.constant 0 : index
    %c0_79 = arith.constant 0 : index
    %144 = vector.load %arg3[%c0_77, %c0_78, %c0_79] : memref<9x1x64xf32, #tpu.memory_space<vmem>>, vector<1x1x64xf32>
    %145 = vector.shape_cast %144 : vector<1x1x64xf32> to vector<1x64xf32>
    %146 = vector.broadcast %145 : vector<1x64xf32> to vector<8x64xf32>
    %147 = arith.addf %143, %146 : vector<8x64xf32>
    %148 = arith.maximumf %142, %147 : vector<8x64xf32>
    %149 = vector.extract_strided_slice %8 {offsets = [24, 0], sizes = [8, 64], strides = [1, 1]} : vector<64x64xf32> to vector<8x64xf32>
    %c1_80 = arith.constant 1 : index
    %c0_81 = arith.constant 0 : index
    %c0_82 = arith.constant 0 : index
    %150 = vector.load %arg3[%c1_80, %c0_81, %c0_82] : memref<9x1x64xf32, #tpu.memory_space<vmem>>, vector<1x1x64xf32>
    %151 = vector.shape_cast %150 : vector<1x1x64xf32> to vector<1x64xf32>
    %152 = vector.broadcast %151 : vector<1x64xf32> to vector<8x64xf32>
    %153 = arith.addf %149, %152 : vector<8x64xf32>
    %154 = arith.maximumf %148, %153 : vector<8x64xf32>
    %155 = vector.extract_strided_slice %11 {offsets = [24, 0], sizes = [8, 64], strides = [1, 1]} : vector<64x64xf32> to vector<8x64xf32>
    %c2_83 = arith.constant 2 : index
    %c0_84 = arith.constant 0 : index
    %c0_85 = arith.constant 0 : index
    %156 = vector.load %arg3[%c2_83, %c0_84, %c0_85] : memref<9x1x64xf32, #tpu.memory_space<vmem>>, vector<1x1x64xf32>
    %157 = vector.shape_cast %156 : vector<1x1x64xf32> to vector<1x64xf32>
    %158 = vector.broadcast %157 : vector<1x64xf32> to vector<8x64xf32>
    %159 = arith.addf %155, %158 : vector<8x64xf32>
    %160 = arith.maximumf %154, %159 : vector<8x64xf32>
    %161 = vector.extract_strided_slice %14 {offsets = [24, 0], sizes = [8, 64], strides = [1, 1]} : vector<64x64xf32> to vector<8x64xf32>
    %c3_86 = arith.constant 3 : index
    %c0_87 = arith.constant 0 : index
    %c0_88 = arith.constant 0 : index
    %162 = vector.load %arg3[%c3_86, %c0_87, %c0_88] : memref<9x1x64xf32, #tpu.memory_space<vmem>>, vector<1x1x64xf32>
    %163 = vector.shape_cast %162 : vector<1x1x64xf32> to vector<1x64xf32>
    %164 = vector.broadcast %163 : vector<1x64xf32> to vector<8x64xf32>
    %165 = arith.addf %161, %164 : vector<8x64xf32>
    %166 = arith.maximumf %160, %165 : vector<8x64xf32>
    %167 = vector.extract_strided_slice %20 {offsets = [24, 0], sizes = [8, 64], strides = [1, 1]} : vector<64x64xf32> to vector<8x64xf32>
    %c5_89 = arith.constant 5 : index
    %c0_90 = arith.constant 0 : index
    %c0_91 = arith.constant 0 : index
    %168 = vector.load %arg3[%c5_89, %c0_90, %c0_91] : memref<9x1x64xf32, #tpu.memory_space<vmem>>, vector<1x1x64xf32>
    %169 = vector.shape_cast %168 : vector<1x1x64xf32> to vector<1x64xf32>
    %170 = vector.broadcast %169 : vector<1x64xf32> to vector<8x64xf32>
    %171 = arith.addf %167, %170 : vector<8x64xf32>
    %172 = arith.maximumf %166, %171 : vector<8x64xf32>
    %173 = vector.extract_strided_slice %23 {offsets = [24, 0], sizes = [8, 64], strides = [1, 1]} : vector<64x64xf32> to vector<8x64xf32>
    %c6_92 = arith.constant 6 : index
    %c0_93 = arith.constant 0 : index
    %c0_94 = arith.constant 0 : index
    %174 = vector.load %arg3[%c6_92, %c0_93, %c0_94] : memref<9x1x64xf32, #tpu.memory_space<vmem>>, vector<1x1x64xf32>
    %175 = vector.shape_cast %174 : vector<1x1x64xf32> to vector<1x64xf32>
    %176 = vector.broadcast %175 : vector<1x64xf32> to vector<8x64xf32>
    %177 = arith.addf %173, %176 : vector<8x64xf32>
    %178 = arith.maximumf %172, %177 : vector<8x64xf32>
    %179 = vector.extract_strided_slice %26 {offsets = [24, 0], sizes = [8, 64], strides = [1, 1]} : vector<64x64xf32> to vector<8x64xf32>
    %c7_95 = arith.constant 7 : index
    %c0_96 = arith.constant 0 : index
    %c0_97 = arith.constant 0 : index
    %180 = vector.load %arg3[%c7_95, %c0_96, %c0_97] : memref<9x1x64xf32, #tpu.memory_space<vmem>>, vector<1x1x64xf32>
    %181 = vector.shape_cast %180 : vector<1x1x64xf32> to vector<1x64xf32>
    %182 = vector.broadcast %181 : vector<1x64xf32> to vector<8x64xf32>
    %183 = arith.addf %179, %182 : vector<8x64xf32>
    %184 = arith.maximumf %178, %183 : vector<8x64xf32>
    %185 = vector.extract_strided_slice %29 {offsets = [24, 0], sizes = [8, 64], strides = [1, 1]} : vector<64x64xf32> to vector<8x64xf32>
    %c8_98 = arith.constant 8 : index
    %c0_99 = arith.constant 0 : index
    %c0_100 = arith.constant 0 : index
    %186 = vector.load %arg3[%c8_98, %c0_99, %c0_100] : memref<9x1x64xf32, #tpu.memory_space<vmem>>, vector<1x1x64xf32>
    %187 = vector.shape_cast %186 : vector<1x1x64xf32> to vector<1x64xf32>
    %188 = vector.broadcast %187 : vector<1x64xf32> to vector<8x64xf32>
    %189 = arith.addf %185, %188 : vector<8x64xf32>
    %190 = arith.maximumf %184, %189 : vector<8x64xf32>
    %c0_101 = arith.constant 0 : index
    %c0_102 = arith.constant 0 : index
    %191 = vector.load %arg6[%c0_101, %c0_102] : memref<8x8xbf16, #tpu.memory_space<vmem>>, vector<8x8xbf16>
    %192 = arith.truncf %190 : vector<8x64xf32> to vector<8x64xbf16>
    %cst_103 = arith.constant dense<0.000000e+00> : vector<8x64xf32>
    %193 = tpu.matmul %191, %192, %cst_103 {dimension_numbers = #tpu.dot_dimension_numbers<[1], [0], [0], [1], [0, 0, 1, 1], [], []>} : vector<8x8xbf16>, vector<8x64xbf16>, vector<8x64xf32> -> vector<8x64xf32>
    %c0_104 = arith.constant 0 : index
    %c0_105 = arith.constant 0 : index
    %194 = vector.load %arg7[%c0_104, %c0_105] : memref<8x1xf32, #tpu.memory_space<vmem>>, vector<8x1xf32>
    %195 = vector.broadcast %194 : vector<8x1xf32> to vector<8x64xf32>
    %196 = arith.addf %193, %195 : vector<8x64xf32>
    %cst_106 = arith.constant 0.000000e+00 : f32
    %197 = vector.broadcast %cst_106 : f32 to vector<8x64xf32>
    %198 = arith.subf %197, %196 : vector<8x64xf32>
    %199 = math.exp %198 : vector<8x64xf32>
    %cst_107 = arith.constant 1.000000e+00 : f32
    %200 = vector.broadcast %cst_107 : f32 to vector<8x64xf32>
    %201 = arith.addf %200, %199 : vector<8x64xf32>
    %202 = tpu.reciprocal %201 {approx = true} : vector<8x64xf32> -> vector<8x64xf32>
    %203 = arith.mulf %196, %202 : vector<8x64xf32>
    %204 = tpu.concatenate %141, %203 in 0 : vector<8x64xf32>, vector<8x64xf32> -> vector<16x64xf32>
    %c1_108 = arith.constant 1 : index
    %c0_109 = arith.constant 0 : index
    %c0_110 = arith.constant 0 : index
    %205 = vector.load %arg8[%c1_108, %c0_109, %c0_110] : memref<4x16x64xf32, #tpu.memory_space<vmem>>, vector<1x16x64xf32>
    %206 = vector.shape_cast %205 : vector<1x16x64xf32> to vector<16x64xf32>
    %207 = vector.shape_cast %204 : vector<16x64xf32> to vector<1x16x64xf32>
    tpu.vector_store %arg8[%c1_108, %c0_109, %c0_110], %207 {strides = array<i32>} : memref<4x16x64xf32, #tpu.memory_space<vmem>>, vector<1x16x64xf32>,
    %208 = vector.extract_strided_slice %5 {offsets = [32, 0], sizes = [8, 64], strides = [1, 1]} : vector<64x64xf32> to vector<8x64xf32>
    %209 = vector.extract_strided_slice %8 {offsets = [32, 0], sizes = [8, 64], strides = [1, 1]} : vector<64x64xf32> to vector<8x64xf32>
    %210 = vector.extract_strided_slice %11 {offsets = [32, 0], sizes = [8, 64], strides = [1, 1]} : vector<64x64xf32> to vector<8x64xf32>
    %211 = vector.extract_strided_slice %14 {offsets = [32, 0], sizes = [8, 64], strides = [1, 1]} : vector<64x64xf32> to vector<8x64xf32>
    %212 = vector.extract_strided_slice %17 {offsets = [32, 0], sizes = [8, 64], strides = [1, 1]} : vector<64x64xf32> to vector<8x64xf32>
    %213 = vector.extract_strided_slice %20 {offsets = [32, 0], sizes = [8, 64], strides = [1, 1]} : vector<64x64xf32> to vector<8x64xf32>
    %214 = vector.extract_strided_slice %23 {offsets = [32, 0], sizes = [8, 64], strides = [1, 1]} : vector<64x64xf32> to vector<8x64xf32>
    %215 = vector.extract_strided_slice %26 {offsets = [32, 0], sizes = [8, 64], strides = [1, 1]} : vector<64x64xf32> to vector<8x64xf32>
    %216 = vector.extract_strided_slice %29 {offsets = [32, 0], sizes = [8, 64], strides = [1, 1]} : vector<64x64xf32> to vector<8x64xf32>
    %217 = tpu.concatenate %208, %209, %210, %211, %212, %213, %214, %215, %216 in 0 : vector<8x64xf32>, vector<8x64xf32>, vector<8x64xf32>, vector<8x64xf32>, vector<8x64xf32>, vector<8x64xf32>, vector<8x64xf32>, vector<8x64xf32>, vector<8x64xf32> -> vector<72x64xf32>
    %c0_111 = arith.constant 0 : index
    %c0_112 = arith.constant 0 : index
    %218 = vector.load %arg4[%c0_111, %c0_112] : memref<8x72xbf16, #tpu.memory_space<vmem>>, vector<8x72xbf16>
    %219 = arith.truncf %217 : vector<72x64xf32> to vector<72x64xbf16>
    %cst_113 = arith.constant dense<0.000000e+00> : vector<8x64xf32>
    %220 = tpu.matmul %218, %219, %cst_113 {dimension_numbers = #tpu.dot_dimension_numbers<[1], [0], [0], [1], [0, 0, 1, 1], [], []>} : vector<8x72xbf16>, vector<72x64xbf16>, vector<8x64xf32> -> vector<8x64xf32>
    %c0_114 = arith.constant 0 : index
    %c0_115 = arith.constant 0 : index
    %221 = vector.load %arg5[%c0_114, %c0_115] : memref<8x1xf32, #tpu.memory_space<vmem>>, vector<8x1xf32>
    %222 = vector.broadcast %221 : vector<8x1xf32> to vector<8x64xf32>
    %223 = arith.addf %220, %222 : vector<8x64xf32>
    %cst_116 = arith.constant 0.000000e+00 : f32
    %224 = vector.broadcast %cst_116 : f32 to vector<8x64xf32>
    %225 = arith.subf %224, %223 : vector<8x64xf32>
    %226 = math.exp %225 : vector<8x64xf32>
    %cst_117 = arith.constant 1.000000e+00 : f32
    %227 = vector.broadcast %cst_117 : f32 to vector<8x64xf32>
    %228 = arith.addf %227, %226 : vector<8x64xf32>
    %229 = tpu.reciprocal %228 {approx = true} : vector<8x64xf32> -> vector<8x64xf32>
    %230 = arith.mulf %223, %229 : vector<8x64xf32>
    %231 = vector.extract_strided_slice %17 {offsets = [40, 0], sizes = [8, 64], strides = [1, 1]} : vector<64x64xf32> to vector<8x64xf32>
    %232 = vector.extract_strided_slice %5 {offsets = [40, 0], sizes = [8, 64], strides = [1, 1]} : vector<64x64xf32> to vector<8x64xf32>
    %c0_118 = arith.constant 0 : index
    %c0_119 = arith.constant 0 : index
    %c0_120 = arith.constant 0 : index
    %233 = vector.load %arg3[%c0_118, %c0_119, %c0_120] : memref<9x1x64xf32, #tpu.memory_space<vmem>>, vector<1x1x64xf32>
    %234 = vector.shape_cast %233 : vector<1x1x64xf32> to vector<1x64xf32>
    %235 = vector.broadcast %234 : vector<1x64xf32> to vector<8x64xf32>
    %236 = arith.addf %232, %235 : vector<8x64xf32>
    %237 = arith.maximumf %231, %236 : vector<8x64xf32>
    %238 = vector.extract_strided_slice %8 {offsets = [40, 0], sizes = [8, 64], strides = [1, 1]} : vector<64x64xf32> to vector<8x64xf32>
    %c1_121 = arith.constant 1 : index
    %c0_122 = arith.constant 0 : index
    %c0_123 = arith.constant 0 : index
    %239 = vector.load %arg3[%c1_121, %c0_122, %c0_123] : memref<9x1x64xf32, #tpu.memory_space<vmem>>, vector<1x1x64xf32>
    %240 = vector.shape_cast %239 : vector<1x1x64xf32> to vector<1x64xf32>
    %241 = vector.broadcast %240 : vector<1x64xf32> to vector<8x64xf32>
    %242 = arith.addf %238, %241 : vector<8x64xf32>
    %243 = arith.maximumf %237, %242 : vector<8x64xf32>
    %244 = vector.extract_strided_slice %11 {offsets = [40, 0], sizes = [8, 64], strides = [1, 1]} : vector<64x64xf32> to vector<8x64xf32>
    %c2_124 = arith.constant 2 : index
    %c0_125 = arith.constant 0 : index
    %c0_126 = arith.constant 0 : index
    %245 = vector.load %arg3[%c2_124, %c0_125, %c0_126] : memref<9x1x64xf32, #tpu.memory_space<vmem>>, vector<1x1x64xf32>
    %246 = vector.shape_cast %245 : vector<1x1x64xf32> to vector<1x64xf32>
    %247 = vector.broadcast %246 : vector<1x64xf32> to vector<8x64xf32>
    %248 = arith.addf %244, %247 : vector<8x64xf32>
    %249 = arith.maximumf %243, %248 : vector<8x64xf32>
    %250 = vector.extract_strided_slice %14 {offsets = [40, 0], sizes = [8, 64], strides = [1, 1]} : vector<64x64xf32> to vector<8x64xf32>
    %c3_127 = arith.constant 3 : index
    %c0_128 = arith.constant 0 : index
    %c0_129 = arith.constant 0 : index
    %251 = vector.load %arg3[%c3_127, %c0_128, %c0_129] : memref<9x1x64xf32, #tpu.memory_space<vmem>>, vector<1x1x64xf32>
    %252 = vector.shape_cast %251 : vector<1x1x64xf32> to vector<1x64xf32>
    %253 = vector.broadcast %252 : vector<1x64xf32> to vector<8x64xf32>
    %254 = arith.addf %250, %253 : vector<8x64xf32>
    %255 = arith.maximumf %249, %254 : vector<8x64xf32>
    %256 = vector.extract_strided_slice %20 {offsets = [40, 0], sizes = [8, 64], strides = [1, 1]} : vector<64x64xf32> to vector<8x64xf32>
    %c5_130 = arith.constant 5 : index
    %c0_131 = arith.constant 0 : index
    %c0_132 = arith.constant 0 : index
    %257 = vector.load %arg3[%c5_130, %c0_131, %c0_132] : memref<9x1x64xf32, #tpu.memory_space<vmem>>, vector<1x1x64xf32>
    %258 = vector.shape_cast %257 : vector<1x1x64xf32> to vector<1x64xf32>
    %259 = vector.broadcast %258 : vector<1x64xf32> to vector<8x64xf32>
    %260 = arith.addf %256, %259 : vector<8x64xf32>
    %261 = arith.maximumf %255, %260 : vector<8x64xf32>
    %262 = vector.extract_strided_slice %23 {offsets = [40, 0], sizes = [8, 64], strides = [1, 1]} : vector<64x64xf32> to vector<8x64xf32>
    %c6_133 = arith.constant 6 : index
    %c0_134 = arith.constant 0 : index
    %c0_135 = arith.constant 0 : index
    %263 = vector.load %arg3[%c6_133, %c0_134, %c0_135] : memref<9x1x64xf32, #tpu.memory_space<vmem>>, vector<1x1x64xf32>
    %264 = vector.shape_cast %263 : vector<1x1x64xf32> to vector<1x64xf32>
    %265 = vector.broadcast %264 : vector<1x64xf32> to vector<8x64xf32>
    %266 = arith.addf %262, %265 : vector<8x64xf32>
    %267 = arith.maximumf %261, %266 : vector<8x64xf32>
    %268 = vector.extract_strided_slice %26 {offsets = [40, 0], sizes = [8, 64], strides = [1, 1]} : vector<64x64xf32> to vector<8x64xf32>
    %c7_136 = arith.constant 7 : index
    %c0_137 = arith.constant 0 : index
    %c0_138 = arith.constant 0 : index
    %269 = vector.load %arg3[%c7_136, %c0_137, %c0_138] : memref<9x1x64xf32, #tpu.memory_space<vmem>>, vector<1x1x64xf32>
    %270 = vector.shape_cast %269 : vector<1x1x64xf32> to vector<1x64xf32>
    %271 = vector.broadcast %270 : vector<1x64xf32> to vector<8x64xf32>
    %272 = arith.addf %268, %271 : vector<8x64xf32>
    %273 = arith.maximumf %267, %272 : vector<8x64xf32>
    %274 = vector.extract_strided_slice %29 {offsets = [40, 0], sizes = [8, 64], strides = [1, 1]} : vector<64x64xf32> to vector<8x64xf32>
    %c8_139 = arith.constant 8 : index
    %c0_140 = arith.constant 0 : index
    %c0_141 = arith.constant 0 : index
    %275 = vector.load %arg3[%c8_139, %c0_140, %c0_141] : memref<9x1x64xf32, #tpu.memory_space<vmem>>, vector<1x1x64xf32>
    %276 = vector.shape_cast %275 : vector<1x1x64xf32> to vector<1x64xf32>
    %277 = vector.broadcast %276 : vector<1x64xf32> to vector<8x64xf32>
    %278 = arith.addf %274, %277 : vector<8x64xf32>
    %279 = arith.maximumf %273, %278 : vector<8x64xf32>
    %c0_142 = arith.constant 0 : index
    %c0_143 = arith.constant 0 : index
    %280 = vector.load %arg6[%c0_142, %c0_143] : memref<8x8xbf16, #tpu.memory_space<vmem>>, vector<8x8xbf16>
    %281 = arith.truncf %279 : vector<8x64xf32> to vector<8x64xbf16>
    %cst_144 = arith.constant dense<0.000000e+00> : vector<8x64xf32>
    %282 = tpu.matmul %280, %281, %cst_144 {dimension_numbers = #tpu.dot_dimension_numbers<[1], [0], [0], [1], [0, 0, 1, 1], [], []>} : vector<8x8xbf16>, vector<8x64xbf16>, vector<8x64xf32> -> vector<8x64xf32>
    %c0_145 = arith.constant 0 : index
    %c0_146 = arith.constant 0 : index
    %283 = vector.load %arg7[%c0_145, %c0_146] : memref<8x1xf32, #tpu.memory_space<vmem>>, vector<8x1xf32>
    %284 = vector.broadcast %283 : vector<8x1xf32> to vector<8x64xf32>
    %285 = arith.addf %282, %284 : vector<8x64xf32>
    %cst_147 = arith.constant 0.000000e+00 : f32
    %286 = vector.broadcast %cst_147 : f32 to vector<8x64xf32>
    %287 = arith.subf %286, %285 : vector<8x64xf32>
    %288 = math.exp %287 : vector<8x64xf32>
    %cst_148 = arith.constant 1.000000e+00 : f32
    %289 = vector.broadcast %cst_148 : f32 to vector<8x64xf32>
    %290 = arith.addf %289, %288 : vector<8x64xf32>
    %291 = tpu.reciprocal %290 {approx = true} : vector<8x64xf32> -> vector<8x64xf32>
    %292 = arith.mulf %285, %291 : vector<8x64xf32>
    %293 = tpu.concatenate %230, %292 in 0 : vector<8x64xf32>, vector<8x64xf32> -> vector<16x64xf32>
    %c2_149 = arith.constant 2 : index
    %c0_150 = arith.constant 0 : index
    %c0_151 = arith.constant 0 : index
    %294 = vector.load %arg8[%c2_149, %c0_150, %c0_151] : memref<4x16x64xf32, #tpu.memory_space<vmem>>, vector<1x16x64xf32>
    %295 = vector.shape_cast %294 : vector<1x16x64xf32> to vector<16x64xf32>
    %296 = vector.shape_cast %293 : vector<16x64xf32> to vector<1x16x64xf32>
    tpu.vector_store %arg8[%c2_149, %c0_150, %c0_151], %296 {strides = array<i32>} : memref<4x16x64xf32, #tpu.memory_space<vmem>>, vector<1x16x64xf32>,
    %297 = vector.extract_strided_slice %5 {offsets = [48, 0], sizes = [8, 64], strides = [1, 1]} : vector<64x64xf32> to vector<8x64xf32>
    %298 = vector.extract_strided_slice %8 {offsets = [48, 0], sizes = [8, 64], strides = [1, 1]} : vector<64x64xf32> to vector<8x64xf32>
    %299 = vector.extract_strided_slice %11 {offsets = [48, 0], sizes = [8, 64], strides = [1, 1]} : vector<64x64xf32> to vector<8x64xf32>
    %300 = vector.extract_strided_slice %14 {offsets = [48, 0], sizes = [8, 64], strides = [1, 1]} : vector<64x64xf32> to vector<8x64xf32>
    %301 = vector.extract_strided_slice %17 {offsets = [48, 0], sizes = [8, 64], strides = [1, 1]} : vector<64x64xf32> to vector<8x64xf32>
    %302 = vector.extract_strided_slice %20 {offsets = [48, 0], sizes = [8, 64], strides = [1, 1]} : vector<64x64xf32> to vector<8x64xf32>
    %303 = vector.extract_strided_slice %23 {offsets = [48, 0], sizes = [8, 64], strides = [1, 1]} : vector<64x64xf32> to vector<8x64xf32>
    %304 = vector.extract_strided_slice %26 {offsets = [48, 0], sizes = [8, 64], strides = [1, 1]} : vector<64x64xf32> to vector<8x64xf32>
    %305 = vector.extract_strided_slice %29 {offsets = [48, 0], sizes = [8, 64], strides = [1, 1]} : vector<64x64xf32> to vector<8x64xf32>
    %306 = tpu.concatenate %297, %298, %299, %300, %301, %302, %303, %304, %305 in 0 : vector<8x64xf32>, vector<8x64xf32>, vector<8x64xf32>, vector<8x64xf32>, vector<8x64xf32>, vector<8x64xf32>, vector<8x64xf32>, vector<8x64xf32>, vector<8x64xf32> -> vector<72x64xf32>
    %c0_152 = arith.constant 0 : index
    %c0_153 = arith.constant 0 : index
    %307 = vector.load %arg4[%c0_152, %c0_153] : memref<8x72xbf16, #tpu.memory_space<vmem>>, vector<8x72xbf16>
    %308 = arith.truncf %306 : vector<72x64xf32> to vector<72x64xbf16>
    %cst_154 = arith.constant dense<0.000000e+00> : vector<8x64xf32>
    %309 = tpu.matmul %307, %308, %cst_154 {dimension_numbers = #tpu.dot_dimension_numbers<[1], [0], [0], [1], [0, 0, 1, 1], [], []>} : vector<8x72xbf16>, vector<72x64xbf16>, vector<8x64xf32> -> vector<8x64xf32>
    %c0_155 = arith.constant 0 : index
    %c0_156 = arith.constant 0 : index
    %310 = vector.load %arg5[%c0_155, %c0_156] : memref<8x1xf32, #tpu.memory_space<vmem>>, vector<8x1xf32>
    %311 = vector.broadcast %310 : vector<8x1xf32> to vector<8x64xf32>
    %312 = arith.addf %309, %311 : vector<8x64xf32>
    %cst_157 = arith.constant 0.000000e+00 : f32
    %313 = vector.broadcast %cst_157 : f32 to vector<8x64xf32>
    %314 = arith.subf %313, %312 : vector<8x64xf32>
    %315 = math.exp %314 : vector<8x64xf32>
    %cst_158 = arith.constant 1.000000e+00 : f32
    %316 = vector.broadcast %cst_158 : f32 to vector<8x64xf32>
    %317 = arith.addf %316, %315 : vector<8x64xf32>
    %318 = tpu.reciprocal %317 {approx = true} : vector<8x64xf32> -> vector<8x64xf32>
    %319 = arith.mulf %312, %318 : vector<8x64xf32>
    %320 = vector.extract_strided_slice %17 {offsets = [56, 0], sizes = [8, 64], strides = [1, 1]} : vector<64x64xf32> to vector<8x64xf32>
    %321 = vector.extract_strided_slice %5 {offsets = [56, 0], sizes = [8, 64], strides = [1, 1]} : vector<64x64xf32> to vector<8x64xf32>
    %c0_159 = arith.constant 0 : index
    %c0_160 = arith.constant 0 : index
    %c0_161 = arith.constant 0 : index
    %322 = vector.load %arg3[%c0_159, %c0_160, %c0_161] : memref<9x1x64xf32, #tpu.memory_space<vmem>>, vector<1x1x64xf32>
    %323 = vector.shape_cast %322 : vector<1x1x64xf32> to vector<1x64xf32>
    %324 = vector.broadcast %323 : vector<1x64xf32> to vector<8x64xf32>
    %325 = arith.addf %321, %324 : vector<8x64xf32>
    %326 = arith.maximumf %320, %325 : vector<8x64xf32>
    %327 = vector.extract_strided_slice %8 {offsets = [56, 0], sizes = [8, 64], strides = [1, 1]} : vector<64x64xf32> to vector<8x64xf32>
    %c1_162 = arith.constant 1 : index
    %c0_163 = arith.constant 0 : index
    %c0_164 = arith.constant 0 : index
    %328 = vector.load %arg3[%c1_162, %c0_163, %c0_164] : memref<9x1x64xf32, #tpu.memory_space<vmem>>, vector<1x1x64xf32>
    %329 = vector.shape_cast %328 : vector<1x1x64xf32> to vector<1x64xf32>
    %330 = vector.broadcast %329 : vector<1x64xf32> to vector<8x64xf32>
    %331 = arith.addf %327, %330 : vector<8x64xf32>
    %332 = arith.maximumf %326, %331 : vector<8x64xf32>
    %333 = vector.extract_strided_slice %11 {offsets = [56, 0], sizes = [8, 64], strides = [1, 1]} : vector<64x64xf32> to vector<8x64xf32>
    %c2_165 = arith.constant 2 : index
    %c0_166 = arith.constant 0 : index
    %c0_167 = arith.constant 0 : index
    %334 = vector.load %arg3[%c2_165, %c0_166, %c0_167] : memref<9x1x64xf32, #tpu.memory_space<vmem>>, vector<1x1x64xf32>
    %335 = vector.shape_cast %334 : vector<1x1x64xf32> to vector<1x64xf32>
    %336 = vector.broadcast %335 : vector<1x64xf32> to vector<8x64xf32>
    %337 = arith.addf %333, %336 : vector<8x64xf32>
    %338 = arith.maximumf %332, %337 : vector<8x64xf32>
    %339 = vector.extract_strided_slice %14 {offsets = [56, 0], sizes = [8, 64], strides = [1, 1]} : vector<64x64xf32> to vector<8x64xf32>
    %c3_168 = arith.constant 3 : index
    %c0_169 = arith.constant 0 : index
    %c0_170 = arith.constant 0 : index
    %340 = vector.load %arg3[%c3_168, %c0_169, %c0_170] : memref<9x1x64xf32, #tpu.memory_space<vmem>>, vector<1x1x64xf32>
    %341 = vector.shape_cast %340 : vector<1x1x64xf32> to vector<1x64xf32>
    %342 = vector.broadcast %341 : vector<1x64xf32> to vector<8x64xf32>
    %343 = arith.addf %339, %342 : vector<8x64xf32>
    %344 = arith.maximumf %338, %343 : vector<8x64xf32>
    %345 = vector.extract_strided_slice %20 {offsets = [56, 0], sizes = [8, 64], strides = [1, 1]} : vector<64x64xf32> to vector<8x64xf32>
    %c5_171 = arith.constant 5 : index
    %c0_172 = arith.constant 0 : index
    %c0_173 = arith.constant 0 : index
    %346 = vector.load %arg3[%c5_171, %c0_172, %c0_173] : memref<9x1x64xf32, #tpu.memory_space<vmem>>, vector<1x1x64xf32>
    %347 = vector.shape_cast %346 : vector<1x1x64xf32> to vector<1x64xf32>
    %348 = vector.broadcast %347 : vector<1x64xf32> to vector<8x64xf32>
    %349 = arith.addf %345, %348 : vector<8x64xf32>
    %350 = arith.maximumf %344, %349 : vector<8x64xf32>
    %351 = vector.extract_strided_slice %23 {offsets = [56, 0], sizes = [8, 64], strides = [1, 1]} : vector<64x64xf32> to vector<8x64xf32>
    %c6_174 = arith.constant 6 : index
    %c0_175 = arith.constant 0 : index
    %c0_176 = arith.constant 0 : index
    %352 = vector.load %arg3[%c6_174, %c0_175, %c0_176] : memref<9x1x64xf32, #tpu.memory_space<vmem>>, vector<1x1x64xf32>
    %353 = vector.shape_cast %352 : vector<1x1x64xf32> to vector<1x64xf32>
    %354 = vector.broadcast %353 : vector<1x64xf32> to vector<8x64xf32>
    %355 = arith.addf %351, %354 : vector<8x64xf32>
    %356 = arith.maximumf %350, %355 : vector<8x64xf32>
    %357 = vector.extract_strided_slice %26 {offsets = [56, 0], sizes = [8, 64], strides = [1, 1]} : vector<64x64xf32> to vector<8x64xf32>
    %c7_177 = arith.constant 7 : index
    %c0_178 = arith.constant 0 : index
    %c0_179 = arith.constant 0 : index
    %358 = vector.load %arg3[%c7_177, %c0_178, %c0_179] : memref<9x1x64xf32, #tpu.memory_space<vmem>>, vector<1x1x64xf32>
    %359 = vector.shape_cast %358 : vector<1x1x64xf32> to vector<1x64xf32>
    %360 = vector.broadcast %359 : vector<1x64xf32> to vector<8x64xf32>
    %361 = arith.addf %357, %360 : vector<8x64xf32>
    %362 = arith.maximumf %356, %361 : vector<8x64xf32>
    %363 = vector.extract_strided_slice %29 {offsets = [56, 0], sizes = [8, 64], strides = [1, 1]} : vector<64x64xf32> to vector<8x64xf32>
    %c8_180 = arith.constant 8 : index
    %c0_181 = arith.constant 0 : index
    %c0_182 = arith.constant 0 : index
    %364 = vector.load %arg3[%c8_180, %c0_181, %c0_182] : memref<9x1x64xf32, #tpu.memory_space<vmem>>, vector<1x1x64xf32>
    %365 = vector.shape_cast %364 : vector<1x1x64xf32> to vector<1x64xf32>
    %366 = vector.broadcast %365 : vector<1x64xf32> to vector<8x64xf32>
    %367 = arith.addf %363, %366 : vector<8x64xf32>
    %368 = arith.maximumf %362, %367 : vector<8x64xf32>
    %c0_183 = arith.constant 0 : index
    %c0_184 = arith.constant 0 : index
    %369 = vector.load %arg6[%c0_183, %c0_184] : memref<8x8xbf16, #tpu.memory_space<vmem>>, vector<8x8xbf16>
    %370 = arith.truncf %368 : vector<8x64xf32> to vector<8x64xbf16>
    %cst_185 = arith.constant dense<0.000000e+00> : vector<8x64xf32>
    %371 = tpu.matmul %369, %370, %cst_185 {dimension_numbers = #tpu.dot_dimension_numbers<[1], [0], [0], [1], [0, 0, 1, 1], [], []>} : vector<8x8xbf16>, vector<8x64xbf16>, vector<8x64xf32> -> vector<8x64xf32>
    %c0_186 = arith.constant 0 : index
    %c0_187 = arith.constant 0 : index
    %372 = vector.load %arg7[%c0_186, %c0_187] : memref<8x1xf32, #tpu.memory_space<vmem>>, vector<8x1xf32>
    %373 = vector.broadcast %372 : vector<8x1xf32> to vector<8x64xf32>
    %374 = arith.addf %371, %373 : vector<8x64xf32>
    %cst_188 = arith.constant 0.000000e+00 : f32
    %375 = vector.broadcast %cst_188 : f32 to vector<8x64xf32>
    %376 = arith.subf %375, %374 : vector<8x64xf32>
    %377 = math.exp %376 : vector<8x64xf32>
    %cst_189 = arith.constant 1.000000e+00 : f32
    %378 = vector.broadcast %cst_189 : f32 to vector<8x64xf32>
    %379 = arith.addf %378, %377 : vector<8x64xf32>
    %380 = tpu.reciprocal %379 {approx = true} : vector<8x64xf32> -> vector<8x64xf32>
    %381 = arith.mulf %374, %380 : vector<8x64xf32>
    %382 = tpu.concatenate %319, %381 in 0 : vector<8x64xf32>, vector<8x64xf32> -> vector<16x64xf32>
    %c3_190 = arith.constant 3 : index
    %c0_191 = arith.constant 0 : index
    %c0_192 = arith.constant 0 : index
    %383 = vector.load %arg8[%c3_190, %c0_191, %c0_192] : memref<4x16x64xf32, #tpu.memory_space<vmem>>, vector<1x16x64xf32>
    %384 = vector.shape_cast %383 : vector<1x16x64xf32> to vector<16x64xf32>
    %385 = vector.shape_cast %382 : vector<16x64xf32> to vector<1x16x64xf32>
    tpu.vector_store %arg8[%c3_190, %c0_191, %c0_192], %385 {strides = array<i32>} : memref<4x16x64xf32, #tpu.memory_space<vmem>>, vector<1x16x64xf32>,
    return
  }
  func.func @transform_0(%arg0: i32) -> (i32, i32, i32) {
    %c0_i32 = arith.constant 0 : i32
    %c0_i32_0 = arith.constant 0 : i32
    %c0_i32_1 = arith.constant 0 : i32
    return %arg0, %c0_i32, %c0_i32_0 : i32, i32, i32
  }
  func.func @transform_1(%arg0: i32) -> (i32, i32, i32) {
    %c0_i32 = arith.constant 0 : i32
    %c0_i32_0 = arith.constant 0 : i32
    %c0_i32_1 = arith.constant 0 : i32
    %c0_i32_2 = arith.constant 0 : i32
    return %c0_i32, %c0_i32_0, %c0_i32_1 : i32, i32, i32
  }
  func.func @transform_2(%arg0: i32) -> (i32, i32, i32) {
    %c0_i32 = arith.constant 0 : i32
    %c0_i32_0 = arith.constant 0 : i32
    %c0_i32_1 = arith.constant 0 : i32
    %c0_i32_2 = arith.constant 0 : i32
    return %c0_i32, %c0_i32_0, %c0_i32_1 : i32, i32, i32
  }
  func.func @transform_3(%arg0: i32) -> (i32, i32) {
    %c0_i32 = arith.constant 0 : i32
    %c0_i32_0 = arith.constant 0 : i32
    %c0_i32_1 = arith.constant 0 : i32
    return %c0_i32, %c0_i32_0 : i32, i32
  }
  func.func @transform_4(%arg0: i32) -> (i32, i32) {
    %c0_i32 = arith.constant 0 : i32
    %c0_i32_0 = arith.constant 0 : i32
    %c0_i32_1 = arith.constant 0 : i32
    return %c0_i32, %c0_i32_0 : i32, i32
  }
  func.func @transform_5(%arg0: i32) -> (i32, i32) {
    %c0_i32 = arith.constant 0 : i32
    %c0_i32_0 = arith.constant 0 : i32
    %c0_i32_1 = arith.constant 0 : i32
    return %c0_i32, %c0_i32_0 : i32, i32
  }
  func.func @transform_6(%arg0: i32) -> (i32, i32) {
    %c0_i32 = arith.constant 0 : i32
    %c0_i32_0 = arith.constant 0 : i32
    %c0_i32_1 = arith.constant 0 : i32
    return %c0_i32, %c0_i32_0 : i32, i32
  }
  func.func @transform_7(%arg0: i32) -> (i32, i32, i32) {
    %c0_i32 = arith.constant 0 : i32
    %c0_i32_0 = arith.constant 0 : i32
    %c0_i32_1 = arith.constant 0 : i32
    return %arg0, %c0_i32, %c0_i32_0 : i32, i32, i32
  }
}

module attributes {stable_mosaic.version = 11 : i64} {
  func.func @kernel(%arg0: i32, %arg1: memref<4x16x256xf32, #tpu.memory_space<vmem>>, %arg2: memref<9x256x64xbf16, #tpu.memory_space<vmem>>, %arg3: memref<9x1x64xf32, #tpu.memory_space<vmem>>, %arg4: memref<8x72xbf16, #tpu.memory_space<vmem>>, %arg5: memref<8x1xf32, #tpu.memory_space<vmem>>, %arg6: memref<8x8xbf16, #tpu.memory_space<vmem>>, %arg7: memref<8x1xf32, #tpu.memory_space<vmem>>, %arg8: memref<4x16x64xf32, #tpu.memory_space<vmem>>) attributes {dimension_semantics = [#tpu.dimension_semantics<parallel>], iteration_bounds = array<i64: 2>, scalar_prefetch = 0 : i64, scratch_operands = 0 : i64, tpu.core_type = #tpu.core_type<tc>, window_params = [{transform_indices = @transform_0, window_bounds = array<i64: 4, 16, 256>}, {pipeline_mode = #tpu.pipeline_mode<synchronous>, transform_indices = @transform_1, window_bounds = array<i64: 9, 256, 64>}, {pipeline_mode = #tpu.pipeline_mode<synchronous>, transform_indices = @transform_2, window_bounds = array<i64: 9, 1, 64>}, {pipeline_mode = #tpu.pipeline_mode<synchronous>, transform_indices = @transform_3, window_bounds = array<i64: 8, 72>}, {pipeline_mode = #tpu.pipeline_mode<synchronous>, transform_indices = @transform_4, window_bounds = array<i64: 8, 1>}, {pipeline_mode = #tpu.pipeline_mode<synchronous>, transform_indices = @transform_5, window_bounds = array<i64: 8, 8>}, {pipeline_mode = #tpu.pipeline_mode<synchronous>, transform_indices = @transform_6, window_bounds = array<i64: 8, 1>}, {transform_indices = @transform_7, window_bounds = array<i64: 4, 16, 64>}]} {
    %c0 = arith.constant 0 : index
    %c0_0 = arith.constant 0 : index
    %c0_1 = arith.constant 0 : index
    %0 = vector.load %arg1[%c0, %c0_0, %c0_1] : memref<4x16x256xf32, #tpu.memory_space<vmem>>, vector<4x16x256xf32>
    %1 = vector.shape_cast %0 : vector<4x16x256xf32> to vector<64x256xf32>
    %2 = arith.truncf %1 : vector<64x256xf32> to vector<64x256xbf16>
    %c0_2 = arith.constant 0 : index
    %c0_3 = arith.constant 0 : index
    %c0_4 = arith.constant 0 : index
    %3 = vector.load %arg2[%c0_2, %c0_3, %c0_4] : memref<9x256x64xbf16, #tpu.memory_space<vmem>>, vector<1x256x64xbf16>
    %4 = vector.shape_cast %3 : vector<1x256x64xbf16> to vector<256x64xbf16>
    %cst = arith.constant dense<0.000000e+00> : vector<64x64xf32>
    %5 = tpu.matmul %2, %4, %cst {dimension_numbers = #tpu.dot_dimension_numbers<[1], [0], [0], [1], [0, 0, 1, 1], [], []>} : vector<64x256xbf16>, vector<256x64xbf16>, vector<64x64xf32> -> vector<64x64xf32>
    %c1 = arith.constant 1 : index
    %c0_5 = arith.constant 0 : index
    %c0_6 = arith.constant 0 : index
    %6 = vector.load %arg2[%c1, %c0_5, %c0_6] : memref<9x256x64xbf16, #tpu.memory_space<vmem>>, vector<1x256x64xbf16>
    %7 = vector.shape_cast %6 : vector<1x256x64xbf16> to vector<256x64xbf16>
    %cst_7 = arith.constant dense<0.000000e+00> : vector<64x64xf32>
    %8 = tpu.matmul %2, %7, %cst_7 {dimension_numbers = #tpu.dot_dimension_numbers<[1], [0], [0], [1], [0, 0, 1, 1], [], []>} : vector<64x256xbf16>, vector<256x64xbf16>, vector<64x64xf32> -> vector<64x64xf32>
    %c2 = arith.constant 2 : index
    %c0_8 = arith.constant 0 : index
    %c0_9 = arith.constant 0 : index
    %9 = vector.load %arg2[%c2, %c0_8, %c0_9] : memref<9x256x64xbf16, #tpu.memory_space<vmem>>, vector<1x256x64xbf16>
    %10 = vector.shape_cast %9 : vector<1x256x64xbf16> to vector<256x64xbf16>
    %cst_10 = arith.constant dense<0.000000e+00> : vector<64x64xf32>
    %11 = tpu.matmul %2, %10, %cst_10 {dimension_numbers = #tpu.dot_dimension_numbers<[1], [0], [0], [1], [0, 0, 1, 1], [], []>} : vector<64x256xbf16>, vector<256x64xbf16>, vector<64x64xf32> -> vector<64x64xf32>
    %c3 = arith.constant 3 : index
    %c0_11 = arith.constant 0 : index
    %c0_12 = arith.constant 0 : index
    %12 = vector.load %arg2[%c3, %c0_11, %c0_12] : memref<9x256x64xbf16, #tpu.memory_space<vmem>>, vector<1x256x64xbf16>
    %13 = vector.shape_cast %12 : vector<1x256x64xbf16> to vector<256x64xbf16>
    %cst_13 = arith.constant dense<0.000000e+00> : vector<64x64xf32>
    %14 = tpu.matmul %2, %13, %cst_13 {dimension_numbers = #tpu.dot_dimension_numbers<[1], [0], [0], [1], [0, 0, 1, 1], [], []>} : vector<64x256xbf16>, vector<256x64xbf16>, vector<64x64xf32> -> vector<64x64xf32>
    %c4 = arith.constant 4 : index
    %c0_14 = arith.constant 0 : index
    %c0_15 = arith.constant 0 : index
    %15 = vector.load %arg2[%c4, %c0_14, %c0_15] : memref<9x256x64xbf16, #tpu.memory_space<vmem>>, vector<1x256x64xbf16>
    %16 = vector.shape_cast %15 : vector<1x256x64xbf16> to vector<256x64xbf16>
    %cst_16 = arith.constant dense<0.000000e+00> : vector<64x64xf32>
    %17 = tpu.matmul %2, %16, %cst_16 {dimension_numbers = #tpu.dot_dimension_numbers<[1], [0], [0], [1], [0, 0, 1, 1], [], []>} : vector<64x256xbf16>, vector<256x64xbf16>, vector<64x64xf32> -> vector<64x64xf32>
    %c5 = arith.constant 5 : index
    %c0_17 = arith.constant 0 : index
    %c0_18 = arith.constant 0 : index
    %18 = vector.load %arg2[%c5, %c0_17, %c0_18] : memref<9x256x64xbf16, #tpu.memory_space<vmem>>, vector<1x256x64xbf16>
    %19 = vector.shape_cast %18 : vector<1x256x64xbf16> to vector<256x64xbf16>
    %cst_19 = arith.constant dense<0.000000e+00> : vector<64x64xf32>
    %20 = tpu.matmul %2, %19, %cst_19 {dimension_numbers = #tpu.dot_dimension_numbers<[1], [0], [0], [1], [0, 0, 1, 1], [], []>} : vector<64x256xbf16>, vector<256x64xbf16>, vector<64x64xf32> -> vector<64x64xf32>
    %c6 = arith.constant 6 : index
    %c0_20 = arith.constant 0 : index
    %c0_21 = arith.constant 0 : index
    %21 = vector.load %arg2[%c6, %c0_20, %c0_21] : memref<9x256x64xbf16, #tpu.memory_space<vmem>>, vector<1x256x64xbf16>
    %22 = vector.shape_cast %21 : vector<1x256x64xbf16> to vector<256x64xbf16>
    %cst_22 = arith.constant dense<0.000000e+00> : vector<64x64xf32>
    %23 = tpu.matmul %2, %22, %cst_22 {dimension_numbers = #tpu.dot_dimension_numbers<[1], [0], [0], [1], [0, 0, 1, 1], [], []>} : vector<64x256xbf16>, vector<256x64xbf16>, vector<64x64xf32> -> vector<64x64xf32>
    %c7 = arith.constant 7 : index
    %c0_23 = arith.constant 0 : index
    %c0_24 = arith.constant 0 : index
    %24 = vector.load %arg2[%c7, %c0_23, %c0_24] : memref<9x256x64xbf16, #tpu.memory_space<vmem>>, vector<1x256x64xbf16>
    %25 = vector.shape_cast %24 : vector<1x256x64xbf16> to vector<256x64xbf16>
    %cst_25 = arith.constant dense<0.000000e+00> : vector<64x64xf32>
    %26 = tpu.matmul %2, %25, %cst_25 {dimension_numbers = #tpu.dot_dimension_numbers<[1], [0], [0], [1], [0, 0, 1, 1], [], []>} : vector<64x256xbf16>, vector<256x64xbf16>, vector<64x64xf32> -> vector<64x64xf32>
    %c8 = arith.constant 8 : index
    %c0_26 = arith.constant 0 : index
    %c0_27 = arith.constant 0 : index
    %27 = vector.load %arg2[%c8, %c0_26, %c0_27] : memref<9x256x64xbf16, #tpu.memory_space<vmem>>, vector<1x256x64xbf16>
    %28 = vector.shape_cast %27 : vector<1x256x64xbf16> to vector<256x64xbf16>
    %cst_28 = arith.constant dense<0.000000e+00> : vector<64x64xf32>
    %29 = tpu.matmul %2, %28, %cst_28 {dimension_numbers = #tpu.dot_dimension_numbers<[1], [0], [0], [1], [0, 0, 1, 1], [], []>} : vector<64x256xbf16>, vector<256x64xbf16>, vector<64x64xf32> -> vector<64x64xf32>
    %30 = vector.extract_strided_slice %5 {offsets = [0, 0], sizes = [8, 64], strides = [1, 1]} : vector<64x64xf32> to vector<8x64xf32>
    %31 = vector.extract_strided_slice %8 {offsets = [0, 0], sizes = [8, 64], strides = [1, 1]} : vector<64x64xf32> to vector<8x64xf32>
    %32 = vector.extract_strided_slice %11 {offsets = [0, 0], sizes = [8, 64], strides = [1, 1]} : vector<64x64xf32> to vector<8x64xf32>
    %33 = vector.extract_strided_slice %14 {offsets = [0, 0], sizes = [8, 64], strides = [1, 1]} : vector<64x64xf32> to vector<8x64xf32>
    %34 = vector.extract_strided_slice %17 {offsets = [0, 0], sizes = [8, 64], strides = [1, 1]} : vector<64x64xf32> to vector<8x64xf32>
    %35 = vector.extract_strided_slice %20 {offsets = [0, 0], sizes = [8, 64], strides = [1, 1]} : vector<64x64xf32> to vector<8x64xf32>
    %36 = vector.extract_strided_slice %23 {offsets = [0, 0], sizes = [8, 64], strides = [1, 1]} : vector<64x64xf32> to vector<8x64xf32>
    %37 = vector.extract_strided_slice %26 {offsets = [0, 0], sizes = [8, 64], strides = [1, 1]} : vector<64x64xf32> to vector<8x64xf32>
    %38 = vector.extract_strided_slice %29 {offsets = [0, 0], sizes = [8, 64], strides = [1, 1]} : vector<64x64xf32> to vector<8x64xf32>
    %39 = tpu.concatenate %30, %31, %32, %33, %34, %35, %36, %37, %38 in 0 : vector<8x64xf32>, vector<8x64xf32>, vector<8x64xf32>, vector<8x64xf32>, vector<8x64xf32>, vector<8x64xf32>, vector<8x64xf32>, vector<8x64xf32>, vector<8x64xf32> -> vector<72x64xf32>
    %c0_29 = arith.constant 0 : index
    %c0_30 = arith.constant 0 : index
    %40 = vector.load %arg4[%c0_29, %c0_30] : memref<8x72xbf16, #tpu.memory_space<vmem>>, vector<8x72xbf16>
    %41 = arith.truncf %39 : vector<72x64xf32> to vector<72x64xbf16>
    %cst_31 = arith.constant dense<0.000000e+00> : vector<8x64xf32>
    %42 = tpu.matmul %40, %41, %cst_31 {dimension_numbers = #tpu.dot_dimension_numbers<[1], [0], [0], [1], [0, 0, 1, 1], [], []>} : vector<8x72xbf16>, vector<72x64xbf16>, vector<8x64xf32> -> vector<8x64xf32>
    %c0_32 = arith.constant 0 : index
    %c0_33 = arith.constant 0 : index
    %43 = vector.load %arg5[%c0_32, %c0_33] : memref<8x1xf32, #tpu.memory_space<vmem>>, vector<8x1xf32>
    %44 = vector.broadcast %43 : vector<8x1xf32> to vector<8x64xf32>
    %45 = arith.addf %42, %44 : vector<8x64xf32>
    %cst_34 = arith.constant 0.000000e+00 : f32
    %46 = vector.broadcast %cst_34 : f32 to vector<8x64xf32>
    %47 = arith.subf %46, %45 : vector<8x64xf32>
    %48 = math.exp %47 : vector<8x64xf32>
    %cst_35 = arith.constant 1.000000e+00 : f32
    %49 = vector.broadcast %cst_35 : f32 to vector<8x64xf32>
    %50 = arith.addf %49, %48 : vector<8x64xf32>
    %51 = tpu.reciprocal %50 {approx = true} : vector<8x64xf32> -> vector<8x64xf32>
    %52 = arith.mulf %45, %51 : vector<8x64xf32>
    %53 = vector.extract_strided_slice %17 {offsets = [8, 0], sizes = [8, 64], strides = [1, 1]} : vector<64x64xf32> to vector<8x64xf32>
    %54 = vector.extract_strided_slice %5 {offsets = [8, 0], sizes = [8, 64], strides = [1, 1]} : vector<64x64xf32> to vector<8x64xf32>
    %c0_36 = arith.constant 0 : index
    %c0_37 = arith.constant 0 : index
    %c0_38 = arith.constant 0 : index
    %55 = vector.load %arg3[%c0_36, %c0_37, %c0_38] : memref<9x1x64xf32, #tpu.memory_space<vmem>>, vector<1x1x64xf32>
    %56 = vector.shape_cast %55 : vector<1x1x64xf32> to vector<1x64xf32>
    %57 = vector.broadcast %56 : vector<1x64xf32> to vector<8x64xf32>
    %58 = arith.addf %54, %57 : vector<8x64xf32>
    %59 = arith.maximumf %53, %58 : vector<8x64xf32>
    %60 = vector.extract_strided_slice %8 {offsets = [8, 0], sizes = [8, 64], strides = [1, 1]} : vector<64x64xf32> to vector<8x64xf32>
    %c1_39 = arith.constant 1 : index
    %c0_40 = arith.constant 0 : index
    %c0_41 = arith.constant 0 : index
    %61 = vector.load %arg3[%c1_39, %c0_40, %c0_41] : memref<9x1x64xf32, #tpu.memory_space<vmem>>, vector<1x1x64xf32>
    %62 = vector.shape_cast %61 : vector<1x1x64xf32> to vector<1x64xf32>
    %63 = vector.broadcast %62 : vector<1x64xf32> to vector<8x64xf32>
    %64 = arith.addf %60, %63 : vector<8x64xf32>
    %65 = arith.maximumf %59, %64 : vector<8x64xf32>
    %66 = vector.extract_strided_slice %11 {offsets = [8, 0], sizes = [8, 64], strides = [1, 1]} : vector<64x64xf32> to vector<8x64xf32>
    %c2_42 = arith.constant 2 : index
    %c0_43 = arith.constant 0 : index
    %c0_44 = arith.constant 0 : index
    %67 = vector.load %arg3[%c2_42, %c0_43, %c0_44] : memref<9x1x64xf32, #tpu.memory_space<vmem>>, vector<1x1x64xf32>
    %68 = vector.shape_cast %67 : vector<1x1x64xf32> to vector<1x64xf32>
    %69 = vector.broadcast %68 : vector<1x64xf32> to vector<8x64xf32>
    %70 = arith.addf %66, %69 : vector<8x64xf32>
    %71 = arith.maximumf %65, %70 : vector<8x64xf32>
    %72 = vector.extract_strided_slice %14 {offsets = [8, 0], sizes = [8, 64], strides = [1, 1]} : vector<64x64xf32> to vector<8x64xf32>
    %c3_45 = arith.constant 3 : index
    %c0_46 = arith.constant 0 : index
    %c0_47 = arith.constant 0 : index
    %73 = vector.load %arg3[%c3_45, %c0_46, %c0_47] : memref<9x1x64xf32, #tpu.memory_space<vmem>>, vector<1x1x64xf32>
    %74 = vector.shape_cast %73 : vector<1x1x64xf32> to vector<1x64xf32>
    %75 = vector.broadcast %74 : vector<1x64xf32> to vector<8x64xf32>
    %76 = arith.addf %72, %75 : vector<8x64xf32>
    %77 = arith.maximumf %71, %76 : vector<8x64xf32>
    %78 = vector.extract_strided_slice %20 {offsets = [8, 0], sizes = [8, 64], strides = [1, 1]} : vector<64x64xf32> to vector<8x64xf32>
    %c5_48 = arith.constant 5 : index
    %c0_49 = arith.constant 0 : index
    %c0_50 = arith.constant 0 : index
    %79 = vector.load %arg3[%c5_48, %c0_49, %c0_50] : memref<9x1x64xf32, #tpu.memory_space<vmem>>, vector<1x1x64xf32>
    %80 = vector.shape_cast %79 : vector<1x1x64xf32> to vector<1x64xf32>
    %81 = vector.broadcast %80 : vector<1x64xf32> to vector<8x64xf32>
    %82 = arith.addf %78, %81 : vector<8x64xf32>
    %83 = arith.maximumf %77, %82 : vector<8x64xf32>
    %84 = vector.extract_strided_slice %23 {offsets = [8, 0], sizes = [8, 64], strides = [1, 1]} : vector<64x64xf32> to vector<8x64xf32>
    %c6_51 = arith.constant 6 : index
    %c0_52 = arith.constant 0 : index
    %c0_53 = arith.constant 0 : index
    %85 = vector.load %arg3[%c6_51, %c0_52, %c0_53] : memref<9x1x64xf32, #tpu.memory_space<vmem>>, vector<1x1x64xf32>
    %86 = vector.shape_cast %85 : vector<1x1x64xf32> to vector<1x64xf32>
    %87 = vector.broadcast %86 : vector<1x64xf32> to vector<8x64xf32>
    %88 = arith.addf %84, %87 : vector<8x64xf32>
    %89 = arith.maximumf %83, %88 : vector<8x64xf32>
    %90 = vector.extract_strided_slice %26 {offsets = [8, 0], sizes = [8, 64], strides = [1, 1]} : vector<64x64xf32> to vector<8x64xf32>
    %c7_54 = arith.constant 7 : index
    %c0_55 = arith.constant 0 : index
    %c0_56 = arith.constant 0 : index
    %91 = vector.load %arg3[%c7_54, %c0_55, %c0_56] : memref<9x1x64xf32, #tpu.memory_space<vmem>>, vector<1x1x64xf32>
    %92 = vector.shape_cast %91 : vector<1x1x64xf32> to vector<1x64xf32>
    %93 = vector.broadcast %92 : vector<1x64xf32> to vector<8x64xf32>
    %94 = arith.addf %90, %93 : vector<8x64xf32>
    %95 = arith.maximumf %89, %94 : vector<8x64xf32>
    %96 = vector.extract_strided_slice %29 {offsets = [8, 0], sizes = [8, 64], strides = [1, 1]} : vector<64x64xf32> to vector<8x64xf32>
    %c8_57 = arith.constant 8 : index
    %c0_58 = arith.constant 0 : index
    %c0_59 = arith.constant 0 : index
    %97 = vector.load %arg3[%c8_57, %c0_58, %c0_59] : memref<9x1x64xf32, #tpu.memory_space<vmem>>, vector<1x1x64xf32>
    %98 = vector.shape_cast %97 : vector<1x1x64xf32> to vector<1x64xf32>
    %99 = vector.broadcast %98 : vector<1x64xf32> to vector<8x64xf32>
    %100 = arith.addf %96, %99 : vector<8x64xf32>
    %101 = arith.maximumf %95, %100 : vector<8x64xf32>
    %c0_60 = arith.constant 0 : index
    %c0_61 = arith.constant 0 : index
    %102 = vector.load %arg6[%c0_60, %c0_61] : memref<8x8xbf16, #tpu.memory_space<vmem>>, vector<8x8xbf16>
    %103 = arith.truncf %101 : vector<8x64xf32> to vector<8x64xbf16>
    %cst_62 = arith.constant dense<0.000000e+00> : vector<8x64xf32>
    %104 = tpu.matmul %102, %103, %cst_62 {dimension_numbers = #tpu.dot_dimension_numbers<[1], [0], [0], [1], [0, 0, 1, 1], [], []>} : vector<8x8xbf16>, vector<8x64xbf16>, vector<8x64xf32> -> vector<8x64xf32>
    %c0_63 = arith.constant 0 : index
    %c0_64 = arith.constant 0 : index
    %105 = vector.load %arg7[%c0_63, %c0_64] : memref<8x1xf32, #tpu.memory_space<vmem>>, vector<8x1xf32>
    %106 = vector.broadcast %105 : vector<8x1xf32> to vector<8x64xf32>
    %107 = arith.addf %104, %106 : vector<8x64xf32>
    %cst_65 = arith.constant 0.000000e+00 : f32
    %108 = vector.broadcast %cst_65 : f32 to vector<8x64xf32>
    %109 = arith.subf %108, %107 : vector<8x64xf32>
    %110 = math.exp %109 : vector<8x64xf32>
    %cst_66 = arith.constant 1.000000e+00 : f32
    %111 = vector.broadcast %cst_66 : f32 to vector<8x64xf32>
    %112 = arith.addf %111, %110 : vector<8x64xf32>
    %113 = tpu.reciprocal %112 {approx = true} : vector<8x64xf32> -> vector<8x64xf32>
    %114 = arith.mulf %107, %113 : vector<8x64xf32>
    %115 = tpu.concatenate %52, %114 in 0 : vector<8x64xf32>, vector<8x64xf32> -> vector<16x64xf32>
    %c0_67 = arith.constant 0 : index
    %c0_68 = arith.constant 0 : index
    %c0_69 = arith.constant 0 : index
    %116 = vector.load %arg8[%c0_67, %c0_68, %c0_69] : memref<4x16x64xf32, #tpu.memory_space<vmem>>, vector<1x16x64xf32>
    %117 = vector.shape_cast %116 : vector<1x16x64xf32> to vector<16x64xf32>
    %118 = vector.shape_cast %115 : vector<16x64xf32> to vector<1x16x64xf32>
    tpu.vector_store %arg8[%c0_67, %c0_68, %c0_69], %118 {strides = array<i32>} : memref<4x16x64xf32, #tpu.memory_space<vmem>>, vector<1x16x64xf32>,
    %119 = vector.extract_strided_slice %5 {offsets = [16, 0], sizes = [8, 64], strides = [1, 1]} : vector<64x64xf32> to vector<8x64xf32>
    %120 = vector.extract_strided_slice %8 {offsets = [16, 0], sizes = [8, 64], strides = [1, 1]} : vector<64x64xf32> to vector<8x64xf32>
    %121 = vector.extract_strided_slice %11 {offsets = [16, 0], sizes = [8, 64], strides = [1, 1]} : vector<64x64xf32> to vector<8x64xf32>
    %122 = vector.extract_strided_slice %14 {offsets = [16, 0], sizes = [8, 64], strides = [1, 1]} : vector<64x64xf32> to vector<8x64xf32>
    %123 = vector.extract_strided_slice %17 {offsets = [16, 0], sizes = [8, 64], strides = [1, 1]} : vector<64x64xf32> to vector<8x64xf32>
    %124 = vector.extract_strided_slice %20 {offsets = [16, 0], sizes = [8, 64], strides = [1, 1]} : vector<64x64xf32> to vector<8x64xf32>
    %125 = vector.extract_strided_slice %23 {offsets = [16, 0], sizes = [8, 64], strides = [1, 1]} : vector<64x64xf32> to vector<8x64xf32>
    %126 = vector.extract_strided_slice %26 {offsets = [16, 0], sizes = [8, 64], strides = [1, 1]} : vector<64x64xf32> to vector<8x64xf32>
    %127 = vector.extract_strided_slice %29 {offsets = [16, 0], sizes = [8, 64], strides = [1, 1]} : vector<64x64xf32> to vector<8x64xf32>
    %128 = tpu.concatenate %119, %120, %121, %122, %123, %124, %125, %126, %127 in 0 : vector<8x64xf32>, vector<8x64xf32>, vector<8x64xf32>, vector<8x64xf32>, vector<8x64xf32>, vector<8x64xf32>, vector<8x64xf32>, vector<8x64xf32>, vector<8x64xf32> -> vector<72x64xf32>
    %c0_70 = arith.constant 0 : index
    %c0_71 = arith.constant 0 : index
    %129 = vector.load %arg4[%c0_70, %c0_71] : memref<8x72xbf16, #tpu.memory_space<vmem>>, vector<8x72xbf16>
    %130 = arith.truncf %128 : vector<72x64xf32> to vector<72x64xbf16>
    %cst_72 = arith.constant dense<0.000000e+00> : vector<8x64xf32>
    %131 = tpu.matmul %129, %130, %cst_72 {dimension_numbers = #tpu.dot_dimension_numbers<[1], [0], [0], [1], [0, 0, 1, 1], [], []>} : vector<8x72xbf16>, vector<72x64xbf16>, vector<8x64xf32> -> vector<8x64xf32>
    %c0_73 = arith.constant 0 : index
    %c0_74 = arith.constant 0 : index
    %132 = vector.load %arg5[%c0_73, %c0_74] : memref<8x1xf32, #tpu.memory_space<vmem>>, vector<8x1xf32>
    %133 = vector.broadcast %132 : vector<8x1xf32> to vector<8x64xf32>
    %134 = arith.addf %131, %133 : vector<8x64xf32>
    %cst_75 = arith.constant 0.000000e+00 : f32
    %135 = vector.broadcast %cst_75 : f32 to vector<8x64xf32>
    %136 = arith.subf %135, %134 : vector<8x64xf32>
    %137 = math.exp %136 : vector<8x64xf32>
    %cst_76 = arith.constant 1.000000e+00 : f32
    %138 = vector.broadcast %cst_76 : f32 to vector<8x64xf32>
    %139 = arith.addf %138, %137 : vector<8x64xf32>
    %140 = tpu.reciprocal %139 {approx = true} : vector<8x64xf32> -> vector<8x64xf32>
    %141 = arith.mulf %134, %140 : vector<8x64xf32>
    %142 = vector.extract_strided_slice %17 {offsets = [24, 0], sizes = [8, 64], strides = [1, 1]} : vector<64x64xf32> to vector<8x64xf32>
    %143 = vector.extract_strided_slice %5 {offsets = [24, 0], sizes = [8, 64], strides = [1, 1]} : vector<64x64xf32> to vector<8x64xf32>
    %c0_77 = arith.constant 0 : index
    %c0_78 = arith.constant 0 : index
    %c0_79 = arith.constant 0 : index
    %144 = vector.load %arg3[%c0_77, %c0_78, %c0_79] : memref<9x1x64xf32, #tpu.memory_space<vmem>>, vector<1x1x64xf32>
    %145 = vector.shape_cast %144 : vector<1x1x64xf32> to vector<1x64xf32>
    %146 = vector.broadcast %145 : vector<1x64xf32> to vector<8x64xf32>
    %147 = arith.addf %143, %146 : vector<8x64xf32>
    %148 = arith.maximumf %142, %147 : vector<8x64xf32>
    %149 = vector.extract_strided_slice %8 {offsets = [24, 0], sizes = [8, 64], strides = [1, 1]} : vector<64x64xf32> to vector<8x64xf32>
    %c1_80 = arith.constant 1 : index
    %c0_81 = arith.constant 0 : index
    %c0_82 = arith.constant 0 : index
    %150 = vector.load %arg3[%c1_80, %c0_81, %c0_82] : memref<9x1x64xf32, #tpu.memory_space<vmem>>, vector<1x1x64xf32>
    %151 = vector.shape_cast %150 : vector<1x1x64xf32> to vector<1x64xf32>
    %152 = vector.broadcast %151 : vector<1x64xf32> to vector<8x64xf32>
    %153 = arith.addf %149, %152 : vector<8x64xf32>
    %154 = arith.maximumf %148, %153 : vector<8x64xf32>
    %155 = vector.extract_strided_slice %11 {offsets = [24, 0], sizes = [8, 64], strides = [1, 1]} : vector<64x64xf32> to vector<8x64xf32>
    %c2_83 = arith.constant 2 : index
    %c0_84 = arith.constant 0 : index
    %c0_85 = arith.constant 0 : index
    %156 = vector.load %arg3[%c2_83, %c0_84, %c0_85] : memref<9x1x64xf32, #tpu.memory_space<vmem>>, vector<1x1x64xf32>
    %157 = vector.shape_cast %156 : vector<1x1x64xf32> to vector<1x64xf32>
    %158 = vector.broadcast %157 : vector<1x64xf32> to vector<8x64xf32>
    %159 = arith.addf %155, %158 : vector<8x64xf32>
    %160 = arith.maximumf %154, %159 : vector<8x64xf32>
    %161 = vector.extract_strided_slice %14 {offsets = [24, 0], sizes = [8, 64], strides = [1, 1]} : vector<64x64xf32> to vector<8x64xf32>
    %c3_86 = arith.constant 3 : index
    %c0_87 = arith.constant 0 : index
    %c0_88 = arith.constant 0 : index
    %162 = vector.load %arg3[%c3_86, %c0_87, %c0_88] : memref<9x1x64xf32, #tpu.memory_space<vmem>>, vector<1x1x64xf32>
    %163 = vector.shape_cast %162 : vector<1x1x64xf32> to vector<1x64xf32>
    %164 = vector.broadcast %163 : vector<1x64xf32> to vector<8x64xf32>
    %165 = arith.addf %161, %164 : vector<8x64xf32>
    %166 = arith.maximumf %160, %165 : vector<8x64xf32>
    %167 = vector.extract_strided_slice %20 {offsets = [24, 0], sizes = [8, 64], strides = [1, 1]} : vector<64x64xf32> to vector<8x64xf32>
    %c5_89 = arith.constant 5 : index
    %c0_90 = arith.constant 0 : index
    %c0_91 = arith.constant 0 : index
    %168 = vector.load %arg3[%c5_89, %c0_90, %c0_91] : memref<9x1x64xf32, #tpu.memory_space<vmem>>, vector<1x1x64xf32>
    %169 = vector.shape_cast %168 : vector<1x1x64xf32> to vector<1x64xf32>
    %170 = vector.broadcast %169 : vector<1x64xf32> to vector<8x64xf32>
    %171 = arith.addf %167, %170 : vector<8x64xf32>
    %172 = arith.maximumf %166, %171 : vector<8x64xf32>
    %173 = vector.extract_strided_slice %23 {offsets = [24, 0], sizes = [8, 64], strides = [1, 1]} : vector<64x64xf32> to vector<8x64xf32>
    %c6_92 = arith.constant 6 : index
    %c0_93 = arith.constant 0 : index
    %c0_94 = arith.constant 0 : index
    %174 = vector.load %arg3[%c6_92, %c0_93, %c0_94] : memref<9x1x64xf32, #tpu.memory_space<vmem>>, vector<1x1x64xf32>
    %175 = vector.shape_cast %174 : vector<1x1x64xf32> to vector<1x64xf32>
    %176 = vector.broadcast %175 : vector<1x64xf32> to vector<8x64xf32>
    %177 = arith.addf %173, %176 : vector<8x64xf32>
    %178 = arith.maximumf %172, %177 : vector<8x64xf32>
    %179 = vector.extract_strided_slice %26 {offsets = [24, 0], sizes = [8, 64], strides = [1, 1]} : vector<64x64xf32> to vector<8x64xf32>
    %c7_95 = arith.constant 7 : index
    %c0_96 = arith.constant 0 : index
    %c0_97 = arith.constant 0 : index
    %180 = vector.load %arg3[%c7_95, %c0_96, %c0_97] : memref<9x1x64xf32, #tpu.memory_space<vmem>>, vector<1x1x64xf32>
    %181 = vector.shape_cast %180 : vector<1x1x64xf32> to vector<1x64xf32>
    %182 = vector.broadcast %181 : vector<1x64xf32> to vector<8x64xf32>
    %183 = arith.addf %179, %182 : vector<8x64xf32>
    %184 = arith.maximumf %178, %183 : vector<8x64xf32>
    %185 = vector.extract_strided_slice %29 {offsets = [24, 0], sizes = [8, 64], strides = [1, 1]} : vector<64x64xf32> to vector<8x64xf32>
    %c8_98 = arith.constant 8 : index
    %c0_99 = arith.constant 0 : index
    %c0_100 = arith.constant 0 : index
    %186 = vector.load %arg3[%c8_98, %c0_99, %c0_100] : memref<9x1x64xf32, #tpu.memory_space<vmem>>, vector<1x1x64xf32>
    %187 = vector.shape_cast %186 : vector<1x1x64xf32> to vector<1x64xf32>
    %188 = vector.broadcast %187 : vector<1x64xf32> to vector<8x64xf32>
    %189 = arith.addf %185, %188 : vector<8x64xf32>
    %190 = arith.maximumf %184, %189 : vector<8x64xf32>
    %c0_101 = arith.constant 0 : index
    %c0_102 = arith.constant 0 : index
    %191 = vector.load %arg6[%c0_101, %c0_102] : memref<8x8xbf16, #tpu.memory_space<vmem>>, vector<8x8xbf16>
    %192 = arith.truncf %190 : vector<8x64xf32> to vector<8x64xbf16>
    %cst_103 = arith.constant dense<0.000000e+00> : vector<8x64xf32>
    %193 = tpu.matmul %191, %192, %cst_103 {dimension_numbers = #tpu.dot_dimension_numbers<[1], [0], [0], [1], [0, 0, 1, 1], [], []>} : vector<8x8xbf16>, vector<8x64xbf16>, vector<8x64xf32> -> vector<8x64xf32>
    %c0_104 = arith.constant 0 : index
    %c0_105 = arith.constant 0 : index
    %194 = vector.load %arg7[%c0_104, %c0_105] : memref<8x1xf32, #tpu.memory_space<vmem>>, vector<8x1xf32>
    %195 = vector.broadcast %194 : vector<8x1xf32> to vector<8x64xf32>
    %196 = arith.addf %193, %195 : vector<8x64xf32>
    %cst_106 = arith.constant 0.000000e+00 : f32
    %197 = vector.broadcast %cst_106 : f32 to vector<8x64xf32>
    %198 = arith.subf %197, %196 : vector<8x64xf32>
    %199 = math.exp %198 : vector<8x64xf32>
    %cst_107 = arith.constant 1.000000e+00 : f32
    %200 = vector.broadcast %cst_107 : f32 to vector<8x64xf32>
    %201 = arith.addf %200, %199 : vector<8x64xf32>
    %202 = tpu.reciprocal %201 {approx = true} : vector<8x64xf32> -> vector<8x64xf32>
    %203 = arith.mulf %196, %202 : vector<8x64xf32>
    %204 = tpu.concatenate %141, %203 in 0 : vector<8x64xf32>, vector<8x64xf32> -> vector<16x64xf32>
    %c1_108 = arith.constant 1 : index
    %c0_109 = arith.constant 0 : index
    %c0_110 = arith.constant 0 : index
    %205 = vector.load %arg8[%c1_108, %c0_109, %c0_110] : memref<4x16x64xf32, #tpu.memory_space<vmem>>, vector<1x16x64xf32>
    %206 = vector.shape_cast %205 : vector<1x16x64xf32> to vector<16x64xf32>
    %207 = vector.shape_cast %204 : vector<16x64xf32> to vector<1x16x64xf32>
    tpu.vector_store %arg8[%c1_108, %c0_109, %c0_110], %207 {strides = array<i32>} : memref<4x16x64xf32, #tpu.memory_space<vmem>>, vector<1x16x64xf32>,
    %208 = vector.extract_strided_slice %5 {offsets = [32, 0], sizes = [8, 64], strides = [1, 1]} : vector<64x64xf32> to vector<8x64xf32>
    %209 = vector.extract_strided_slice %8 {offsets = [32, 0], sizes = [8, 64], strides = [1, 1]} : vector<64x64xf32> to vector<8x64xf32>
    %210 = vector.extract_strided_slice %11 {offsets = [32, 0], sizes = [8, 64], strides = [1, 1]} : vector<64x64xf32> to vector<8x64xf32>
    %211 = vector.extract_strided_slice %14 {offsets = [32, 0], sizes = [8, 64], strides = [1, 1]} : vector<64x64xf32> to vector<8x64xf32>
    %212 = vector.extract_strided_slice %17 {offsets = [32, 0], sizes = [8, 64], strides = [1, 1]} : vector<64x64xf32> to vector<8x64xf32>
    %213 = vector.extract_strided_slice %20 {offsets = [32, 0], sizes = [8, 64], strides = [1, 1]} : vector<64x64xf32> to vector<8x64xf32>
    %214 = vector.extract_strided_slice %23 {offsets = [32, 0], sizes = [8, 64], strides = [1, 1]} : vector<64x64xf32> to vector<8x64xf32>
    %215 = vector.extract_strided_slice %26 {offsets = [32, 0], sizes = [8, 64], strides = [1, 1]} : vector<64x64xf32> to vector<8x64xf32>
    %216 = vector.extract_strided_slice %29 {offsets = [32, 0], sizes = [8, 64], strides = [1, 1]} : vector<64x64xf32> to vector<8x64xf32>
    %217 = tpu.concatenate %208, %209, %210, %211, %212, %213, %214, %215, %216 in 0 : vector<8x64xf32>, vector<8x64xf32>, vector<8x64xf32>, vector<8x64xf32>, vector<8x64xf32>, vector<8x64xf32>, vector<8x64xf32>, vector<8x64xf32>, vector<8x64xf32> -> vector<72x64xf32>
    %c0_111 = arith.constant 0 : index
    %c0_112 = arith.constant 0 : index
    %218 = vector.load %arg4[%c0_111, %c0_112] : memref<8x72xbf16, #tpu.memory_space<vmem>>, vector<8x72xbf16>
    %219 = arith.truncf %217 : vector<72x64xf32> to vector<72x64xbf16>
    %cst_113 = arith.constant dense<0.000000e+00> : vector<8x64xf32>
    %220 = tpu.matmul %218, %219, %cst_113 {dimension_numbers = #tpu.dot_dimension_numbers<[1], [0], [0], [1], [0, 0, 1, 1], [], []>} : vector<8x72xbf16>, vector<72x64xbf16>, vector<8x64xf32> -> vector<8x64xf32>
    %c0_114 = arith.constant 0 : index
    %c0_115 = arith.constant 0 : index
    %221 = vector.load %arg5[%c0_114, %c0_115] : memref<8x1xf32, #tpu.memory_space<vmem>>, vector<8x1xf32>
    %222 = vector.broadcast %221 : vector<8x1xf32> to vector<8x64xf32>
    %223 = arith.addf %220, %222 : vector<8x64xf32>
    %cst_116 = arith.constant 0.000000e+00 : f32
    %224 = vector.broadcast %cst_116 : f32 to vector<8x64xf32>
    %225 = arith.subf %224, %223 : vector<8x64xf32>
    %226 = math.exp %225 : vector<8x64xf32>
    %cst_117 = arith.constant 1.000000e+00 : f32
    %227 = vector.broadcast %cst_117 : f32 to vector<8x64xf32>
    %228 = arith.addf %227, %226 : vector<8x64xf32>
    %229 = tpu.reciprocal %228 {approx = true} : vector<8x64xf32> -> vector<8x64xf32>
    %230 = arith.mulf %223, %229 : vector<8x64xf32>
    %231 = vector.extract_strided_slice %17 {offsets = [40, 0], sizes = [8, 64], strides = [1, 1]} : vector<64x64xf32> to vector<8x64xf32>
    %232 = vector.extract_strided_slice %5 {offsets = [40, 0], sizes = [8, 64], strides = [1, 1]} : vector<64x64xf32> to vector<8x64xf32>
    %c0_118 = arith.constant 0 : index
    %c0_119 = arith.constant 0 : index
    %c0_120 = arith.constant 0 : index
    %233 = vector.load %arg3[%c0_118, %c0_119, %c0_120] : memref<9x1x64xf32, #tpu.memory_space<vmem>>, vector<1x1x64xf32>
    %234 = vector.shape_cast %233 : vector<1x1x64xf32> to vector<1x64xf32>
    %235 = vector.broadcast %234 : vector<1x64xf32> to vector<8x64xf32>
    %236 = arith.addf %232, %235 : vector<8x64xf32>
    %237 = arith.maximumf %231, %236 : vector<8x64xf32>
    %238 = vector.extract_strided_slice %8 {offsets = [40, 0], sizes = [8, 64], strides = [1, 1]} : vector<64x64xf32> to vector<8x64xf32>
    %c1_121 = arith.constant 1 : index
    %c0_122 = arith.constant 0 : index
    %c0_123 = arith.constant 0 : index
    %239 = vector.load %arg3[%c1_121, %c0_122, %c0_123] : memref<9x1x64xf32, #tpu.memory_space<vmem>>, vector<1x1x64xf32>
    %240 = vector.shape_cast %239 : vector<1x1x64xf32> to vector<1x64xf32>
    %241 = vector.broadcast %240 : vector<1x64xf32> to vector<8x64xf32>
    %242 = arith.addf %238, %241 : vector<8x64xf32>
    %243 = arith.maximumf %237, %242 : vector<8x64xf32>
    %244 = vector.extract_strided_slice %11 {offsets = [40, 0], sizes = [8, 64], strides = [1, 1]} : vector<64x64xf32> to vector<8x64xf32>
    %c2_124 = arith.constant 2 : index
    %c0_125 = arith.constant 0 : index
    %c0_126 = arith.constant 0 : index
    %245 = vector.load %arg3[%c2_124, %c0_125, %c0_126] : memref<9x1x64xf32, #tpu.memory_space<vmem>>, vector<1x1x64xf32>
    %246 = vector.shape_cast %245 : vector<1x1x64xf32> to vector<1x64xf32>
    %247 = vector.broadcast %246 : vector<1x64xf32> to vector<8x64xf32>
    %248 = arith.addf %244, %247 : vector<8x64xf32>
    %249 = arith.maximumf %243, %248 : vector<8x64xf32>
    %250 = vector.extract_strided_slice %14 {offsets = [40, 0], sizes = [8, 64], strides = [1, 1]} : vector<64x64xf32> to vector<8x64xf32>
    %c3_127 = arith.constant 3 : index
    %c0_128 = arith.constant 0 : index
    %c0_129 = arith.constant 0 : index
    %251 = vector.load %arg3[%c3_127, %c0_128, %c0_129] : memref<9x1x64xf32, #tpu.memory_space<vmem>>, vector<1x1x64xf32>
    %252 = vector.shape_cast %251 : vector<1x1x64xf32> to vector<1x64xf32>
    %253 = vector.broadcast %252 : vector<1x64xf32> to vector<8x64xf32>
    %254 = arith.addf %250, %253 : vector<8x64xf32>
    %255 = arith.maximumf %249, %254 : vector<8x64xf32>
    %256 = vector.extract_strided_slice %20 {offsets = [40, 0], sizes = [8, 64], strides = [1, 1]} : vector<64x64xf32> to vector<8x64xf32>
    %c5_130 = arith.constant 5 : index
    %c0_131 = arith.constant 0 : index
    %c0_132 = arith.constant 0 : index
    %257 = vector.load %arg3[%c5_130, %c0_131, %c0_132] : memref<9x1x64xf32, #tpu.memory_space<vmem>>, vector<1x1x64xf32>
    %258 = vector.shape_cast %257 : vector<1x1x64xf32> to vector<1x64xf32>
    %259 = vector.broadcast %258 : vector<1x64xf32> to vector<8x64xf32>
    %260 = arith.addf %256, %259 : vector<8x64xf32>
    %261 = arith.maximumf %255, %260 : vector<8x64xf32>
    %262 = vector.extract_strided_slice %23 {offsets = [40, 0], sizes = [8, 64], strides = [1, 1]} : vector<64x64xf32> to vector<8x64xf32>
    %c6_133 = arith.constant 6 : index
    %c0_134 = arith.constant 0 : index
    %c0_135 = arith.constant 0 : index
    %263 = vector.load %arg3[%c6_133, %c0_134, %c0_135] : memref<9x1x64xf32, #tpu.memory_space<vmem>>, vector<1x1x64xf32>
    %264 = vector.shape_cast %263 : vector<1x1x64xf32> to vector<1x64xf32>
    %265 = vector.broadcast %264 : vector<1x64xf32> to vector<8x64xf32>
    %266 = arith.addf %262, %265 : vector<8x64xf32>
    %267 = arith.maximumf %261, %266 : vector<8x64xf32>
    %268 = vector.extract_strided_slice %26 {offsets = [40, 0], sizes = [8, 64], strides = [1, 1]} : vector<64x64xf32> to vector<8x64xf32>
    %c7_136 = arith.constant 7 : index
    %c0_137 = arith.constant 0 : index
    %c0_138 = arith.constant 0 : index
    %269 = vector.load %arg3[%c7_136, %c0_137, %c0_138] : memref<9x1x64xf32, #tpu.memory_space<vmem>>, vector<1x1x64xf32>
    %270 = vector.shape_cast %269 : vector<1x1x64xf32> to vector<1x64xf32>
    %271 = vector.broadcast %270 : vector<1x64xf32> to vector<8x64xf32>
    %272 = arith.addf %268, %271 : vector<8x64xf32>
    %273 = arith.maximumf %267, %272 : vector<8x64xf32>
    %274 = vector.extract_strided_slice %29 {offsets = [40, 0], sizes = [8, 64], strides = [1, 1]} : vector<64x64xf32> to vector<8x64xf32>
    %c8_139 = arith.constant 8 : index
    %c0_140 = arith.constant 0 : index
    %c0_141 = arith.constant 0 : index
    %275 = vector.load %arg3[%c8_139, %c0_140, %c0_141] : memref<9x1x64xf32, #tpu.memory_space<vmem>>, vector<1x1x64xf32>
    %276 = vector.shape_cast %275 : vector<1x1x64xf32> to vector<1x64xf32>
    %277 = vector.broadcast %276 : vector<1x64xf32> to vector<8x64xf32>
    %278 = arith.addf %274, %277 : vector<8x64xf32>
    %279 = arith.maximumf %273, %278 : vector<8x64xf32>
    %c0_142 = arith.constant 0 : index
    %c0_143 = arith.constant 0 : index
    %280 = vector.load %arg6[%c0_142, %c0_143] : memref<8x8xbf16, #tpu.memory_space<vmem>>, vector<8x8xbf16>
    %281 = arith.truncf %279 : vector<8x64xf32> to vector<8x64xbf16>
    %cst_144 = arith.constant dense<0.000000e+00> : vector<8x64xf32>
    %282 = tpu.matmul %280, %281, %cst_144 {dimension_numbers = #tpu.dot_dimension_numbers<[1], [0], [0], [1], [0, 0, 1, 1], [], []>} : vector<8x8xbf16>, vector<8x64xbf16>, vector<8x64xf32> -> vector<8x64xf32>
    %c0_145 = arith.constant 0 : index
    %c0_146 = arith.constant 0 : index
    %283 = vector.load %arg7[%c0_145, %c0_146] : memref<8x1xf32, #tpu.memory_space<vmem>>, vector<8x1xf32>
    %284 = vector.broadcast %283 : vector<8x1xf32> to vector<8x64xf32>
    %285 = arith.addf %282, %284 : vector<8x64xf32>
    %cst_147 = arith.constant 0.000000e+00 : f32
    %286 = vector.broadcast %cst_147 : f32 to vector<8x64xf32>
    %287 = arith.subf %286, %285 : vector<8x64xf32>
    %288 = math.exp %287 : vector<8x64xf32>
    %cst_148 = arith.constant 1.000000e+00 : f32
    %289 = vector.broadcast %cst_148 : f32 to vector<8x64xf32>
    %290 = arith.addf %289, %288 : vector<8x64xf32>
    %291 = tpu.reciprocal %290 {approx = true} : vector<8x64xf32> -> vector<8x64xf32>
    %292 = arith.mulf %285, %291 : vector<8x64xf32>
    %293 = tpu.concatenate %230, %292 in 0 : vector<8x64xf32>, vector<8x64xf32> -> vector<16x64xf32>
    %c2_149 = arith.constant 2 : index
    %c0_150 = arith.constant 0 : index
    %c0_151 = arith.constant 0 : index
    %294 = vector.load %arg8[%c2_149, %c0_150, %c0_151] : memref<4x16x64xf32, #tpu.memory_space<vmem>>, vector<1x16x64xf32>
    %295 = vector.shape_cast %294 : vector<1x16x64xf32> to vector<16x64xf32>
    %296 = vector.shape_cast %293 : vector<16x64xf32> to vector<1x16x64xf32>
    tpu.vector_store %arg8[%c2_149, %c0_150, %c0_151], %296 {strides = array<i32>} : memref<4x16x64xf32, #tpu.memory_space<vmem>>, vector<1x16x64xf32>,
    %297 = vector.extract_strided_slice %5 {offsets = [48, 0], sizes = [8, 64], strides = [1, 1]} : vector<64x64xf32> to vector<8x64xf32>
    %298 = vector.extract_strided_slice %8 {offsets = [48, 0], sizes = [8, 64], strides = [1, 1]} : vector<64x64xf32> to vector<8x64xf32>
    %299 = vector.extract_strided_slice %11 {offsets = [48, 0], sizes = [8, 64], strides = [1, 1]} : vector<64x64xf32> to vector<8x64xf32>
    %300 = vector.extract_strided_slice %14 {offsets = [48, 0], sizes = [8, 64], strides = [1, 1]} : vector<64x64xf32> to vector<8x64xf32>
    %301 = vector.extract_strided_slice %17 {offsets = [48, 0], sizes = [8, 64], strides = [1, 1]} : vector<64x64xf32> to vector<8x64xf32>
    %302 = vector.extract_strided_slice %20 {offsets = [48, 0], sizes = [8, 64], strides = [1, 1]} : vector<64x64xf32> to vector<8x64xf32>
    %303 = vector.extract_strided_slice %23 {offsets = [48, 0], sizes = [8, 64], strides = [1, 1]} : vector<64x64xf32> to vector<8x64xf32>
    %304 = vector.extract_strided_slice %26 {offsets = [48, 0], sizes = [8, 64], strides = [1, 1]} : vector<64x64xf32> to vector<8x64xf32>
    %305 = vector.extract_strided_slice %29 {offsets = [48, 0], sizes = [8, 64], strides = [1, 1]} : vector<64x64xf32> to vector<8x64xf32>
    %306 = tpu.concatenate %297, %298, %299, %300, %301, %302, %303, %304, %305 in 0 : vector<8x64xf32>, vector<8x64xf32>, vector<8x64xf32>, vector<8x64xf32>, vector<8x64xf32>, vector<8x64xf32>, vector<8x64xf32>, vector<8x64xf32>, vector<8x64xf32> -> vector<72x64xf32>
    %c0_152 = arith.constant 0 : index
    %c0_153 = arith.constant 0 : index
    %307 = vector.load %arg4[%c0_152, %c0_153] : memref<8x72xbf16, #tpu.memory_space<vmem>>, vector<8x72xbf16>
    %308 = arith.truncf %306 : vector<72x64xf32> to vector<72x64xbf16>
    %cst_154 = arith.constant dense<0.000000e+00> : vector<8x64xf32>
    %309 = tpu.matmul %307, %308, %cst_154 {dimension_numbers = #tpu.dot_dimension_numbers<[1], [0], [0], [1], [0, 0, 1, 1], [], []>} : vector<8x72xbf16>, vector<72x64xbf16>, vector<8x64xf32> -> vector<8x64xf32>
    %c0_155 = arith.constant 0 : index
    %c0_156 = arith.constant 0 : index
    %310 = vector.load %arg5[%c0_155, %c0_156] : memref<8x1xf32, #tpu.memory_space<vmem>>, vector<8x1xf32>
    %311 = vector.broadcast %310 : vector<8x1xf32> to vector<8x64xf32>
    %312 = arith.addf %309, %311 : vector<8x64xf32>
    %cst_157 = arith.constant 0.000000e+00 : f32
    %313 = vector.broadcast %cst_157 : f32 to vector<8x64xf32>
    %314 = arith.subf %313, %312 : vector<8x64xf32>
    %315 = math.exp %314 : vector<8x64xf32>
    %cst_158 = arith.constant 1.000000e+00 : f32
    %316 = vector.broadcast %cst_158 : f32 to vector<8x64xf32>
    %317 = arith.addf %316, %315 : vector<8x64xf32>
    %318 = tpu.reciprocal %317 {approx = true} : vector<8x64xf32> -> vector<8x64xf32>
    %319 = arith.mulf %312, %318 : vector<8x64xf32>
    %320 = vector.extract_strided_slice %17 {offsets = [56, 0], sizes = [8, 64], strides = [1, 1]} : vector<64x64xf32> to vector<8x64xf32>
    %321 = vector.extract_strided_slice %5 {offsets = [56, 0], sizes = [8, 64], strides = [1, 1]} : vector<64x64xf32> to vector<8x64xf32>
    %c0_159 = arith.constant 0 : index
    %c0_160 = arith.constant 0 : index
    %c0_161 = arith.constant 0 : index
    %322 = vector.load %arg3[%c0_159, %c0_160, %c0_161] : memref<9x1x64xf32, #tpu.memory_space<vmem>>, vector<1x1x64xf32>
    %323 = vector.shape_cast %322 : vector<1x1x64xf32> to vector<1x64xf32>
    %324 = vector.broadcast %323 : vector<1x64xf32> to vector<8x64xf32>
    %325 = arith.addf %321, %324 : vector<8x64xf32>
    %326 = arith.maximumf %320, %325 : vector<8x64xf32>
    %327 = vector.extract_strided_slice %8 {offsets = [56, 0], sizes = [8, 64], strides = [1, 1]} : vector<64x64xf32> to vector<8x64xf32>
    %c1_162 = arith.constant 1 : index
    %c0_163 = arith.constant 0 : index
    %c0_164 = arith.constant 0 : index
    %328 = vector.load %arg3[%c1_162, %c0_163, %c0_164] : memref<9x1x64xf32, #tpu.memory_space<vmem>>, vector<1x1x64xf32>
    %329 = vector.shape_cast %328 : vector<1x1x64xf32> to vector<1x64xf32>
    %330 = vector.broadcast %329 : vector<1x64xf32> to vector<8x64xf32>
    %331 = arith.addf %327, %330 : vector<8x64xf32>
    %332 = arith.maximumf %326, %331 : vector<8x64xf32>
    %333 = vector.extract_strided_slice %11 {offsets = [56, 0], sizes = [8, 64], strides = [1, 1]} : vector<64x64xf32> to vector<8x64xf32>
    %c2_165 = arith.constant 2 : index
    %c0_166 = arith.constant 0 : index
    %c0_167 = arith.constant 0 : index
    %334 = vector.load %arg3[%c2_165, %c0_166, %c0_167] : memref<9x1x64xf32, #tpu.memory_space<vmem>>, vector<1x1x64xf32>
    %335 = vector.shape_cast %334 : vector<1x1x64xf32> to vector<1x64xf32>
    %336 = vector.broadcast %335 : vector<1x64xf32> to vector<8x64xf32>
    %337 = arith.addf %333, %336 : vector<8x64xf32>
    %338 = arith.maximumf %332, %337 : vector<8x64xf32>
    %339 = vector.extract_strided_slice %14 {offsets = [56, 0], sizes = [8, 64], strides = [1, 1]} : vector<64x64xf32> to vector<8x64xf32>
    %c3_168 = arith.constant 3 : index
    %c0_169 = arith.constant 0 : index
    %c0_170 = arith.constant 0 : index
    %340 = vector.load %arg3[%c3_168, %c0_169, %c0_170] : memref<9x1x64xf32, #tpu.memory_space<vmem>>, vector<1x1x64xf32>
    %341 = vector.shape_cast %340 : vector<1x1x64xf32> to vector<1x64xf32>
    %342 = vector.broadcast %341 : vector<1x64xf32> to vector<8x64xf32>
    %343 = arith.addf %339, %342 : vector<8x64xf32>
    %344 = arith.maximumf %338, %343 : vector<8x64xf32>
    %345 = vector.extract_strided_slice %20 {offsets = [56, 0], sizes = [8, 64], strides = [1, 1]} : vector<64x64xf32> to vector<8x64xf32>
    %c5_171 = arith.constant 5 : index
    %c0_172 = arith.constant 0 : index
    %c0_173 = arith.constant 0 : index
    %346 = vector.load %arg3[%c5_171, %c0_172, %c0_173] : memref<9x1x64xf32, #tpu.memory_space<vmem>>, vector<1x1x64xf32>
    %347 = vector.shape_cast %346 : vector<1x1x64xf32> to vector<1x64xf32>
    %348 = vector.broadcast %347 : vector<1x64xf32> to vector<8x64xf32>
    %349 = arith.addf %345, %348 : vector<8x64xf32>
    %350 = arith.maximumf %344, %349 : vector<8x64xf32>
    %351 = vector.extract_strided_slice %23 {offsets = [56, 0], sizes = [8, 64], strides = [1, 1]} : vector<64x64xf32> to vector<8x64xf32>
    %c6_174 = arith.constant 6 : index
    %c0_175 = arith.constant 0 : index
    %c0_176 = arith.constant 0 : index
    %352 = vector.load %arg3[%c6_174, %c0_175, %c0_176] : memref<9x1x64xf32, #tpu.memory_space<vmem>>, vector<1x1x64xf32>
    %353 = vector.shape_cast %352 : vector<1x1x64xf32> to vector<1x64xf32>
    %354 = vector.broadcast %353 : vector<1x64xf32> to vector<8x64xf32>
    %355 = arith.addf %351, %354 : vector<8x64xf32>
    %356 = arith.maximumf %350, %355 : vector<8x64xf32>
    %357 = vector.extract_strided_slice %26 {offsets = [56, 0], sizes = [8, 64], strides = [1, 1]} : vector<64x64xf32> to vector<8x64xf32>
    %c7_177 = arith.constant 7 : index
    %c0_178 = arith.constant 0 : index
    %c0_179 = arith.constant 0 : index
    %358 = vector.load %arg3[%c7_177, %c0_178, %c0_179] : memref<9x1x64xf32, #tpu.memory_space<vmem>>, vector<1x1x64xf32>
    %359 = vector.shape_cast %358 : vector<1x1x64xf32> to vector<1x64xf32>
    %360 = vector.broadcast %359 : vector<1x64xf32> to vector<8x64xf32>
    %361 = arith.addf %357, %360 : vector<8x64xf32>
    %362 = arith.maximumf %356, %361 : vector<8x64xf32>
    %363 = vector.extract_strided_slice %29 {offsets = [56, 0], sizes = [8, 64], strides = [1, 1]} : vector<64x64xf32> to vector<8x64xf32>
    %c8_180 = arith.constant 8 : index
    %c0_181 = arith.constant 0 : index
    %c0_182 = arith.constant 0 : index
    %364 = vector.load %arg3[%c8_180, %c0_181, %c0_182] : memref<9x1x64xf32, #tpu.memory_space<vmem>>, vector<1x1x64xf32>
    %365 = vector.shape_cast %364 : vector<1x1x64xf32> to vector<1x64xf32>
    %366 = vector.broadcast %365 : vector<1x64xf32> to vector<8x64xf32>
    %367 = arith.addf %363, %366 : vector<8x64xf32>
    %368 = arith.maximumf %362, %367 : vector<8x64xf32>
    %c0_183 = arith.constant 0 : index
    %c0_184 = arith.constant 0 : index
    %369 = vector.load %arg6[%c0_183, %c0_184] : memref<8x8xbf16, #tpu.memory_space<vmem>>, vector<8x8xbf16>
    %370 = arith.truncf %368 : vector<8x64xf32> to vector<8x64xbf16>
    %cst_185 = arith.constant dense<0.000000e+00> : vector<8x64xf32>
    %371 = tpu.matmul %369, %370, %cst_185 {dimension_numbers = #tpu.dot_dimension_numbers<[1], [0], [0], [1], [0, 0, 1, 1], [], []>} : vector<8x8xbf16>, vector<8x64xbf16>, vector<8x64xf32> -> vector<8x64xf32>
    %c0_186 = arith.constant 0 : index
    %c0_187 = arith.constant 0 : index
    %372 = vector.load %arg7[%c0_186, %c0_187] : memref<8x1xf32, #tpu.memory_space<vmem>>, vector<8x1xf32>
    %373 = vector.broadcast %372 : vector<8x1xf32> to vector<8x64xf32>
    %374 = arith.addf %371, %373 : vector<8x64xf32>
    %cst_188 = arith.constant 0.000000e+00 : f32
    %375 = vector.broadcast %cst_188 : f32 to vector<8x64xf32>
    %376 = arith.subf %375, %374 : vector<8x64xf32>
    %377 = math.exp %376 : vector<8x64xf32>
    %cst_189 = arith.constant 1.000000e+00 : f32
    %378 = vector.broadcast %cst_189 : f32 to vector<8x64xf32>
    %379 = arith.addf %378, %377 : vector<8x64xf32>
    %380 = tpu.reciprocal %379 {approx = true} : vector<8x64xf32> -> vector<8x64xf32>
    %381 = arith.mulf %374, %380 : vector<8x64xf32>
    %382 = tpu.concatenate %319, %381 in 0 : vector<8x64xf32>, vector<8x64xf32> -> vector<16x64xf32>
    %c3_190 = arith.constant 3 : index
    %c0_191 = arith.constant 0 : index
    %c0_192 = arith.constant 0 : index
    %383 = vector.load %arg8[%c3_190, %c0_191, %c0_192] : memref<4x16x64xf32, #tpu.memory_space<vmem>>, vector<1x16x64xf32>
    %384 = vector.shape_cast %383 : vector<1x16x64xf32> to vector<16x64xf32>
    %385 = vector.shape_cast %382 : vector<16x64xf32> to vector<1x16x64xf32>
    tpu.vector_store %arg8[%c3_190, %c0_191, %c0_192], %385 {strides = array<i32>} : memref<4x16x64xf32, #tpu.memory_space<vmem>>, vector<1x16x64xf32>,
    return
  }
  func.func @transform_0(%arg0: i32) -> (i32, i32, i32) {
    %c0_i32 = arith.constant 0 : i32
    %c0_i32_0 = arith.constant 0 : i32
    %c0_i32_1 = arith.constant 0 : i32
    return %arg0, %c0_i32, %c0_i32_0 : i32, i32, i32
  }
  func.func @transform_1(%arg0: i32) -> (i32, i32, i32) {
    %c0_i32 = arith.constant 0 : i32
    %c0_i32_0 = arith.constant 0 : i32
    %c0_i32_1 = arith.constant 0 : i32
    %c0_i32_2 = arith.constant 0 : i32
    return %c0_i32, %c0_i32_0, %c0_i32_1 : i32, i32, i32
  }
  func.func @transform_2(%arg0: i32) -> (i32, i32, i32) {
    %c0_i32 = arith.constant 0 : i32
    %c0_i32_0 = arith.constant 0 : i32
    %c0_i32_1 = arith.constant 0 : i32
    %c0_i32_2 = arith.constant 0 : i32
    return %c0_i32, %c0_i32_0, %c0_i32_1 : i32, i32, i32
  }
  func.func @transform_3(%arg0: i32) -> (i32, i32) {
    %c0_i32 = arith.constant 0 : i32
    %c0_i32_0 = arith.constant 0 : i32
    %c0_i32_1 = arith.constant 0 : i32
    return %c0_i32, %c0_i32_0 : i32, i32
  }
  func.func @transform_4(%arg0: i32) -> (i32, i32) {
    %c0_i32 = arith.constant 0 : i32
    %c0_i32_0 = arith.constant 0 : i32
    %c0_i32_1 = arith.constant 0 : i32
    return %c0_i32, %c0_i32_0 : i32, i32
  }
  func.func @transform_5(%arg0: i32) -> (i32, i32) {
    %c0_i32 = arith.constant 0 : i32
    %c0_i32_0 = arith.constant 0 : i32
    %c0_i32_1 = arith.constant 0 : i32
    return %c0_i32, %c0_i32_0 : i32, i32
  }
  func.func @transform_6(%arg0: i32) -> (i32, i32) {
    %c0_i32 = arith.constant 0 : i32
    %c0_i32_0 = arith.constant 0 : i32
    %c0_i32_1 = arith.constant 0 : i32
    return %c0_i32, %c0_i32_0 : i32, i32
  }
  func.func @transform_7(%arg0: i32) -> (i32, i32, i32) {
    %c0_i32 = arith.constant 0 : i32
    %c0_i32_0 = arith.constant 0 : i32
    %c0_i32_1 = arith.constant 0 : i32
    return %arg0, %c0_i32, %c0_i32_0 : i32, i32, i32
  }
}

</mosaic_0001>

<bundles_post_ra>
// kernel: tpu_custom_call.1
= control target key start
LH: loop header
LB: loop body
LE: loop exit
PB: predicated region body
PF: predicated region fallthrough
CT: control target
= control target key end

     0   :  { %12 = vsyncpa [#allocation3], 0  ;;  %s5300_s0 = inlined_call_operand.vmem [shape: f32[8,16,256], index: 0, kind: input, shape index: {}]   ;;  %s5301_s1 = inlined_call_operand.vmem [shape: bf16[9,256,64], index: 1, kind: input, shape index: {}]   ;;  %s5302_s2 = inlined_call_operand.vmem [shape: f32[9,1,64], index: 2, kind: input, shape index: {}]   ;;  %s5303_s3 = inlined_call_operand.vmem [shape: bf16[8,72], index: 3, kind: input, shape index: {}]   ;;  %s5304_s4 = inlined_call_operand.vmem [shape: f32[8,1], index: 4, kind: input, shape index: {}]   ;;  %s5305_s5 = inlined_call_operand.vmem [shape: bf16[8,8], index: 5, kind: input, shape index: {}]   ;;  %s5306_s6 = inlined_call_operand.vmem [shape: f32[8,1], index: 6, kind: input, shape index: {}]   ;;  %s5307_s7 = inlined_call_operand.hbm [shape: f32[8,16,64], index: 7, kind: output, shape index: {}]  }
   0x1   :  { %14 = vsyncpa [#allocation3 + $0x1], 0  ;;  %s4229_s24 = smov 0   ;;  %s4231_s25 = smov 0  }
   0x2   :  { %s4233_s26 = smov 0   ;;  %s4235_s27 = smov 0  }
   0x3 LB: > { %s4250_s28 = sadd.s32 4294967295, %s4181_s27   ;;  %s2936_s29 = sadd.s32 4294967294, %s4181_s27   ;;  %s4181_s27 = sphi %s4235_s27, %s5382_s27   ;;  %s4177_s26 = sphi %s4233_s26, %s5381_s26   ;;  %s4173_s25 = sphi %s4231_s25, %s5380_s25   ;;  %s4169_s24 = sphi %s4229_s24, %s5379_s24  }
   0x4   : > { %s4254_s30 = sadd.s32 1, %s4181_s27   ;;  %s179_s8 = sadd.s32 1, %s4177_s26 }
   0x5   : > { %s176_s9 = ssub.s32 %s4181_s27, %s4254_s30  ;;  %p189_p0 = scmp.ne.s32.totalorder %s4177_s26, %s4173_s25 }
   0x6   : > { %p177_p1 = scmp.eq.s32.totalorder %s176_s9, 0  ;;  %p190_p2 = scmp.eq.s32.totalorder %s4250_s28, 1 }
   0x7   : > { %p195_p3 = scmp.ne.s32.totalorder %s4173_s25, %s4169_s24  ;;  %p196_p4 = scmp.eq.s32.totalorder %s2936_s29, 1 }
   0x8   : > { %s4265_s10 = scalar_select %p177_p1, %s4177_s26, %s179_s8  }
   0x9   : > { %p4267_p5 = por %p190_p2, %p189_p0  ;;  %p4271_p6 = por %p196_p4, %p195_p3 }
   0xa   : > { %p2939_p7 = scmp.ge.s32.totalorder %s4181_s27, 1  ;;  %p242_p8 = scmp.lt.s32.totalorder %s4181_s27, 3 }
   0xc   : > { %p243_p9 = pnand %p2939_p7, %p242_p8 }
   0xe   : > { %246 = sbr.rel (%p243_p9) target bundleno = 701 (0x2bd), region = 48 }
  0x13   : > { %v3945_v0 = vld [vmem:[%s5301_s1 + $0x78] sm:$0xff]   ;;  %v3949_v4 = vld [vmem:[%s5301_s1 + $0x70] sm:$0xff]   ;;  %v3953_v8 = vld [vmem:[%s5301_s1 + $0x68] sm:$0xff]   ;;  %s2941_s17 = sshll.u32 %s4250_s28, 2  ;;  %vm4184_vm0 = vmmov 0   ;;  %vm2069_vm1 = vcmask 1043456  }
  0x14   : > { %v3946_v1 = vld [vmem:[%s5301_s1 + $0xf8] sm:$0xff]   ;;  %3427 = vmatprep.subr.bf16.mxu0 %v3945_v0  ;;  %v3950_v5 = vld [vmem:[%s5301_s1 + $0xf0] sm:$0xff]   ;;  %v3954_v9 = vld [vmem:[%s5301_s1 + $0xe8] sm:$0xff]   ;;  %p276_p10 = scmp.lt.s32.totalorder %s2941_s17, 7  ;;  %vm2065_vm2 = vcmask 588800   ;;  %vm2206_vm3 = vcmask 64512  }
  0x15   : > { %v3947_v2 = vld [vmem:[%s5301_s1 + $0x38] sm:$0xff]   ;;  %3467 = vmatprep.subr.bf16.mxu1 %v3946_v1  ;;  %v3951_v6 = vld [vmem:[%s5301_s1 + $0x30] sm:$0xff]   ;;  %v3955_v10 = vld [vmem:[%s5301_s1 + $0x28] sm:$0xff]   ;;  %s272_s8 = sand.u32 1, %s4173_s25   ;;  %vm2259_vm4 = vcmask 523264  }
  0x16   : > { %v3948_v3 = vld [vmem:[%s5301_s1 + $0xb8] sm:$0xff]   ;;  %3428 = vmatpush3.bf16.msra.mxu0 %v3947_v2  ;;  %v3952_v7 = vld [vmem:[%s5301_s1 + $0xb0] sm:$0xff]   ;;  %v3956_v11 = vld [vmem:[%s5301_s1 + $0xa8] sm:$0xff]   ;;  %s5384_s17 = smov (!%p276_p10, %s2941_s17), 7  ;;  %s2940_s9 = sshll.u32 %s272_s8, 6 }
  0x17   : > { %3468 = vmatpush3.bf16.msra.mxu1 %v3948_v3  ;;  %3429 = vmatprep.subr.bf16.mxu0 %v3949_v4  ;;  %v3957_v12 = vld [vmem:[%s5301_s1 + $0x60] sm:$0xff]   ;;  %v3961_v16 = vld [vmem:[%s5301_s1 + $0x58] sm:$0xff]   ;;  %v3965_v20 = vld [vmem:[%s5301_s1 + $0x50] sm:$0xff]   ;;  %s3424_s13 = sshll.u32 %s5384_s17, 5  ;;  %s5260_s19 = scalar_lea.sflag [#allocation3], %s272_s8 }
  0x18   : > { %3469 = vmatprep.subr.bf16.mxu1 %v3950_v5  ;;  %v3958_v13 = vld [vmem:[%s5301_s1 + $0xe0] sm:$0xff]   ;;  %v3962_v17 = vld [vmem:[%s5301_s1 + $0xd8] sm:$0xff]   ;;  %v3966_v21 = vld [vmem:[%s5301_s1 + $0xd0] sm:$0xff]   ;;  %s4371_s23 = scalar_lea.vmem %s5300_s0, %s3424_s13  ;;  %s5231_s13 = scalar_lea.vmem [#allocation2], %s2940_s9 }
  0x19   : > { %v3959_v14 = vld [vmem:[%s5301_s1 + $0x20] sm:$0xff]   ;;  %v3963_v18 = vld [vmem:[%s5301_s1 + $0x18] sm:$0xff]   ;;  %v3967_v22 = vld [vmem:[%s5301_s1 + $0x10] sm:$0xff]   ;;  %s2874_s14 = sshll.u32 %s5231_s13, 4  ;;  %s5254_s14 = int_to_ptr.vmem [resolvable:$true] %s2874_s14 }
  0x1a   : > { %3430 = vmatpush3.bf16.msra.mxu0 %v3951_v6  ;;  %v3960_v15 = vld [vmem:[%s5301_s1 + $0xa0] sm:$0xff]   ;;  %v3964_v19 = vld [vmem:[%s5301_s1 + $0x98] sm:$0xff]   ;;  %v3968_v23 = vld [vmem:[%s5301_s1 + $0x90] sm:$0xff]   ;;  %s4121_s20 = scalar_lea.vmem %s5254_s14, 1024 }
  0x1b   : > { %3470 = vmatpush3.bf16.msra.mxu1 %v3952_v7  ;;  %3431 = vmatprep.subr.bf16.mxu0 %v3953_v8  ;;  %v3969_v24 = vld [vmem:[%s5301_s1 + $0x48] sm:$0xff]   ;;  %v3973_v28 = vld [vmem:[%s5301_s1 + $0x40] sm:$0xff]   ;;  %v287_v33 = vld [vmem:[%s4371_s23 + $0x18] sm:$0xff]  ;;  %p4122_p11 = scmp.ne.s32.totalorder %s5254_s14, %s4121_s20 }
  0x1c   : > { %3471 = vmatprep.subr.bf16.mxu1 %v3954_v9  ;;  %v3970_v25 = vld [vmem:[%s5301_s1 + $0xc8] sm:$0xff]   ;;  %v3974_v29 = vld [vmem:[%s5301_s1 + $0xc0] sm:$0xff]   ;;  %v286_v36 = vld [vmem:[%s4371_s23 + $0x10] sm:$0xff] }
  0x1d   : > { %v3971_v26 = vld [vmem:[%s5301_s1 + $0x8] sm:$0xff]   ;;  %v3975_v30 = vld [vmem:[%s5301_s1] sm:$0xff]   ;;  %v3977_v38 = vld [vmem:[%s5301_s1 + $0x178] sm:$0xff]   ;;  %p4123_p12 = pnand %p4122_p11, %p4267_p5 }
  0x1e   : > { %3432 = vmatpush3.bf16.msra.mxu0 %v3955_v10  ;;  %v3972_v27 = vld [vmem:[%s5301_s1 + $0x88] sm:$0xff]   ;;  %v3976_v31 = vld [vmem:[%s5301_s1 + $0x80] sm:$0xff]   ;;  %v3978_v39 = vld [vmem:[%s5301_s1 + $0x1f8] sm:$0xff]  }
  0x1f   : > { %3472 = vmatpush3.bf16.msra.mxu1 %v3956_v11  ;;  %3433 = vmatprep.subr.bf16.mxu0 %v3957_v12  ;;  %v285_v32 = vld [vmem:[%s4371_s23 + $0x8] sm:$0xff]  ;;  %v284_v34 = vld [vmem:[%s4371_s23] sm:$0xff]  ;;  %v3979_v40 = vld [vmem:[%s5301_s1 + $0x138] sm:$0xff]   ;;  %p4124_p13 = pneg %p4123_p12 }
  0x20   : > { %3473 = vmatprep.subr.bf16.mxu1 %v3958_v13  ;;  %v4382_v35 = vpack.c.bf16 %v287_v33, %v285_v32  ;;  %v4385_v37 = vpack.c.bf16 %v286_v36, %v284_v34  ;;  %v3980_v41 = vld [vmem:[%s5301_s1 + $0x1b8] sm:$0xff]   ;;  %v3981_v42 = vld [vmem:[%s5301_s1 + $0x170] sm:$0xff]   ;;  %v289_v46 = vld [vmem:[%s4371_s23 + $0x28] sm:$0xff] }
  0x21   : > { %v3982_v43 = vld [vmem:[%s5301_s1 + $0x1f0] sm:$0xff]   ;;  %v291_v47 = vld [vmem:[%s4371_s23 + $0x38] sm:$0xff]  ;;  %v288_v49 = vld [vmem:[%s4371_s23 + $0x20] sm:$0xff] }
  0x22   : > { %3434 = vmatpush3.bf16.msra.mxu0 %v3959_v14  ;;  %468 = vmatprep.mubr.bf16.mxu0 %v4382_v35  ;;  %v3983_v44 = vld [vmem:[%s5301_s1 + $0x130] sm:$0xff]   ;;  %v4417_v48 = vpack.c.bf16 %v291_v47, %v289_v46  ;;  %v3985_v52 = vld [vmem:[%s5301_s1 + $0x168] sm:$0xff]   ;;  %v3989_v56 = vld [vmem:[%s5301_s1 + $0x160] sm:$0xff]  }
  0x23   : > { %3474 = vmatpush3.bf16.msra.mxu1 %v3960_v15  ;;  %3435 = vmatprep.subr.bf16.mxu0 %v3961_v16  ;;  %v3984_v45 = vld [vmem:[%s5301_s1 + $0x1b0] sm:$0xff]   ;;  %v3986_v53 = vld [vmem:[%s5301_s1 + $0x1e8] sm:$0xff]   ;;  %v3990_v57 = vld [vmem:[%s5301_s1 + $0x1e0] sm:$0xff]  }
  0x24   : > { %3475 = vmatprep.subr.bf16.mxu1 %v3962_v17  ;;  %662 = vmatprep.mubr.bf16.mxu1 %v4382_v35  ;;  %v290_v50 = vld [vmem:[%s4371_s23 + $0x30] sm:$0xff]  ;;  %v3987_v54 = vld [vmem:[%s5301_s1 + $0x128] sm:$0xff]   ;;  %v3991_v58 = vld [vmem:[%s5301_s1 + $0x120] sm:$0xff]  }
  0x25   : > { %v4421_v51 = vpack.c.bf16 %v290_v50, %v288_v49  ;;  %v3988_v55 = vld [vmem:[%s5301_s1 + $0x1a8] sm:$0xff]   ;;  %v3992_v59 = vld [vmem:[%s5301_s1 + $0x1a0] sm:$0xff]   ;;  %v295_v61 = vld [vmem:[%s4371_s23 + $0x58] sm:$0xff] }
  0x26   : > { %3436 = vmatpush3.bf16.msra.mxu0 %v3963_v18  ;;  %v293_v60 = vld [vmem:[%s4371_s23 + $0x48] sm:$0xff]  ;;  %v292_v62 = vld [vmem:[%s4371_s23 + $0x40] sm:$0xff]  ;;  %v294_v63 = vld [vmem:[%s4371_s23 + $0x50] sm:$0xff] }
  0x27   : > { %3476 = vmatpush3.bf16.msra.mxu1 %v3964_v19  ;;  %3437 = vmatprep.subr.bf16.mxu0 %v3965_v20  ;;  %v4455_v0 = vpack.c.bf16 %v295_v61, %v293_v60  ;;  %v4457_v1 = vpack.c.bf16 %v294_v63, %v292_v62  ;;  %v3993_v2 = vld [vmem:[%s5301_s1 + $0x158] sm:$0xff]   ;;  %v3997_v6 = vld [vmem:[%s5301_s1 + $0x150] sm:$0xff]   ;;  %v297_v10 = vld [vmem:[%s4371_s23 + $0x68] sm:$0xff] }
  0x28   : > { %3477 = vmatprep.subr.bf16.mxu1 %v3966_v21  ;;  %v3994_v3 = vld [vmem:[%s5301_s1 + $0x1d8] sm:$0xff]   ;;  %v3998_v7 = vld [vmem:[%s5301_s1 + $0x1d0] sm:$0xff]   ;;  %v296_v12 = vld [vmem:[%s4371_s23 + $0x60] sm:$0xff] }
  0x29   : > { %v3995_v4 = vld [vmem:[%s5301_s1 + $0x118] sm:$0xff]   ;;  %v3999_v8 = vld [vmem:[%s5301_s1 + $0x110] sm:$0xff]   ;;  %v4001_v16 = vld [vmem:[%s5301_s1 + $0x148] sm:$0xff]  }
  0x2a   : > { %3438 = vmatpush3.bf16.msra.mxu0 %v3967_v22  ;;  %v3996_v5 = vld [vmem:[%s5301_s1 + $0x198] sm:$0xff]   ;;  %v4000_v9 = vld [vmem:[%s5301_s1 + $0x190] sm:$0xff]   ;;  %v4002_v17 = vld [vmem:[%s5301_s1 + $0x1c8] sm:$0xff]  }
  0x2b   : > { %3478 = vmatpush3.bf16.msra.mxu1 %v3968_v23  ;;  %3439 = vmatprep.subr.bf16.mxu0 %v3969_v24  ;;  %v299_v11 = vld [vmem:[%s4371_s23 + $0x78] sm:$0xff]  ;;  %v298_v14 = vld [vmem:[%s4371_s23 + $0x70] sm:$0xff]  ;;  %v4003_v18 = vld [vmem:[%s5301_s1 + $0x108] sm:$0xff]   ;;  %s3426_s23 = sshll.u32 %s4250_s28, 10  ;;  %s4186_s28 = smov [#allocation2]  }
  0x2c   : > { %3479 = vmatprep.subr.bf16.mxu1 %v3970_v25  ;;  %v4490_v13 = vpack.c.bf16 %v299_v11, %v297_v10  ;;  %v4493_v15 = vpack.c.bf16 %v298_v14, %v296_v12  ;;  %v4004_v19 = vld [vmem:[%s5301_s1 + $0x188] sm:$0xff]   ;;  %v4005_v20 = vld [vmem:[%s5301_s1 + $0x140] sm:$0xff]   ;;  %v4009_v24 = vld [vmem:[%s5301_s1 + $0x278] sm:$0xff]   ;;  %s5252_s18 = scalar_lea.hbm %s5307_s7, %s3426_s23  ;;  %s4125_s21 = sshll.u32 %s4186_s28, 4  ;;  %s4126_s21 = int_to_ptr.vmem [resolvable:$false] %s4125_s21 }
  0x2d   : > { %v4006_v21 = vld [vmem:[%s5301_s1 + $0x1c0] sm:$0xff]   ;;  %v4010_v25 = vld [vmem:[%s5301_s1 + $0x2f8] sm:$0xff]   ;;  %v4017_v32 = vld [vmem:[%s5301_s1 + $0x268] sm:$0xff]   ;;  %s4127_s22 = scalar_lea.vmem %s4126_s21, 2048  ;;  %p4128_p0 = scmp.lt.s32.totalorder %s5254_s14, %s4126_s21 }
  0x2e   : > { %3440 = vmatpush3.bf16.msra.mxu0 %v3971_v26  ;;  %v4007_v22 = vld [vmem:[%s5301_s1 + $0x100] sm:$0xff]   ;;  %v4011_v26 = vld [vmem:[%s5301_s1 + $0x238] sm:$0xff]   ;;  %v4018_v33 = vld [vmem:[%s5301_s1 + $0x2e8] sm:$0xff]   ;;  %p4129_p1 = scmp.lt.s32.totalorder %s4127_s22, %s4121_s20 }
  0x2f   : > { %3480 = vmatpush3.bf16.msra.mxu1 %v3972_v27  ;;  %3441 = vmatprep.subr.bf16.mxu0 %v3973_v28  ;;  %v4008_v23 = vld [vmem:[%s5301_s1 + $0x180] sm:$0xff]   ;;  %v4012_v27 = vld [vmem:[%s5301_s1 + $0x2b8] sm:$0xff]   ;;  %v4013_v28 = vld [vmem:[%s5301_s1 + $0x270] sm:$0xff]  }
  0x30   : > { %3481 = vmatprep.subr.bf16.mxu1 %v3974_v29  ;;  %v4014_v29 = vld [vmem:[%s5301_s1 + $0x2f0] sm:$0xff]   ;;  %v4019_v34 = vld [vmem:[%s5301_s1 + $0x228] sm:$0xff]   ;;  %v4041_v60 = vld [vmem:[%s5301_s1 + $0x378] sm:$0xff]   ;;  %p4130_p2 = por %p4129_p1, %p4128_p0 }
  0x31   : > { %v4020_v36 = vld [vmem:[%s5301_s1 + $0x2a8] sm:$0xff]   ;;  %v4029_v46 = vld [vmem:[%s5301_s1 + $0x250] sm:$0xff]   ;;  %v4042_v61 = vld [vmem:[%s5301_s1 + $0x3f8] sm:$0xff]  }
  0x32   : > { %3442 = vmatpush3.bf16.msra.mxu0 %v3975_v30  ;;  %v4015_v30 = vld [vmem:[%s5301_s1 + $0x230] sm:$0xff]   ;;  %v4043_v62 = vld [vmem:[%s5301_s1 + $0x338] sm:$0xff]   ;;  %v4053_v10 = vld [vmem:[%s5301_s1 + $0x360] sm:$0xff]   ;;  %p4131_p3 = pnand %p4130_p2, %p4124_p13 }
  0x33   : > { %3482 = vmatpush3.bf16.msra.mxu1 %v3976_v31  ;;  %3507 = vmatprep.subr.bf16.mxu0 %v3977_v38  ;;  %v4016_v31 = vld [vmem:[%s5301_s1 + $0x2b0] sm:$0xff]   ;;  %v4021_v38 = vld [vmem:[%s5301_s1 + $0x260] sm:$0xff]   ;;  %v4044_v63 = vld [vmem:[%s5301_s1 + $0x3b8] sm:$0xff]  }
  0x34   : > { %3547 = vmatprep.subr.bf16.mxu1 %v3978_v39  ;;  %v4022_v39 = vld [vmem:[%s5301_s1 + $0x2e0] sm:$0xff]   ;;  %v4030_v47 = vld [vmem:[%s5301_s1 + $0x2d0] sm:$0xff]  }
  0x35   : > { %469 = vmatmul.mubr.bf16.vlgmr.msra.gmra.mxu0 %v4385_v37  ;;  %v4031_v49 = vld [vmem:[%s5301_s1 + $0x210] sm:$0xff]   ;;  %v4054_v11 = vld [vmem:[%s5301_s1 + $0x3e0] sm:$0xff]  }
  0x36   : > { %663 = vmatmul.mubr.bf16.vlgmr.msra.gmra.mxu1 %v4385_v37  ;;  %3508 = vmatpush3.bf16.msra.mxu0 %v3979_v40  ;;  %v4023_v40 = vld [vmem:[%s5301_s1 + $0x220] sm:$0xff]   ;;  %v4032_v50 = vld [vmem:[%s5301_s1 + $0x290] sm:$0xff]  }
  0x37   : > { %3548 = vmatpush3.bf16.msra.mxu1 %v3980_v41  ;;  %3509 = vmatprep.subr.bf16.mxu0 %v3981_v42  ;;  %v4024_v41 = vld [vmem:[%s5301_s1 + $0x2a0] sm:$0xff]   ;;  %v4025_v42 = vld [vmem:[%s5301_s1 + $0x258] sm:$0xff]  }
  0x38   : > { %3549 = vmatprep.subr.bf16.mxu1 %v3982_v43  ;;  %476 = vmatprep.mubr.bf16.mxu0 %v4417_v48  ;;  %v4026_v43 = vld [vmem:[%s5301_s1 + $0x2d8] sm:$0xff]   ;;  %v4055_v12 = vld [vmem:[%s5301_s1 + $0x320] sm:$0xff]  }
  0x39   : > { %670 = vmatprep.mubr.bf16.mxu1 %v4417_v48  ;;  %v4056_v14 = vld [vmem:[%s5301_s1 + $0x3a0] sm:$0xff]  }
  0x3a   : > { %3510 = vmatpush3.bf16.msra.mxu0 %v3983_v44  ;;  %v4027_v44 = vld [vmem:[%s5301_s1 + $0x218] sm:$0xff]  }
  0x3b   : > { %3550 = vmatpush3.bf16.msra.mxu1 %v3984_v45  ;;  %3511 = vmatprep.subr.bf16.mxu0 %v3985_v52  ;;  %v4028_v45 = vld [vmem:[%s5301_s1 + $0x298] sm:$0xff]   ;;  %v4033_v52 = vld [vmem:[%s5301_s1 + $0x248] sm:$0xff]  }
  0x3c   : > { %3551 = vmatprep.subr.bf16.mxu1 %v3986_v53  ;;  %v4034_v53 = vld [vmem:[%s5301_s1 + $0x2c8] sm:$0xff]  }
  0x3d   : > { %477 = vmatmul.mubr.bf16.gmra.mxu0 %v4421_v51 }
  0x3e   : > { %671 = vmatmul.mubr.bf16.gmra.mxu1 %v4421_v51  ;;  %3512 = vmatpush3.bf16.msra.mxu0 %v3987_v54  ;;  %v4035_v54 = vld [vmem:[%s5301_s1 + $0x208] sm:$0xff]  }
  0x3f   : > { %3552 = vmatpush3.bf16.msra.mxu1 %v3988_v55  ;;  %3513 = vmatprep.subr.bf16.mxu0 %v3989_v56  ;;  %v4036_v55 = vld [vmem:[%s5301_s1 + $0x288] sm:$0xff]   ;;  %v4037_v56 = vld [vmem:[%s5301_s1 + $0x240] sm:$0xff]  }
  0x40   : > { %3553 = vmatprep.subr.bf16.mxu1 %v3990_v57  ;;  %484 = vmatprep.mubr.bf16.mxu0 %v4455_v0  ;;  %v4038_v57 = vld [vmem:[%s5301_s1 + $0x2c0] sm:$0xff]  }
  0x41   : > { %678 = vmatprep.mubr.bf16.mxu1 %v4455_v0 }
  0x42   : > { %3514 = vmatpush3.bf16.msra.mxu0 %v3991_v58  ;;  %v4039_v58 = vld [vmem:[%s5301_s1 + $0x200] sm:$0xff]  }
  0x43   : > { %3554 = vmatpush3.bf16.msra.mxu1 %v3992_v59  ;;  %3515 = vmatprep.subr.bf16.mxu0 %v3993_v2  ;;  %v4040_v59 = vld [vmem:[%s5301_s1 + $0x280] sm:$0xff]   ;;  %v4045_v2 = vld [vmem:[%s5301_s1 + $0x370] sm:$0xff]  }
  0x44   : > { %3555 = vmatprep.subr.bf16.mxu1 %v3994_v3  ;;  %v4046_v3 = vld [vmem:[%s5301_s1 + $0x3f0] sm:$0xff]  }
  0x45   : > { %485 = vmatmul.mubr.bf16.gmra.mxu0 %v4457_v1 }
  0x46   : > { %679 = vmatmul.mubr.bf16.gmra.mxu1 %v4457_v1  ;;  %3516 = vmatpush3.bf16.msra.mxu0 %v3995_v4  ;;  %v4047_v4 = vld [vmem:[%s5301_s1 + $0x330] sm:$0xff]  }
  0x47   : > { %3556 = vmatpush3.bf16.msra.mxu1 %v3996_v5  ;;  %3517 = vmatprep.subr.bf16.mxu0 %v3997_v6  ;;  %v4048_v5 = vld [vmem:[%s5301_s1 + $0x3b0] sm:$0xff]   ;;  %v4049_v6 = vld [vmem:[%s5301_s1 + $0x368] sm:$0xff]  }
  0x48   : > { %3557 = vmatprep.subr.bf16.mxu1 %v3998_v7  ;;  %492 = vmatprep.mubr.bf16.mxu0 %v4490_v13  ;;  %v4050_v7 = vld [vmem:[%s5301_s1 + $0x3e8] sm:$0xff]  }
  0x49   : > { %686 = vmatprep.mubr.bf16.mxu1 %v4490_v13 }
  0x4a   : > { %3518 = vmatpush3.bf16.msra.mxu0 %v3999_v8  ;;  %v4051_v8 = vld [vmem:[%s5301_s1 + $0x328] sm:$0xff]  }
  0x4b   : > { %3558 = vmatpush3.bf16.msra.mxu1 %v4000_v9  ;;  %3519 = vmatprep.subr.bf16.mxu0 %v4001_v16  ;;  %v4052_v9 = vld [vmem:[%s5301_s1 + $0x3a8] sm:$0xff]   ;;  %v4057_v16 = vld [vmem:[%s5301_s1 + $0x358] sm:$0xff]  }
  0x4c   : > { %3559 = vmatprep.subr.bf16.mxu1 %v4002_v17  ;;  %v4058_v17 = vld [vmem:[%s5301_s1 + $0x3d8] sm:$0xff]  }
  0x4d   : > { %493 = vmatmul.mubr.bf16.gmra.mxu0 %v4493_v15 }
  0x4e   : > { %687 = vmatmul.mubr.bf16.gmra.mxu1 %v4493_v15  ;;  %3520 = vmatpush3.bf16.msra.mxu0 %v4003_v18  ;;  %v4059_v18 = vld [vmem:[%s5301_s1 + $0x318] sm:$0xff]  }
  0x4f   : > { %856 = vmatprep.mubr.bf16.mxu0 %v4382_v35  ;;  %3560 = vmatpush3.bf16.msra.mxu1 %v4004_v19  ;;  %v4060_v19 = vld [vmem:[%s5301_s1 + $0x398] sm:$0xff]  }
  0x50   : > { %1050 = vmatprep.mubr.bf16.mxu1 %v4382_v35  ;;  %3521 = vmatprep.subr.bf16.mxu0 %v4005_v20  ;;  %v4061_v20 = vld [vmem:[%s5301_s1 + $0x350] sm:$0xff]  }
  0x51   : > { %3561 = vmatprep.subr.bf16.mxu1 %v4006_v21  ;;  %v4062_v21 = vld [vmem:[%s5301_s1 + $0x3d0] sm:$0xff]  }
  0x52   : > { %3522 = vmatpush3.bf16.msra.mxu0 %v4007_v22  ;;  %v4063_v22 = vld [vmem:[%s5301_s1 + $0x310] sm:$0xff]  }
  0x53   : > { %3562 = vmatpush3.bf16.msra.mxu1 %v4008_v23  ;;  %3587 = vmatprep.subr.bf16.mxu0 %v4009_v24  ;;  %v4064_v23 = vld [vmem:[%s5301_s1 + $0x390] sm:$0xff]   ;;  %v4065_v24 = vld [vmem:[%s5301_s1 + $0x348] sm:$0xff]  }
  0x54   : > { %3627 = vmatprep.subr.bf16.mxu1 %v4010_v25  ;;  %v4066_v25 = vld [vmem:[%s5301_s1 + $0x3c8] sm:$0xff]  }
  0x55   : > { %857 = vmatmul.mubr.bf16.vlgmr.msra.gmra.mxu0 %v4385_v37 }
  0x56   : > { %1051 = vmatmul.mubr.bf16.vlgmr.msra.gmra.mxu1 %v4385_v37  ;;  %3588 = vmatpush3.bf16.msra.mxu0 %v4011_v26  ;;  %v4067_v26 = vld [vmem:[%s5301_s1 + $0x308] sm:$0xff]  }
  0x57   : > { %3628 = vmatpush3.bf16.msra.mxu1 %v4012_v27  ;;  %864 = vmatprep.mubr.bf16.mxu0 %v4417_v48  ;;  %v4068_v27 = vld [vmem:[%s5301_s1 + $0x388] sm:$0xff]  }
  0x58   : > { %3589 = vmatprep.subr.bf16.mxu0 %v4013_v28  ;;  %1058 = vmatprep.mubr.bf16.mxu1 %v4417_v48  ;;  %v4069_v28 = vld [vmem:[%s5301_s1 + $0x340] sm:$0xff]  }
  0x59   : > { %3629 = vmatprep.subr.bf16.mxu1 %v4014_v29  ;;  %v4070_v29 = vld [vmem:[%s5301_s1 + $0x3c0] sm:$0xff]  }
  0x5a   : > { %3590 = vmatpush3.bf16.msra.mxu0 %v4015_v30  ;;  %v4071_v30 = vld [vmem:[%s5301_s1 + $0x300] sm:$0xff]  }
  0x5b   : > { %3630 = vmatpush3.bf16.msra.mxu1 %v4016_v31  ;;  %3591 = vmatprep.subr.bf16.mxu0 %v4017_v32  ;;  %v4072_v31 = vld [vmem:[%s5301_s1 + $0x380] sm:$0xff]   ;;  %v4073_v32 = vld [vmem:[%s5301_s1 + $0x478] sm:$0xff]  }
  0x5c   : > { %3631 = vmatprep.subr.bf16.mxu1 %v4018_v33  ;;  %v4074_v33 = vld [vmem:[%s5301_s1 + $0x438] sm:$0xff]  }
  0x5d   : > { %865 = vmatmul.mubr.bf16.gmra.mxu0 %v4421_v51 }
  0x5e   : > { %1059 = vmatmul.mubr.bf16.gmra.mxu1 %v4421_v51  ;;  %3592 = vmatpush3.bf16.msra.mxu0 %v4019_v34  ;;  %v4075_v34 = vld [vmem:[%s5301_s1 + $0x470] sm:$0xff]  }
  0x5f   : > { %3632 = vmatpush3.bf16.msra.mxu1 %v4020_v36  ;;  %872 = vmatprep.mubr.bf16.mxu0 %v4455_v0  ;;  %v4076_v36 = vld [vmem:[%s5301_s1 + $0x430] sm:$0xff]  }
  0x60   : > { %3593 = vmatprep.subr.bf16.mxu0 %v4021_v38  ;;  %1066 = vmatprep.mubr.bf16.mxu1 %v4455_v0  ;;  %v4077_v38 = vld [vmem:[%s5301_s1 + $0x468] sm:$0xff]  }
  0x61   : > { %3633 = vmatprep.subr.bf16.mxu1 %v4022_v39  ;;  %v4078_v39 = vld [vmem:[%s5301_s1 + $0x428] sm:$0xff]  }
  0x62   : > { %3594 = vmatpush3.bf16.msra.mxu0 %v4023_v40  ;;  %v4079_v40 = vld [vmem:[%s5301_s1 + $0x460] sm:$0xff]  }
  0x63   : > { %3634 = vmatpush3.bf16.msra.mxu1 %v4024_v41  ;;  %3595 = vmatprep.subr.bf16.mxu0 %v4025_v42  ;;  %v4080_v41 = vld [vmem:[%s5301_s1 + $0x420] sm:$0xff]   ;;  %v4081_v42 = vld [vmem:[%s5301_s1 + $0x458] sm:$0xff]  }
  0x64   : > { %3635 = vmatprep.subr.bf16.mxu1 %v4026_v43  ;;  %v4082_v43 = vld [vmem:[%s5301_s1 + $0x418] sm:$0xff]  }
  0x65   : > { %873 = vmatmul.mubr.bf16.gmra.mxu0 %v4457_v1 }
  0x66   : > { %1067 = vmatmul.mubr.bf16.gmra.mxu1 %v4457_v1  ;;  %3596 = vmatpush3.bf16.msra.mxu0 %v4027_v44  ;;  %v4083_v44 = vld [vmem:[%s5301_s1 + $0x450] sm:$0xff]  }
  0x67   : > { %3636 = vmatpush3.bf16.msra.mxu1 %v4028_v45  ;;  %880 = vmatprep.mubr.bf16.mxu0 %v4490_v13  ;;  %v4084_v45 = vld [vmem:[%s5301_s1 + $0x410] sm:$0xff]  }
  0x68   : > { %3597 = vmatprep.subr.bf16.mxu0 %v4029_v46  ;;  %1074 = vmatprep.mubr.bf16.mxu1 %v4490_v13  ;;  %v4085_v46 = vld [vmem:[%s5301_s1 + $0x448] sm:$0xff]  }
  0x69   : > { %3637 = vmatprep.subr.bf16.mxu1 %v4030_v47  ;;  %v4086_v47 = vld [vmem:[%s5301_s1 + $0x408] sm:$0xff]  }
  0x6a   : > { %3598 = vmatpush3.bf16.msra.mxu0 %v4031_v49  ;;  %v4087_v49 = vld [vmem:[%s5301_s1 + $0x440] sm:$0xff]  }
  0x6b   : > { %3638 = vmatpush3.bf16.msra.mxu1 %v4032_v50  ;;  %3599 = vmatprep.subr.bf16.mxu0 %v4033_v52  ;;  %v4088_v50 = vld [vmem:[%s5301_s1 + $0x400] sm:$0xff]  }
  0x6c   : > { %3639 = vmatprep.subr.bf16.mxu1 %v4034_v53 }
  0x6d   : > { %881 = vmatmul.mubr.bf16.gmra.mxu0 %v4493_v15 }
  0x6e   : > { %1075 = vmatmul.mubr.bf16.gmra.mxu1 %v4493_v15  ;;  %3600 = vmatpush3.bf16.msra.mxu0 %v4035_v54 }
  0x6f   : > { %3640 = vmatpush3.bf16.msra.mxu1 %v4036_v55  ;;  %1244 = vmatprep.mubr.bf16.mxu0 %v4382_v35 }
  0x70   : > { %3601 = vmatprep.subr.bf16.mxu0 %v4037_v56  ;;  %1438 = vmatprep.mubr.bf16.mxu1 %v4382_v35 }
  0x71   : > { %3641 = vmatprep.subr.bf16.mxu1 %v4038_v57 }
  0x72   : > { %3602 = vmatpush3.bf16.msra.mxu0 %v4039_v58 }
  0x73   : > { %3642 = vmatpush3.bf16.msra.mxu1 %v4040_v59  ;;  %3667 = vmatprep.subr.bf16.mxu0 %v4041_v60 }
  0x74   : > { %3707 = vmatprep.subr.bf16.mxu1 %v4042_v61 }
  0x75   : > { %1245 = vmatmul.mubr.bf16.vlgmr.msra.gmra.mxu0 %v4385_v37 }
  0x76   : > { %1439 = vmatmul.mubr.bf16.vlgmr.msra.gmra.mxu1 %v4385_v37  ;;  %3668 = vmatpush3.bf16.msra.mxu0 %v4043_v62 }
  0x77   : > { %3708 = vmatpush3.bf16.msra.mxu1 %v4044_v63  ;;  %1252 = vmatprep.mubr.bf16.mxu0 %v4417_v48 }
  0x78   : > { %3669 = vmatprep.subr.bf16.mxu0 %v4045_v2  ;;  %1446 = vmatprep.mubr.bf16.mxu1 %v4417_v48 }
  0x79   : > { %3709 = vmatprep.subr.bf16.mxu1 %v4046_v3  ;;  %v5308_v3 = vmov 0.0  }
  0x7a   : > { %3670 = vmatpush3.bf16.msra.mxu0 %v4047_v4 }
  0x7b   : > { %3710 = vmatpush3.bf16.msra.mxu1 %v4048_v5  ;;  %3671 = vmatprep.subr.bf16.mxu0 %v4049_v6 }
  0x7c   : > { %3711 = vmatprep.subr.bf16.mxu1 %v4050_v7 }
  0x7d   : > { %1253 = vmatmul.mubr.bf16.gmra.mxu0 %v4421_v51 }
  0x7e   : > { %1447 = vmatmul.mubr.bf16.gmra.mxu1 %v4421_v51  ;;  %3672 = vmatpush3.bf16.msra.mxu0 %v4051_v8 }
  0x7f   : > { %3712 = vmatpush3.bf16.msra.mxu1 %v4052_v9  ;;  %1260 = vmatprep.mubr.bf16.mxu0 %v4455_v0 }
  0x80   : > { %3673 = vmatprep.subr.bf16.mxu0 %v4053_v10  ;;  %1454 = vmatprep.mubr.bf16.mxu1 %v4455_v0 }
  0x81   : > { %3713 = vmatprep.subr.bf16.mxu1 %v4054_v11 }
  0x82   : > { %3674 = vmatpush3.bf16.msra.mxu0 %v4055_v12 }
  0x83   : > { %3714 = vmatpush3.bf16.msra.mxu1 %v4056_v14  ;;  %3675 = vmatprep.subr.bf16.mxu0 %v4057_v16 }
  0x84   : > { %3715 = vmatprep.subr.bf16.mxu1 %v4058_v17 }
  0x85   : > { %1261 = vmatmul.mubr.bf16.gmra.mxu0 %v4457_v1 }
  0x86   : > { %1455 = vmatmul.mubr.bf16.gmra.mxu1 %v4457_v1  ;;  %3676 = vmatpush3.bf16.msra.mxu0 %v4059_v18 }
  0x87   : > { %3716 = vmatpush3.bf16.msra.mxu1 %v4060_v19  ;;  %1268 = vmatprep.mubr.bf16.mxu0 %v4490_v13 }
  0x88   : > { %3677 = vmatprep.subr.bf16.mxu0 %v4061_v20  ;;  %1462 = vmatprep.mubr.bf16.mxu1 %v4490_v13 }
  0x89   : > { %3717 = vmatprep.subr.bf16.mxu1 %v4062_v21 }
  0x8a   : > { %3678 = vmatpush3.bf16.msra.mxu0 %v4063_v22 }
  0x8b   : > { %3718 = vmatpush3.bf16.msra.mxu1 %v4064_v23  ;;  %3679 = vmatprep.subr.bf16.mxu0 %v4065_v24 }
  0x8c   : > { %3719 = vmatprep.subr.bf16.mxu1 %v4066_v25 }
  0x8d   : > { %1269 = vmatmul.mubr.bf16.gmra.mxu0 %v4493_v15 }
  0x8e   : > { %1463 = vmatmul.mubr.bf16.gmra.mxu1 %v4493_v15  ;;  %3680 = vmatpush3.bf16.msra.mxu0 %v4067_v26 }
  0x8f   : > { %3720 = vmatpush3.bf16.msra.mxu1 %v4068_v27  ;;  %1632 = vmatprep.mubr.bf16.mxu0 %v4382_v35 }
  0x90   : > { %3681 = vmatprep.subr.bf16.mxu0 %v4069_v28  ;;  %1826 = vmatprep.mubr.bf16.mxu1 %v4382_v35 }
  0x91   : > { %3721 = vmatprep.subr.bf16.mxu1 %v4070_v29 }
  0x92   : > { %3682 = vmatpush3.bf16.msra.mxu0 %v4071_v30 }
  0x93   : > { %3722 = vmatpush3.bf16.msra.mxu1 %v4072_v31  ;;  %3747 = vmatprep.subr.bf16.mxu0 %v4073_v32 }
  0x94   : > { %3819 = vmatprep.subr.bf16.mxu1 %v5308_v3 }
  0x95   : > { %1633 = vmatmul.mubr.bf16.vlgmr.msra.gmra.mxu0 %v4385_v37 }
  0x96   : > { %1827 = vmatmul.mubr.bf16.vlgmr.msra.gmra.mxu1 %v4385_v37  ;;  %3748 = vmatpush3.bf16.msra.mxu0 %v4074_v33 }
  0x97   : > { %3749 = vmatprep.subr.bf16.mxu0 %v4075_v34  ;;  %1640 = vmatprep.mubr.bf16.mxu0 %v4417_v48 }
  0x98   : > { %1834 = vmatprep.mubr.bf16.mxu1 %v4417_v48 }
  0x9a   : > { %3750 = vmatpush3.bf16.msra.mxu0 %v4076_v36 }
  0x9b   : > { %3751 = vmatprep.subr.bf16.mxu0 %v4077_v38 }
  0x9d   : > { %1641 = vmatmul.mubr.bf16.gmra.mxu0 %v4421_v51 }
  0x9e   : > { %1835 = vmatmul.mubr.bf16.gmra.mxu1 %v4421_v51  ;;  %3752 = vmatpush3.bf16.msra.mxu0 %v4078_v39 }
  0x9f   : > { %3753 = vmatprep.subr.bf16.mxu0 %v4079_v40  ;;  %1648 = vmatprep.mubr.bf16.mxu0 %v4455_v0 }
  0xa0   : > { %1842 = vmatprep.mubr.bf16.mxu1 %v4455_v0 }
  0xa2   : > { %3754 = vmatpush3.bf16.msra.mxu0 %v4080_v41 }
  0xa3   : > { %3755 = vmatprep.subr.bf16.mxu0 %v4081_v42 }
  0xa5   : > { %1649 = vmatmul.mubr.bf16.gmra.mxu0 %v4457_v1 }
  0xa6   : > { %1843 = vmatmul.mubr.bf16.gmra.mxu1 %v4457_v1  ;;  %3756 = vmatpush3.bf16.msra.mxu0 %v4082_v43 }
  0xa7   : > { %3757 = vmatprep.subr.bf16.mxu0 %v4083_v44  ;;  %1656 = vmatprep.mubr.bf16.mxu0 %v4490_v13 }
  0xa8   : > { %1850 = vmatprep.mubr.bf16.mxu1 %v4490_v13 }
  0xaa   : > { %3758 = vmatpush3.bf16.msra.mxu0 %v4084_v45 }
  0xab   : > { %3759 = vmatprep.subr.bf16.mxu0 %v4085_v46 }
  0xad   : > { %1657 = vmatmul.mubr.bf16.gmra.mxu0 %v4493_v15 }
  0xae   : > { %1851 = vmatmul.mubr.bf16.gmra.mxu1 %v4493_v15  ;;  %3760 = vmatpush3.bf16.msra.mxu0 %v4086_v47 }
  0xaf   : > { %3761 = vmatprep.subr.bf16.mxu0 %v4087_v49  ;;  %2020 = vmatprep.mubr.bf16.mxu0 %v4382_v35 }
  0xb0   : > { %3829 = vmatprep.mubr.msk.bf16.mxu1 %vm4184_vm0, %v5308_v3 }
  0xb2   : > { %3762 = vmatpush3.bf16.msra.mxu0 %v4088_v50 }
  0xb3   : > { %3853 = vmatprep.subr.bf16.mxu0 %v5308_v3 }
  0xb5   : > { %2021 = vmatmul.mubr.bf16.vlgmr.msra.gmra.mxu0 %v4385_v37 }
  0xb6   : > { %2028 = vmatprep.mubr.bf16.mxu0 %v4417_v48 }
  0xbd   : > { %2029 = vmatmul.mubr.bf16.gmra.mxu0 %v4421_v51 }
  0xbe   : > { %2036 = vmatprep.mubr.bf16.mxu0 %v4455_v0 }
  0xc5   : > { %2037 = vmatmul.mubr.bf16.gmra.mxu0 %v4457_v1 }
  0xc6   : > { %2044 = vmatprep.mubr.bf16.mxu0 %v4490_v13 }
  0xcd   : > { %2045 = vmatmul.mubr.bf16.gmra.mxu0 %v4493_v15 }
  0xce   : > { %3855 = vmatprep.mubr.msk.bf16.mxu0 %vm4184_vm0, %v5308_v3 }
  0xf5   : > { %v3443_v52 = vpop.f32.mrf.mxu0 }
  0xf6   : > { %v3483_v53 = vpop.f32.mrf.mxu1 }
  0xf7   : > { %v3444_v54 = vpop.f32.mrf.mxu0 }
  0xf8   : > { %v3484_v55 = vpop.f32.mrf.mxu1  ;;  %v4819_v35 = vadd.f32 %v3444_v54, %v3443_v52 }
  0xf9   : > { %v4821_v56 = vadd.f32 %v3484_v55, %v3483_v53  ;;  %v3446_v37 = vpop.f32.mrf.mxu0 }
  0xfa   : > { %v3486_v48 = vpop.f32.mrf.mxu1 }
  0xfb   : > { %v3447_v0 = vpop.f32.mrf.mxu0 }
  0xfc   : > { %v3487_v57 = vpop.f32.mrf.mxu1  ;;  %v4825_v1 = vadd.f32 %v3447_v0, %v3446_v37 }
  0xfd   : > { %v4827_v13 = vadd.f32 %v3487_v57, %v3486_v48  ;;  %v3449_v15 = vpop.f32.mrf.mxu0 }
  0xfe   : > { %v3489_v58 = vpop.f32.mrf.mxu1 }
  0xff   : > { %v3450_v59 = vpop.f32.mrf.mxu0 }
 0x100   : > { %v3490_v60 = vpop.f32.mrf.mxu1  ;;  %v4829_v61 = vadd.f32 %v3450_v59, %v3449_v15 }
 0x101   : > { %v4831_v62 = vadd.f32 %v3490_v60, %v3489_v58  ;;  %v3452_v63 = vpop.f32.mrf.mxu0 }
 0x102   : > { %5328 = vst [vmem:[#allocation5_spill] sm:$0xff] %v4829_v61  ;;  %v3492_v2 = vpop.f32.mrf.mxu1 }
 0x103   : > { %5329 = vst [vmem:[#allocation6_spill] sm:$0xff] %v4831_v62  ;;  %v3453_v5 = vpop.f32.mrf.mxu0 }
 0x104   : > { %v3493_v6 = vpop.f32.mrf.mxu1  ;;  %v4837_v7 = vadd.f32 %v3453_v5, %v3452_v63 }
 0x105   : > { %v4839_v8 = vadd.f32 %v3493_v6, %v3492_v2  ;;  %v3455_v9 = vpop.f32.mrf.mxu0 }
 0x106   : > { %v3495_v10 = vpop.f32.mrf.mxu1 }
 0x107   : > { %v3456_v11 = vpop.f32.mrf.mxu0 }
 0x108   : > { %v3496_v12 = vpop.f32.mrf.mxu1  ;;  %v4841_v14 = vadd.f32 %v3456_v11, %v3455_v9 }
 0x109   : > { %v4843_v16 = vadd.f32 %v3496_v12, %v3495_v10  ;;  %v3458_v17 = vpop.f32.mrf.mxu0 }
 0x10a   : > { %5330 = vst [vmem:[#allocation7_spill] sm:$0xff] %v4841_v14  ;;  %v3498_v18 = vpop.f32.mrf.mxu1 }
 0x10b   : > { %5331 = vst [vmem:[#allocation8_spill] sm:$0xff] %v4843_v16  ;;  %v3459_v20 = vpop.f32.mrf.mxu0 }
 0x10c   : > { %v3499_v21 = vpop.f32.mrf.mxu1  ;;  %v4847_v22 = vadd.f32 %v3459_v20, %v3458_v17 }
 0x10d   : > { %v4849_v23 = vadd.f32 %v3499_v21, %v3498_v18  ;;  %v3461_v24 = vpop.f32.mrf.mxu0 }
 0x10e   : > { %v3501_v25 = vpop.f32.mrf.mxu1 }
 0x10f   : > { %v3462_v26 = vpop.f32.mrf.mxu0 }
 0x110   : > { %v3502_v27 = vpop.f32.mrf.mxu1  ;;  %v4851_v28 = vadd.f32 %v3462_v26, %v3461_v24 }
 0x111   : > { %v4853_v29 = vadd.f32 %v3502_v27, %v3501_v25  ;;  %v3464_v30 = vpop.f32.mrf.mxu0 }
 0x112   : > { %5332 = vst [vmem:[#allocation9_spill] sm:$0xff] %v4851_v28  ;;  %v3504_v31 = vpop.f32.mrf.mxu1 }
 0x113   : > { %5333 = vst [vmem:[#allocation10_spill] sm:$0xff] %v4853_v29  ;;  %v3465_v33 = vpop.f32.mrf.mxu0  ;;  %v5035_v29 = vld [vmem:[%s5302_s2 + $0x6] ss:$0 sm:$0xff] }
 0x114   : > { %v3505_v34 = vpop.f32.mrf.mxu1  ;;  %v4861_v36 = vadd.f32 %v3465_v33, %v3464_v30 }
 0x115   : > { %v4863_v38 = vadd.f32 %v3505_v34, %v3504_v31  ;;  %v3523_v39 = vpop.f32.mrf.mxu0 }
 0x116   : > { %v3563_v40 = vpop.f32.mrf.mxu1 }
 0x117   : > { %v3524_v41 = vpop.f32.mrf.mxu0 }
 0x118   : > { %v4865_v42 = vadd.f32 %v3524_v41, %v3523_v39  ;;  %v3564_v43 = vpop.f32.mrf.mxu1 }
 0x119   : > { %v4867_v44 = vadd.f32 %v3564_v43, %v3563_v40  ;;  %v3526_v45 = vpop.f32.mrf.mxu0 }
 0x11a   : > { %v3566_v46 = vpop.f32.mrf.mxu1 }
 0x11b   : > { %v3527_v49 = vpop.f32.mrf.mxu0 }
 0x11c   : > { %v3528_v50 = vadd.f32 %v3527_v49, %v3526_v45  ;;  %v3567_v52 = vpop.f32.mrf.mxu1 }
 0x11d   : > { %v4871_v53 = vadd.f32 %v3567_v52, %v3566_v46  ;;  %v3529_v54 = vpop.f32.mrf.mxu0 }
 0x11e   : > { %v3569_v55 = vpop.f32.mrf.mxu1 }
 0x11f   : > { %v3530_v37 = vpop.f32.mrf.mxu0 }
 0x120   : > { %v4873_v48 = vadd.f32 %v3530_v37, %v3529_v54  ;;  %v3570_v0 = vpop.f32.mrf.mxu1 }
 0x121   : > { %v4875_v57 = vadd.f32 %v3570_v0, %v3569_v55  ;;  %v3532_v15 = vpop.f32.mrf.mxu0 }
 0x122   : > { %5334 = vst [vmem:[#allocation11_spill] sm:$0xff] %v4873_v48  ;;  %v4877_v58 = vpop.f32.mrf.mxu1 }
 0x123   : > { %5335 = vst [vmem:[#allocation12_spill] sm:$0xff] %v4875_v57  ;;  %v3533_v60 = vpop.f32.mrf.mxu0 }
 0x124   : > { %v4881_v63 = vadd.f32 %v3533_v60, %v3532_v15  ;;  %v4883_v2 = vpop.f32.mrf.mxu1  ;;  %v4916_v15 = vld [vmem:[%s5302_s2] ss:$0 sm:$0xff] }
 0x125   : > { %v3535_v5 = vpop.f32.mrf.mxu0  ;;  %v2731_v51 = vadd.f32 %v4861_v36, %v4916_v15  ;;  %v5011_v36 = vld [vmem:[%s5302_s2 + $0x5] ss:$0 sm:$0xff] }
 0x126   : > { %v3575_v6 = vpop.f32.mrf.mxu1 }
 0x127   : > { %v3536_v9 = vpop.f32.mrf.mxu0 }
 0x128   : > { %v4885_v10 = vadd.f32 %v3536_v9, %v3535_v5  ;;  %v3576_v11 = vpop.f32.mrf.mxu1 }
 0x129   : > { %v4887_v12 = vadd.f32 %v3576_v11, %v3575_v6  ;;  %v3538_v17 = vpop.f32.mrf.mxu0  ;;  %v4923_v6 = vld [vmem:[%s5302_s2 + $0x1] ss:$0 sm:$0xff]  ;;  %v2126_v11 = vadd.f32 %v4825_v1, %v4916_v15 }
 0x12a   : > { %5336 = vst [vmem:[#allocation13_spill] sm:$0xff] %v4885_v10  ;;  %v4889_v18 = vpop.f32.mrf.mxu1 }
 0x12b   : > { %5337 = vst [vmem:[#allocation14_spill] sm:$0xff] %v4887_v12  ;;  %v3539_v21 = vpop.f32.mrf.mxu0 }
 0x12c   : > { %v4893_v24 = vadd.f32 %v3539_v21, %v3538_v17  ;;  %v4895_v25 = vpop.f32.mrf.mxu1 }
 0x12d   : > { %v3541_v26 = vpop.f32.mrf.mxu0 }
 0x12e   : > { %v3581_v27 = vpop.f32.mrf.mxu1 }
 0x12f   : > { %v3542_v30 = vpop.f32.mrf.mxu0 }
 0x130   : > { %v4897_v31 = vadd.f32 %v3542_v30, %v3541_v26  ;;  %v3582_v33 = vpop.f32.mrf.mxu1  ;;  %v4932_v26 = vld [vmem:[%s5302_s2 + $0x2] ss:$0 sm:$0xff]  ;;  %v2136_v30 = vadd.f32 %v4827_v13, %v4923_v6 }
 0x131   : > { %v4899_v34 = vadd.f32 %v3582_v33, %v3581_v27  ;;  %v3544_v39 = vpop.f32.mrf.mxu0  ;;  %v4992_v59 = vadd.f32 %v4893_v24, %v4932_v26 }
 0x132   : > { %5338 = vst [vmem:[#allocation15_spill] sm:$0xff] %v4897_v31  ;;  %v3584_v40 = vpop.f32.mrf.mxu1 }
 0x133   : > { %5339 = vst [vmem:[#allocation16_spill] sm:$0xff] %v4899_v34  ;;  %v3545_v43 = vpop.f32.mrf.mxu0 }
 0x134   : > { %v4903_v45 = vadd.f32 %v3545_v43, %v3544_v39  ;;  %v3585_v46 = vpop.f32.mrf.mxu1  ;;  %v2146_v43 = vadd.f32 %v3528_v50, %v4932_v26  ;;  %v2333_v50 = vadd.f32 %v4837_v7, %v4916_v15 }
 0x135   : > { %v4905_v49 = vadd.f32 %v3585_v46, %v3584_v40  ;;  %v3603_v52 = vpop.f32.mrf.mxu0  ;;  %v4939_v40 = vld [vmem:[%s5302_s2 + $0x3] ss:$0 sm:$0xff] }
 0x136   : > { %v4907_v54 = vpop.f32.mrf.mxu1  ;;  %v2156_v13 = vadd.f32 %v4871_v53, %v4939_v40 }
 0x137   : > { %v3604_v55 = vpop.f32.mrf.mxu0 }
 0x138   : > { %v4909_v37 = vadd.f32 %v3604_v55, %v3603_v52  ;;  %v4911_v0 = vpop.f32.mrf.mxu1 }
 0x139   : > { %v3606_v60 = vpop.f32.mrf.mxu0 }
 0x13a   : > { %v4918_v5 = vpop.f32.mrf.mxu1 }
 0x13b   : > { %v3607_v9 = vpop.f32.mrf.mxu0 }
 0x13c   : > { %v3608_v17 = vadd.f32 %v3607_v9, %v3606_v60  ;;  %v4927_v21 = vpop.f32.mrf.mxu1 }
 0x13d   : > { %v3609_v27 = vpop.f32.mrf.mxu0  ;;  %v3648_v62 = vadd.f32 %v4927_v21, %v4918_v5 }
 0x13e   : > { %v2127_v33 = vmax.f32 %v3608_v17, %v2126_v11  ;;  %v3649_v39 = vpop.f32.mrf.mxu1 }
 0x13f   : > { %v3610_v1 = vpop.f32.mrf.mxu0 }
 0x140   : > { %v2137_v46 = vmax.f32 %v2127_v33, %v2136_v30  ;;  %v4942_v52 = vadd.f32 %v3610_v1, %v3609_v27  ;;  %v3650_v55 = vpop.f32.mrf.mxu1  ;;  %v2342_v1 = vadd.f32 %v4839_v8, %v4923_v6  ;;  %v4185_v8 = vmov 0  }
 0x141   : > { %v4944_v60 = vadd.f32 %v3650_v55, %v3649_v39  ;;  %v3612_v9 = vpop.f32.mrf.mxu0  ;;  %v4962_v55 = vadd.f32 %v4881_v63, %v4932_v26  ;;  %3943 = vset.pattern.permute.xlu0 %v4185_v8  ;;  %3944 = vset.pattern.permute.xlu1 %v4185_v8 }
 0x142   : > { %5340 = vst [vmem:[#allocation17_spill] sm:$0xff] %v4942_v52  ;;  %v2147_v11 = vmax.f32 %v2137_v46, %v2146_v43  ;;  %v4948_v17 = vpop.f32.mrf.mxu1 }
 0x143   : > { %5341 = vst [vmem:[#allocation18_spill] sm:$0xff] %v4944_v60  ;;  %v3613_v20 = vpop.f32.mrf.mxu0 }
 0x144   : > { %v4954_v30 = vmax.f32 %v2147_v11, %v2156_v13  ;;  %v3614_v27 = vadd.f32 %v3613_v20, %v3612_v9  ;;  %v4956_v33 = vpop.f32.mrf.mxu1  ;;  %v2059_v20 = vld [vmem:[%s5304_s4] sm:$0xff] }
 0x145   : > { %v3615_v39 = vpop.f32.mrf.mxu0  ;;  %2062 = vperm.xlu0 %3943, %v2059_v20   ;;  %2271 = vperm.xlu1 %3944, %v2059_v20  }
 0x146   : > { %v2334_v53 = vmax.f32 %v3614_v27, %v2333_v50  ;;  %v3655_v43 = vpop.f32.mrf.mxu1 }
 0x147   : > { %v3616_v46 = vpop.f32.mrf.mxu0 }
 0x148   : > { %v4964_v32 = vmax.f32 %v2334_v53, %v2342_v1  ;;  %v4966_v4 = vadd.f32 %v3616_v46, %v3615_v39  ;;  %v3656_v7 = vpop.f32.mrf.mxu1  ;;  %v2400_v39 = vld [vmem:[%s5306_s6] sm:$0xff]  ;;  %v2532_v1 = vadd.f32 %v4847_v22, %v4916_v15 }
 0x149   : > { %v4971_v9 = vadd.f32 %v3656_v7, %v3655_v43  ;;  %v3618_v13 = vpop.f32.mrf.mxu0  ;;  %v2541_v7 = vadd.f32 %v4849_v23, %v4923_v6  ;;  %2403 = vperm.xlu1 %3944, %v2400_v39   ;;  %2203 = vperm.xlu0 %3943, %v2400_v39   ;;  %v2749_v23 = vadd.f32 %v4903_v45, %v4932_v26 }
 0x14a   : > { %5342 = vst [vmem:[#allocation19_spill] sm:$0xff] %v4966_v4  ;;  %v4975_v63 = vpop.f32.mrf.mxu1  ;;  %v5347_v21 = vmax.f32 %v4964_v32, %v4962_v55 }
 0x14b   : > { %5343 = vst [vmem:[#allocation20_spill] sm:$0xff] %v4971_v9  ;;  %v3619_v27 = vpop.f32.mrf.mxu0 }
 0x14c   : > { %v3620_v53 = vadd.f32 %v3619_v27, %v3618_v13  ;;  %v4984_v43 = vpop.f32.mrf.mxu1 }
 0x14d   : > { %v3621_v46 = vpop.f32.mrf.mxu0  ;;  %2602 = vperm.xlu1 %3944, %v2400_v39   ;;  %2470 = vperm.xlu0 %3943, %v2059_v20  }
 0x14e   : > { %v2533_v8 = vmax.f32 %v3620_v53, %v2532_v1  ;;  %v4988_v41 = vpop.f32.mrf.mxu1 }
 0x14f   : > { %v3622_v50 = vpop.f32.mrf.mxu0 }
 0x150   : > { %v4994_v19 = vmax.f32 %v2533_v8, %v2541_v7  ;;  %v4996_v22 = vadd.f32 %v3622_v50, %v3621_v46  ;;  %v4998_v13 = vpop.f32.mrf.mxu1  ;;  %v2740_v50 = vadd.f32 %v4863_v38, %v4923_v6 }
 0x151   : > { %v3624_v27 = vpop.f32.mrf.mxu0  ;;  %2669 = vperm.xlu0 %3943, %v2059_v20   ;;  %2801 = vperm.xlu1 %3944, %v2400_v39  }
 0x152   : > { %v3664_v1 = vpop.f32.mrf.mxu1 }
 0x153   : > { %v3625_v53 = vpop.f32.mrf.mxu0 }
 0x154   : > { %v3626_v47 = vadd.f32 %v3625_v53, %v3624_v27  ;;  %v3665_v24 = vpop.f32.mrf.mxu1  ;;  %v2758_v27 = vadd.f32 %v4905_v49, %v4939_v40 }
 0x155   : > { %v3666_v3 = vadd.f32 %v3665_v24, %v3664_v1  ;;  %v3683_v7 = vpop.f32.mrf.mxu0 }
 0x156   : > { %v2732_v46 = vmax.f32 %v3626_v47, %v2731_v51  ;;  %v3723_v8 = vpop.f32.mrf.mxu1 }
 0x157   : > { %v3684_v11 = vpop.f32.mrf.mxu0  ;;  %v2767_v51 = vadd.f32 %v3666_v3, %v5011_v36 }
 0x158   : > { %v2741_v14 = vmax.f32 %v2732_v46, %v2740_v50  ;;  %v3724_v16 = vpop.f32.mrf.mxu1 }
 0x159   : > { %v3686_v15 = vpop.f32.mrf.mxu0  ;;  %v3725_v60 = vadd.f32 %v3724_v16, %v3723_v8  ;;  %v5063_v16 = vld [vmem:[%s5302_s2 + $0x7] ss:$0 sm:$0xff] }
 0x15a   : > { %v2750_v38 = vmax.f32 %v2741_v14, %v2749_v23  ;;  %v3726_v47 = vpop.f32.mrf.mxu1 }
 0x15b   : > { %v3687_v6 = vpop.f32.mrf.mxu0 }
 0x15c   : > { %v2759_v20 = vmax.f32 %v2750_v38, %v2758_v27  ;;  %v3727_v39 = vpop.f32.mrf.mxu1  ;;  %v3688_v34 = vadd.f32 %v3687_v6, %v3686_v15 }
 0x15d   : > { %v5016_v1 = vpop.f32.mrf.mxu0  ;;  %v3728_v6 = vadd.f32 %v3727_v39, %v3726_v47 }
 0x15e   : > { %v2768_v45 = vmax.f32 %v2759_v20, %v2767_v51  ;;  %v5020_v53 = vpop.f32.mrf.mxu1  ;;  %v2176_v15 = vadd.f32 %v3688_v34, %v5035_v29  ;;  %v3645_v34 = vadd.f32 %v4911_v0, %v4907_v54 }
 0x15f   : > { %v5018_v26 = vpop.f32.mrf.mxu0  ;;  %v2186_v39 = vadd.f32 %v3728_v6, %v5063_v16 }
 0x160   : > { %v5022_v46 = vpop.f32.mrf.mxu1 }
 0x161   : > { %v3692_v24 = vpop.f32.mrf.mxu0 }
 0x162   : > { %v3732_v3 = vpop.f32.mrf.mxu1 }
 0x163   : > { %v3693_v50 = vpop.f32.mrf.mxu0 }
 0x164   : > { %v3733_v27 = vpop.f32.mrf.mxu1  ;;  %v3694_v52 = vadd.f32 %v3693_v50, %v3692_v24 }
 0x165   : > { %v3695_v10 = vpop.f32.mrf.mxu0 }
 0x166   : > { %v5030_v51 = vpop.f32.mrf.mxu1  ;;  %v2378_v32 = vadd.f32 %v3694_v52, %v5035_v29  ;;  %v5078_v52 = vld [vmem:[%s5302_s2 + $0x8] ss:$0 sm:$0xff] }
 0x167   : > { %v3696_v49 = vpop.f32.mrf.mxu0  ;;  %5345 = vst [vmem:[#allocation22_spill] sm:$0xff] %v5030_v51 }
 0x168   : > { %v5024_v14 = vadd.f32 %v3696_v49, %v3695_v10  ;;  %v5037_v10 = vpop.f32.mrf.mxu1 }
 0x169   : > { %v3698_v23 = vpop.f32.mrf.mxu0  ;;  %5346 = vst [vmem:[#allocation23_spill] sm:$0xff] %v5037_v10 }
 0x16a   : > { %5344 = vst [vmem:[#allocation21_spill] sm:$0xff] %v5024_v14  ;;  %v3574_v14 = vadd.f32 %v4883_v2, %v4877_v58  ;;  %v3738_v48 = vpop.f32.mrf.mxu1  ;;  %v3685_v2 = vadd.f32 %v3684_v11, %v3683_v7 }
 0x16b   : > { %v3699_v12 = vpop.f32.mrf.mxu0 }
 0x16c   : > { %v2360_v57 = vadd.f32 %v3574_v14, %v4939_v40  ;;  %v2057_v11 = vpack.c.bf16 %v3725_v60, %v3685_v2  ;;  %v3700_v50 = vadd.f32 %v3699_v12, %v3698_v23 }
 0x16d   : > { %v5026_v38 = vpop.f32.mrf.mxu0 }
 0x16e   : > { %v2577_v23 = vadd.f32 %v3700_v50, %v5035_v29  ;;  %v2198_v50 = vld [vmem:[%s5305_s5] sm:$0xf] }
 0x16f   : > { %v5028_v4 = vpop.f32.mrf.mxu0 }
 0x171   : > { %v3704_v20 = vpop.f32.mrf.mxu0 }
 0x173   : > { %v3705_v9 = vpop.f32.mrf.mxu0 }
 0x174   : > { %v3706_v28 = vadd.f32 %v3705_v9, %v3704_v20  ;;  %v3654_v9 = vadd.f32 %v4956_v33, %v4948_v17  ;;  %v2361_v17 = vmax.f32 %v5347_v21, %v2360_v57  ;;  %v3734_v57 = vadd.f32 %v3733_v27, %v3732_v3 }
 0x175   : > { %v3763_v49 = vpop.f32.mrf.mxu0  ;;  %v5349_v3 = vmax.f32 %v4994_v19, %v4992_v59 }
 0x176   : > { %v2776_v61 = vadd.f32 %v3706_v28, %v5035_v29  ;;  %v2166_v28 = vadd.f32 %v3648_v62, %v5011_v36  ;;  %v3580_v62 = vadd.f32 %v4895_v25, %v4889_v18  ;;  %v3660_v18 = vadd.f32 %v4984_v43, %v4975_v63 }
 0x177   : > { %v3764_v51 = vpop.f32.mrf.mxu0  ;;  %v2056_v63 = vpack.c.bf16 %v3645_v34, %v4909_v37 }
 0x178   : > { %v5046_v20 = vmax.f32 %v2768_v45, %v2776_v61  ;;  %v3765_v31 = vadd.f32 %v3764_v51, %v3763_v49  ;;  %v2369_v61 = vadd.f32 %v3654_v9, %v5011_v36  ;;  %v3739_v45 = vpop.f32.mrf.mxu1  ;;  %v2167_v55 = vmax.f32 %v4954_v30, %v2166_v28 }
 0x179   : > { %v3766_v10 = vpop.f32.mrf.mxu0  ;;  %v2559_v0 = vadd.f32 %v3580_v62, %v4939_v40  ;;  %v2387_v30 = vadd.f32 %v3734_v57, %v5063_v16  ;;  %v2568_v51 = vadd.f32 %v3660_v18, %v5011_v36  ;;  %v3740_v37 = vadd.f32 %v3739_v45, %v3738_v48 }
 0x17a   : > { %v2058_v58 = vpack.c.bf16 %v3765_v31, %v3765_v31  ;;  %v5348_v31 = vmov 0.0   ;;  %v2370_v8 = vmax.f32 %v2361_v17, %v2369_v61  ;;  %v2177_v47 = vmax.f32 %v2167_v55, %v2176_v15  ;;  %v5073_v24 = vpop.f32.mrf.mxu1 }
 0x17b   : > { %v3767_v5 = vpop.f32.mrf.mxu0  ;;  %v2560_v27 = vmax.f32 %v5349_v3, %v2559_v0  ;;  %v5350_v17 = vpack.c.bf16 %v4867_v44, %v4865_v42  ;;  %v5351_v57 = vpack.c.bf16 %v4821_v56, %v4819_v35  ;;  %v2053_v42 = vld [vmem:[%s5303_s3] sm:$0xf] }
 0x17c   : > { %v2071_v33 = vsel %vm2069_vm1, %v2058_v58, 0  ;;  %v3768_v25 = vadd.f32 %v3767_v5, %v3766_v10  ;;  %v2379_v60 = vmax.f32 %v2370_v8, %v2378_v32  ;;  %v2187_v9 = vmax.f32 %v2177_v47, %v2186_v39  ;;  %v5089_v40 = vpop.f32.mrf.mxu1  ;;  %v2398_v44 = vld [vmem:[%s5305_s5] sm:$0xf] }
 0x17d   : > { %v5056_v14 = vpop.f32.mrf.mxu0  ;;  %3820 = vmatpush3.bf16.msra.mxu1 %v2071_v33  ;;  %v2569_v36 = vmax.f32 %v2560_v27, %v2568_v51  ;;  %v2586_v33 = vadd.f32 %v3740_v37, %v5063_v16  ;;  %v3691_v27 = vadd.f32 %v5018_v26, %v5016_v1  ;;  %v3731_v51 = vadd.f32 %v5022_v46, %v5020_v53  ;;  %v5358_v37 = vld [vmem:[#allocation16_spill] sm:$0xff] }
 0x17e   : > { %3821 = vmatprep.subr.bf16.mxu1 %v5348_v31  ;;  %v2196_v10 = vadd.f32 %v3768_v25, %v5078_v52  ;;  %v2388_v12 = vmax.f32 %v2379_v60, %v2387_v30  ;;  %v3744_v19 = vpop.f32.mrf.mxu1 }
 0x17f   : > { %v3770_v7 = vpop.f32.mrf.mxu0  ;;  %v2578_v61 = vmax.f32 %v2569_v36, %v2577_v23  ;;  %v2266_v1 = vpack.c.bf16 %v3731_v51, %v3691_v27  ;;  %v5361_v36 = vld [vmem:[#allocation6_spill] sm:$0xff] }
 0x180   : > { %v2197_v2 = vmax.f32 %v2187_v9, %v2196_v10  ;;  %v3745_v48 = vpop.f32.mrf.mxu1  ;;  %v3771_v56 = vadd.f32 %v3770_v7, %v5056_v14  ;;  %v3703_v10 = vadd.f32 %v5028_v4, %v5026_v38  ;;  %v3663_v4 = vadd.f32 %v4998_v13, %v4988_v41  ;;  %v5352_v38 = vld [vmem:[#allocation18_spill] sm:$0xff]  ;;  %v5353_v41 = vld [vmem:[#allocation17_spill] sm:$0xff] }
 0x181   : > { %v3772_v54 = vpop.f32.mrf.mxu0  ;;  %3822 = vmatpush3.bf16.msra.mxu1 %v2057_v11  ;;  %v2587_v34 = vmax.f32 %v2578_v61, %v2586_v33  ;;  %v3746_v55 = vadd.f32 %v3745_v48, %v3744_v19  ;;  %v5354_v13 = vpack.c.bf16 %v5352_v38, %v5353_v41  ;;  %v2660_v61 = vld [vmem:[%s5303_s3] sm:$0xf]  ;;  %v5367_v33 = vld [vmem:[#allocation22_spill] sm:$0xff] }
 0x182   : > { %3823 = vmatprep.subr.bf16.mxu1 %v5348_v31  ;;  %v2199_v6 = vpack.c.bf16 %v2197_v2, %v2197_v2  ;;  %v2267_v7 = vpack.c.bf16 %v3771_v56, %v3771_v56  ;;  %v2663_v46 = vpack.c.bf16 %v3663_v4, %v4996_v22  ;;  %v5362_v2 = vld [vmem:[#allocation5_spill] sm:$0xff] }
 0x183   : > { %v3773_v43 = vpop.f32.mrf.mxu0  ;;  %v2785_v39 = vadd.f32 %v3746_v55, %v5063_v16  ;;  %v2597_v16 = vld [vmem:[%s5305_s5] sm:$0xf]  ;;  %v5376_v55 = vld [vmem:[#allocation8_spill] sm:$0xff] }
 0x184   : > { %v3774_v49 = vadd.f32 %v3773_v43, %v3772_v54  ;;  %v2211_v25 = vsel %vm2069_vm1, %v2199_v6, 0  ;;  %v5369_v6 = vld [vmem:[#allocation21_spill] sm:$0xff] }
 0x185   : > { %v5091_v58 = vpop.f32.mrf.mxu0  ;;  %3824 = vmatpush3.bf16.msra.mxu1 %v2056_v63  ;;  %v2786_v63 = vmax.f32 %v5046_v20, %v2785_v39  ;;  %v2278_v20 = vsel %vm2069_vm1, %v2267_v7, 0  ;;  %v2461_v56 = vld [vmem:[%s5303_s3] sm:$0xf] }
 0x186   : > { %v2396_v28 = vadd.f32 %v3774_v49, %v5078_v52  ;;  %3825 = vmatprep.subr.bf16.mxu1 %v5348_v31  ;;  %v3743_v49 = vadd.f32 %v5089_v40, %v5073_v24  ;;  %v5355_v40 = vld [vmem:[#allocation12_spill] sm:$0xff] }
 0x187   : > { %v5096_v59 = vpop.f32.mrf.mxu0 }
 0x188   : > { %v2397_v5 = vmax.f32 %v2388_v12, %v2396_v28  ;;  %v2664_v26 = vpack.c.bf16 %v3743_v49, %v3703_v10  ;;  %v3777_v24 = vadd.f32 %v5096_v59, %v5091_v58  ;;  %v5356_v12 = vld [vmem:[#allocation11_spill] sm:$0xff]  ;;  %v2262_v59 = vld [vmem:[%s5303_s3] sm:$0xf] }
 0x189   : > { %v3778_v21 = vpop.f32.mrf.mxu0  ;;  %3826 = vmatpush3.bf16.msra.mxu1 %v5350_v17  ;;  %v5357_v23 = vpack.c.bf16 %v5355_v40, %v5356_v12  ;;  %v5359_v28 = vld [vmem:[#allocation15_spill] sm:$0xff]  ;;  %v5365_v17 = vld [vmem:[#allocation9_spill] sm:$0xff] }
 0x18a   : > { %v2399_v29 = vpack.c.bf16 %v2397_v5, %v2397_v5  ;;  %3827 = vmatprep.subr.bf16.mxu1 %v5348_v31  ;;  %v5360_v19 = vpack.c.bf16 %v5358_v37, %v5359_v28  ;;  %v2466_v22 = vpack.c.bf16 %v3777_v24, %v3777_v24  ;;  %v5363_v5 = vpack.c.bf16 %v5361_v36, %v5362_v2 }
 0x18b   : > { %v3779_v15 = vpop.f32.mrf.mxu0 }
 0x18c   : > { %v3780_v45 = vadd.f32 %v3779_v15, %v3778_v21  ;;  %v2410_v62 = vsel %vm2069_vm1, %v2399_v29, 0  ;;  %v5364_v21 = vld [vmem:[#allocation10_spill] sm:$0xff]  ;;  %v5368_v29 = vld [vmem:[#allocation23_spill] sm:$0xff]  ;;  %v2477_v15 = vsel %vm2069_vm1, %v2466_v22, 0 }
 0x18d   : > { %v3781_v32 = vpop.f32.mrf.mxu0  ;;  %3828 = vmatpush3.bf16.msra.mxu1 %v5351_v57  ;;  %3854 = vmatpush3.bf16.msra.mxu0 %v2410_v62  ;;  %v5366_v58 = vpack.c.bf16 %v5364_v21, %v5365_v17  ;;  %v3737_v48 = vadd.f32 %v5368_v29, %v5367_v33  ;;  %v5370_v62 = vld [vmem:[#allocation20_spill] sm:$0xff] }
 0x18e   : > { %v2595_v11 = vadd.f32 %v3780_v45, %v5078_v52  ;;  %3833 = vmatprep.subr.bf16.mxu1 %v5348_v31  ;;  %3873 = vmatprep.subr.bf16.mxu0 %v5348_v31 }
 0x18f   : > { %v3782_v35 = vpop.f32.mrf.mxu0  ;;  %v2465_v45 = vpack.c.bf16 %v3737_v48, %v5369_v6 }
 0x190   : > { %v2596_v8 = vmax.f32 %v2587_v34, %v2595_v11  ;;  %v3783_v18 = vadd.f32 %v3782_v35, %v3781_v32  ;;  %3830 = vmatmul.mubr.msk.bf16.vlgmr.msra.gmra.mxu1 %vm2065_vm2, %v2053_v42  ;;  %3856 = vmatmul.mubr.msk.bf16.vlgmr.msra.gmra.mxu0 %vm2206_vm3, %v2398_v44  ;;  %v5371_v32 = vld [vmem:[#allocation19_spill] sm:$0xff]  ;;  %v5373_v42 = vld [vmem:[#allocation14_spill] sm:$0xff]  ;;  %v5374_v44 = vld [vmem:[#allocation13_spill] sm:$0xff] }
 0x191   : > { %v3784_v47 = vpop.f32.mrf.mxu0  ;;  %3834 = vmatpush3.bf16.msra.mxu1 %v2211_v25  ;;  %3835 = vmatprep.mubr.msk.bf16.mxu1 %vm4184_vm0, %v5348_v31  ;;  %v5372_v57 = vpack.c.bf16 %v5370_v62, %v5371_v32  ;;  %v5375_v34 = vpack.c.bf16 %v5373_v42, %v5374_v44  ;;  %v5377_v11 = vld [vmem:[#allocation7_spill] sm:$0xff] }
 0x192   : > { %v2598_v54 = vpack.c.bf16 %v2596_v8, %v2596_v8  ;;  %v2665_v0 = vpack.c.bf16 %v3783_v18, %v3783_v18  ;;  %3839 = vmatprep.subr.bf16.mxu1 %v5348_v31  ;;  %3875 = vmatprep.mubr.msk.bf16.mxu0 %vm4184_vm0, %v5348_v31  ;;  %v5378_v35 = vpack.c.bf16 %v5376_v55, %v5377_v11  ;;  %v2796_v8 = vld [vmem:[%s5305_s5] sm:$0xf] }
 0x193   : > { %v3785_v14 = vpop.f32.mrf.mxu0 }
 0x194   : > { %v3786_v60 = vadd.f32 %v3785_v14, %v3784_v47  ;;  %v2609_v30 = vsel %vm2069_vm1, %v2598_v54, 0  ;;  %v2676_v43 = vsel %vm2069_vm1, %v2665_v0, 0 }
 0x195   : > { %3874 = vmatpush3.bf16.msra.mxu0 %v2609_v30 }
 0x196   : > { %v2794_v3 = vadd.f32 %v3786_v60, %v5078_v52  ;;  %3879 = vmatprep.subr.bf16.mxu0 %v5348_v31 }
 0x198   : > { %v2795_v9 = vmax.f32 %v2786_v63, %v2794_v3  ;;  %3836 = vmatmul.mubr.msk.bf16.vlgmr.msra.gmra.mxu1 %vm2206_vm3, %v2198_v50  ;;  %3876 = vmatmul.mubr.msk.bf16.vlgmr.msra.gmra.mxu0 %vm2206_vm3, %v2597_v16 }
 0x199   : > { %3840 = vmatpush3.bf16.msra.mxu1 %v2278_v20  ;;  %3880 = vmatpush3.bf16.msra.mxu0 %v2676_v43 }
 0x19a   : > { %v2797_v52 = vpack.c.bf16 %v2795_v9, %v2795_v9  ;;  %3841 = vmatprep.subr.bf16.mxu1 %v5348_v31  ;;  %3881 = vmatprep.subr.bf16.mxu0 %v5348_v31 }
 0x19b   : > { %3849 = vmatprep.mubr.msk.bf16.mxu1 %vm4184_vm0, %v5348_v31  ;;  %3889 = vmatprep.mubr.msk.bf16.mxu0 %vm4184_vm0, %v5348_v31 }
 0x19c   : > { %v2808_v53 = vsel %vm2069_vm1, %v2797_v52, 0 }
 0x19d   : > { %3842 = vmatpush3.bf16.msra.mxu1 %v2266_v1  ;;  %3882 = vmatpush3.bf16.msra.mxu0 %v2664_v26 }
 0x19e   : > { %3843 = vmatprep.subr.bf16.mxu1 %v5348_v31  ;;  %3883 = vmatprep.subr.bf16.mxu0 %v5348_v31 }
 0x1a1   : > { %3844 = vmatpush3.bf16.msra.mxu1 %v5354_v13  ;;  %3884 = vmatpush3.bf16.msra.mxu0 %v2663_v46 }
 0x1a2   : > { %3845 = vmatprep.subr.bf16.mxu1 %v5348_v31  ;;  %3885 = vmatprep.subr.bf16.mxu0 %v5348_v31 }
 0x1a5   : > { %3846 = vmatpush3.bf16.msra.mxu1 %v5357_v23  ;;  %3886 = vmatpush3.bf16.msra.mxu0 %v5360_v19 }
 0x1a6   : > { %3847 = vmatprep.subr.bf16.mxu1 %v5348_v31  ;;  %3887 = vmatprep.subr.bf16.mxu0 %v5348_v31 }
 0x1a9   : > { %3848 = vmatpush3.bf16.msra.mxu1 %v5363_v5  ;;  %3888 = vmatpush3.bf16.msra.mxu0 %v5366_v58 }
 0x1aa   : > { %3859 = vmatprep.subr.bf16.mxu1 %v5348_v31 }
 0x1ac   : > { %3850 = vmatmul.mubr.msk.bf16.vlgmr.msra.gmra.mxu1 %vm2065_vm2, %v2262_v59  ;;  %3890 = vmatmul.mubr.msk.bf16.vlgmr.msra.gmra.mxu0 %vm2065_vm2, %v2660_v61 }
 0x1ad   : > { %3860 = vmatpush3.bf16.msra.mxu1 %v2477_v15  ;;  %3869 = vmatprep.mubr.msk.bf16.mxu1 %vm4184_vm0, %v5348_v31 }
 0x1ae   : > { %3861 = vmatprep.subr.bf16.mxu1 %v5348_v31 }
 0x1b1   : > { %3862 = vmatpush3.bf16.msra.mxu1 %v2465_v45 }
 0x1b2   : > { %3863 = vmatprep.subr.bf16.mxu1 %v5348_v31 }
 0x1b5   : > { %3864 = vmatpush3.bf16.msra.mxu1 %v5372_v57 }
 0x1b6   : > { %3865 = vmatprep.subr.bf16.mxu1 %v5348_v31 }
 0x1b9   : > { %3866 = vmatpush3.bf16.msra.mxu1 %v5375_v34 }
 0x1ba   : > { %3867 = vmatprep.subr.bf16.mxu1 %v5348_v31 }
 0x1bd   : > { %3868 = vmatpush3.bf16.msra.mxu1 %v5378_v35 }
 0x1be   : > { %3893 = vmatprep.subr.bf16.mxu1 %v5348_v31 }
 0x1c0   : > { %3870 = vmatmul.mubr.msk.bf16.vlgmr.msra.gmra.mxu1 %vm2065_vm2, %v2461_v56  ;;  %v2272_v18 = vpop.permute.xlu1 %2271  ;;  %v2063_v25 = vpop.permute.xlu0 %2062 }
 0x1c1   : > { %3894 = vmatpush3.bf16.msra.mxu1 %v2808_v53  ;;  %3895 = vmatprep.mubr.msk.bf16.mxu1 %vm4184_vm0, %v5348_v31 }
 0x1c4   : > { %v2404_v47 = vpop.permute.xlu1 %2403  ;;  %v2204_v3 = vpop.permute.xlu0 %2203 }
 0x1c8   : > { %3896 = vmatmul.mubr.msk.bf16.vlgmr.msra.gmra.mxu1 %vm2206_vm3, %v2796_v8  ;;  %v2603_v27 = vpop.permute.xlu1 %2602  ;;  %v2471_v23 = vpop.permute.xlu0 %2470 }
 0x1cc   : > { %v2670_v22 = vpop.permute.xlu0 %2669 }
 0x250   : > { %v2107_v39 = vpop.f32.mrf.mxu1  ;;  %v2446_v54 = vpop.f32.mrf.mxu0 }
 0x251   : > { %v5220_v0 = vadd.f32 %v2107_v39, %v2063_v25  ;;  %v5222_v14 = vadd.f32 %v2446_v54, %v2404_v47 }
 0x252   : > { %v3831_v7 = vpop.f32.mrf.mxu1  ;;  %v3857_v60 = vpop.f32.mrf.mxu0 }
 0x253   : > { %v2113_v30 = vsub.f32 0.0, %v5220_v0  ;;  %v2452_v31 = vsub.f32 0.0, %v5222_v14 }
 0x254   : > { %v2110_v50 = vpop.f32.mrf.mxu1  ;;  %v2449_v16 = vpop.f32.mrf.mxu0 }
 0x255   : > { %v2114_v63 = vmul.f32 1.442695, %v2113_v30  ;;  %v2453_v43 = vmul.f32 1.442695, %v2452_v31  ;;  %v2802_v16 = vpop.permute.xlu1 %2801 }
 0x256   : > { %v3832_v51 = vpop.f32.mrf.mxu1  ;;  %v3858_v10 = vpop.f32.mrf.mxu0 }
 0x257   : > { %4089 = vpow2.f32 %v2114_v63 }
 0x258   : > { %4091 = vpow2.f32 %v2453_v43  ;;  %v2247_v49 = vpop.f32.mrf.mxu1  ;;  %v2645_v20 = vpop.f32.mrf.mxu0 }
 0x259   : > { %v2248_v9 = vadd.f32 %v2247_v49, %v2204_v3  ;;  %v2646_v52 = vadd.f32 %v2645_v20, %v2603_v27 }
 0x25a   : > { %v3837_v4 = vpop.f32.mrf.mxu1  ;;  %v3877_v1 = vpop.f32.mrf.mxu0 }
 0x25b   : > { %v2253_v26 = vsub.f32 0.0, %v2248_v9  ;;  %v2651_v53 = vsub.f32 0.0, %v2646_v52 }
 0x25c   : > { %v2250_v46 = vpop.f32.mrf.mxu1  ;;  %v2648_v38 = vpop.f32.mrf.mxu0 }
 0x25d   : > { %v2254_v41 = vmul.f32 1.442695, %v2253_v26  ;;  %v2652_v13 = vmul.f32 1.442695, %v2651_v53 }
 0x25e   : > { %v3838_v24 = vpop.f32.mrf.mxu1  ;;  %v3878_v40 = vpop.f32.mrf.mxu0 }
 0x25f   : > { %4093 = vpow2.f32 %v2254_v41 }
 0x260   : > { %4095 = vpow2.f32 %v2652_v13 }
 0x264   : > { %v4090_v12 = vpop.eup %4089 }
 0x265   : > { %v4092_v37 = vpop.eup %4091  ;;  %v2116_v28 = vadd.f32 1.0, %v4090_v12 }
 0x266   : > { %v2455_v19 = vadd.f32 1.0, %v4092_v37 }
 0x267   : > { %4097 = vrcp.f32 %v2116_v28 }
 0x268   : > { %4099 = vrcp.f32 %v2455_v19 }
 0x26c   : > { %v4094_v36 = vpop.eup %4093  ;;  %v2314_v2 = vpop.f32.mrf.mxu1 }
 0x26d   : > { %v2712_v5 = vpop.f32.mrf.mxu0  ;;  %v4096_v21 = vpop.eup %4095  ;;  %v2256_v17 = vadd.f32 1.0, %v4094_v36  ;;  %v2315_v58 = vadd.f32 %v2314_v2, %v2272_v18 }
 0x26e   : > { %v2713_v59 = vadd.f32 %v2712_v5, %v2670_v22  ;;  %v2654_v61 = vadd.f32 1.0, %v4096_v21  ;;  %v3851_v33 = vpop.f32.mrf.mxu1 }
 0x26f   : > { %v3891_v29 = vpop.f32.mrf.mxu0  ;;  %4101 = vrcp.f32 %v2256_v17  ;;  %v2320_v48 = vsub.f32 0.0, %v2315_v58 }
 0x270   : > { %v2718_v15 = vsub.f32 0.0, %v2713_v59  ;;  %4103 = vrcp.f32 %v2654_v61  ;;  %v2317_v6 = vpop.f32.mrf.mxu1 }
 0x271   : > { %v2715_v45 = vpop.f32.mrf.mxu0  ;;  %v2321_v62 = vmul.f32 1.442695, %v2320_v48 }
 0x272   : > { %v2719_v32 = vmul.f32 1.442695, %v2718_v15  ;;  %v3852_v57 = vpop.f32.mrf.mxu1 }
 0x273   : > { %v3892_v42 = vpop.f32.mrf.mxu0  ;;  %4105 = vpow2.f32 %v2321_v62 }
 0x274   : > { %v4098_v44 = vpop.eup %4097  ;;  %4107 = vpow2.f32 %v2719_v32 }
 0x275   : > { %v4100_v34 = vpop.eup %4099  ;;  %v2118_v55 = vmul.f32 %v4098_v44, %v5220_v0 }
 0x276   : > { %v2457_v11 = vmul.f32 %v4100_v34, %v5222_v14 }
 0x277   : > { %2260 = vst.msk [vmem:[%s5231_s13] sm:$0xff] %vm2259_vm4, %v2118_v55 }
 0x278   : > { %3379 = vst.msk [vmem:[%s5231_s13 + $0x18] sm:$0xff] %vm2259_vm4, %v2457_v11 }
 0x27c   : > { %v4102_v35 = vpop.eup %4101 }
 0x27d   : > { %v4104_v56 = vpop.eup %4103  ;;  %v2258_v8 = vmul.f32 %v4102_v35, %v2248_v9 }
 0x27e   : > { %v2656_v18 = vmul.f32 %v4104_v56, %v2646_v52 }
 0x27f   : > { %2261 = vst.msk [vmem:[%s5231_s13 + $0x8] sm:$0xff] %vm2259_vm4, %v2258_v8 }
 0x280   : > { %v4106_v25 = vpop.eup %4105  ;;  %3398 = vst.msk [vmem:[%s5231_s13 + $0x28] sm:$0xff] %vm2259_vm4, %v2656_v18  ;;  %v2513_v47 = vpop.f32.mrf.mxu1 }
 0x281   : > { %v4108_v39 = vpop.eup %4107  ;;  %v2323_v54 = vadd.f32 1.0, %v4106_v25  ;;  %v2514_v0 = vadd.f32 %v2513_v47, %v2471_v23 }
 0x282   : > { %v2721_v14 = vadd.f32 1.0, %v4108_v39  ;;  %v3871_v7 = vpop.f32.mrf.mxu1 }
 0x283   : > { %4109 = vrcp.f32 %v2323_v54  ;;  %v2519_v60 = vsub.f32 0.0, %v2514_v0 }
 0x284   : > { %4111 = vrcp.f32 %v2721_v14  ;;  %v2516_v30 = vpop.f32.mrf.mxu1 }
 0x285   : > { %v2520_v31 = vmul.f32 1.442695, %v2519_v60 }
 0x286   : > { %v3872_v50 = vpop.f32.mrf.mxu1 }
 0x287   : > { %4113 = vpow2.f32 %v2520_v31 }
 0x288   : > { %v2844_v63 = vpop.f32.mrf.mxu1 }
 0x289   : > { %v2845_v43 = vadd.f32 %v2844_v63, %v2802_v16 }
 0x28a   : > { %v3897_v3 = vpop.f32.mrf.mxu1 }
 0x28b   : > { %v2850_v27 = vsub.f32 0.0, %v2845_v43 }
 0x28c   : > { %v2847_v51 = vpop.f32.mrf.mxu1 }
 0x28d   : > { %v2851_v10 = vmul.f32 1.442695, %v2850_v27 }
 0x28e   : > { %v3898_v49 = vpop.f32.mrf.mxu1 }
 0x28f   : > { %4115 = vpow2.f32 %v2851_v10 }
 0x290   : > { %v4110_v20 = vpop.eup %4109 }
 0x291   : > { %v4112_v9 = vpop.eup %4111  ;;  %v2325_v52 = vmul.f32 %v4110_v20, %v2315_v58 }
 0x292   : > { %v2723_v4 = vmul.f32 %v4112_v9, %v2713_v59 }
 0x293   : > { %3378 = vst.msk [vmem:[%s5231_s13 + $0x10] sm:$0xff] %vm2259_vm4, %v2325_v52 }
 0x294   : > { %v4114_v1 = vpop.eup %4113  ;;  %3416 = vst.msk [vmem:[%s5231_s13 + $0x30] sm:$0xff] %vm2259_vm4, %v2723_v4 }
 0x295   : > { %v2522_v26 = vadd.f32 1.0, %v4114_v1 }
 0x297   : > { %4117 = vrcp.f32 %v2522_v26 }
 0x29c   : > { %v4116_v53 = vpop.eup %4115 }
 0x29d   : > { %v2853_v46 = vadd.f32 1.0, %v4116_v53 }
 0x29f   : > { %4119 = vrcp.f32 %v2853_v46 }
 0x2a4   : > { %v4118_v38 = vpop.eup %4117 }
 0x2a5   : > { %v2524_v41 = vmul.f32 %v4118_v38, %v2514_v0 }
 0x2a7   : > { %3397 = vst.msk [vmem:[%s5231_s13 + $0x20] sm:$0xff] %vm2259_vm4, %v2524_v41 }
 0x2ac   : > { %v4120_v13 = vpop.eup %4119 }
 0x2ad   : > { %v2855_v24 = vmul.f32 %v4120_v13, %v2845_v43 }
 0x2af   : > { %3417 = vst.msk [vmem:[%s5231_s13 + $0x38] sm:$0xff] %vm2259_vm4, %v2855_v24 }
 0x2b0   : > { %4134 = shalt.err (!%p4131_p3)
}
 0x2b1   : > { %s4135_s17 = scalar_lea.hbm %s5252_s18, 1024  ;;  %s4139_s9 = scalar_lea.hbm %s5307_s7, 2048 }
 0x2b2   : > { %p4136_p4 = scmp.ne.s32.totalorder %s5252_s18, %s4135_s17  ;;  %p4140_p9 = scmp.lt.s32.totalorder %s5252_s18, %s5307_s7 }
 0x2b3   : > { %p4141_p10 = scmp.lt.s32.totalorder %s4139_s9, %s4135_s17 }
 0x2b4   : > { %p4137_p7 = pnand %p4136_p4, %p4267_p5 }
 0x2b5   : > { %p4142_p11 = por %p4141_p10, %p4140_p9 }
 0x2b6   : > { %p4138_p8 = pneg %p4137_p7 }
 0x2b8   : > { %p4143_p12 = pnand %p4142_p11, %p4138_p8 }
 0x2ba   : > { %4146 = shalt.err (!%p4143_p12)
}
 0x2bb   : > { %s4187_s15 = smov 128   ;;  %s4188_s16 = smov 8  }
 0x2bc   : > { %3899 = dma.vmem_to_hbm [thread:$0]  (%p4267_p5), %s5254_s14, 1024, %s5252_s18, %s5260_s19, %s4187_s15, %s4187_s15, %s4188_s16  }
 0x2bd PF: > { %p3905_p13 = scmp.ge.s32.totalorder %s4181_s27, 2  ;;  %s2889_s20 = sand.u32 1, %s4169_s24  }
 0x2be   : > { %s2890_s28 = scalar_lea.sflag [#allocation3], %s2889_s20 }
 0x2bf   : > { %p3902_p0 = pnand %p3905_p13, %p4271_p6 }
 0x2c1   : > { %p3903_p1 = pneg %p3902_p0 }
 0x2c3   : > { %4164 = dma.done.wait (%p3903_p1), %s2890_s28, 1024  }
 0x2c4   : > { %4166 = vsyncadd (%p3903_p1), %s2890_s28, 4294966272  ;;  %p17_p2 = scmp.ge.s32.totalorder %s4254_s30, 4   ;;  %s5379_s24 = smov %s4173_s25 }
 0x2c5   : > { %s5380_s25 = smov %s4177_s26  ;;  %s5381_s26 = smov %s4265_s10 }
 0x2c6   : > { %s5382_s27 = smov %s4254_s30  ;;  %19 = sbr.rel (!%p17_p2) target bundleno = 3 (0x3), region = 101 }
 0x2cb   :  { %2895 = vsyncpa [#allocation3], 1 }
 0x2cc   :  { %2897 = vsyncpa [#allocation3 + $0x1], 1 }

// kernel: tpu_custom_call.1
= control target key start
LH: loop header
LB: loop body
LE: loop exit
PB: predicated region body
PF: predicated region fallthrough
CT: control target
= control target key end

     0   :  { %12 = vsyncpa [#allocation3], 0  ;;  %s5300_s0 = inlined_call_operand.vmem [shape: f32[8,16,256], index: 0, kind: input, shape index: {}]   ;;  %s5301_s1 = inlined_call_operand.vmem [shape: bf16[9,256,64], index: 1, kind: input, shape index: {}]   ;;  %s5302_s2 = inlined_call_operand.vmem [shape: f32[9,1,64], index: 2, kind: input, shape index: {}]   ;;  %s5303_s3 = inlined_call_operand.vmem [shape: bf16[8,72], index: 3, kind: input, shape index: {}]   ;;  %s5304_s4 = inlined_call_operand.vmem [shape: f32[8,1], index: 4, kind: input, shape index: {}]   ;;  %s5305_s5 = inlined_call_operand.vmem [shape: bf16[8,8], index: 5, kind: input, shape index: {}]   ;;  %s5306_s6 = inlined_call_operand.vmem [shape: f32[8,1], index: 6, kind: input, shape index: {}]   ;;  %s5307_s7 = inlined_call_operand.hbm [shape: f32[8,16,64], index: 7, kind: output, shape index: {}]  }
   0x1   :  { %14 = vsyncpa [#allocation3 + $0x1], 0  ;;  %s4229_s24 = smov 0   ;;  %s4231_s25 = smov 0  }
   0x2   :  { %s4233_s26 = smov 0   ;;  %s4235_s27 = smov 0  }
   0x3 LB: > { %s4250_s28 = sadd.s32 4294967295, %s4181_s27   ;;  %s2936_s29 = sadd.s32 4294967294, %s4181_s27   ;;  %s4181_s27 = sphi %s4235_s27, %s5382_s27   ;;  %s4177_s26 = sphi %s4233_s26, %s5381_s26   ;;  %s4173_s25 = sphi %s4231_s25, %s5380_s25   ;;  %s4169_s24 = sphi %s4229_s24, %s5379_s24  }
   0x4   : > { %s4254_s30 = sadd.s32 1, %s4181_s27   ;;  %s179_s8 = sadd.s32 1, %s4177_s26 }
   0x5   : > { %s176_s9 = ssub.s32 %s4181_s27, %s4254_s30  ;;  %p189_p0 = scmp.ne.s32.totalorder %s4177_s26, %s4173_s25 }
   0x6   : > { %p177_p1 = scmp.eq.s32.totalorder %s176_s9, 0  ;;  %p190_p2 = scmp.eq.s32.totalorder %s4250_s28, 1 }
   0x7   : > { %p195_p3 = scmp.ne.s32.totalorder %s4173_s25, %s4169_s24  ;;  %p196_p4 = scmp.eq.s32.totalorder %s2936_s29, 1 }
   0x8   : > { %s4265_s10 = scalar_select %p177_p1, %s4177_s26, %s179_s8  }
   0x9   : > { %p4267_p5 = por %p190_p2, %p189_p0  ;;  %p4271_p6 = por %p196_p4, %p195_p3 }
   0xa   : > { %p2939_p7 = scmp.ge.s32.totalorder %s4181_s27, 1  ;;  %p242_p8 = scmp.lt.s32.totalorder %s4181_s27, 3 }
   0xc   : > { %p243_p9 = pnand %p2939_p7, %p242_p8 }
   0xe   : > { %246 = sbr.rel (%p243_p9) target bundleno = 701 (0x2bd), region = 48 }
  0x13   : > { %v3945_v0 = vld [vmem:[%s5301_s1 + $0x78] sm:$0xff]   ;;  %v3949_v4 = vld [vmem:[%s5301_s1 + $0x70] sm:$0xff]   ;;  %v3953_v8 = vld [vmem:[%s5301_s1 + $0x68] sm:$0xff]   ;;  %s2941_s17 = sshll.u32 %s4250_s28, 2  ;;  %vm4184_vm0 = vmmov 0   ;;  %vm2069_vm1 = vcmask 1043456  }
  0x14   : > { %v3946_v1 = vld [vmem:[%s5301_s1 + $0xf8] sm:$0xff]   ;;  %3427 = vmatprep.subr.bf16.mxu0 %v3945_v0  ;;  %v3950_v5 = vld [vmem:[%s5301_s1 + $0xf0] sm:$0xff]   ;;  %v3954_v9 = vld [vmem:[%s5301_s1 + $0xe8] sm:$0xff]   ;;  %p276_p10 = scmp.lt.s32.totalorder %s2941_s17, 7  ;;  %vm2065_vm2 = vcmask 588800   ;;  %vm2206_vm3 = vcmask 64512  }
  0x15   : > { %v3947_v2 = vld [vmem:[%s5301_s1 + $0x38] sm:$0xff]   ;;  %3467 = vmatprep.subr.bf16.mxu1 %v3946_v1  ;;  %v3951_v6 = vld [vmem:[%s5301_s1 + $0x30] sm:$0xff]   ;;  %v3955_v10 = vld [vmem:[%s5301_s1 + $0x28] sm:$0xff]   ;;  %s272_s8 = sand.u32 1, %s4173_s25   ;;  %vm2259_vm4 = vcmask 523264  }
  0x16   : > { %v3948_v3 = vld [vmem:[%s5301_s1 + $0xb8] sm:$0xff]   ;;  %3428 = vmatpush3.bf16.msra.mxu0 %v3947_v2  ;;  %v3952_v7 = vld [vmem:[%s5301_s1 + $0xb0] sm:$0xff]   ;;  %v3956_v11 = vld [vmem:[%s5301_s1 + $0xa8] sm:$0xff]   ;;  %s5384_s17 = smov (!%p276_p10, %s2941_s17), 7  ;;  %s2940_s9 = sshll.u32 %s272_s8, 6 }
  0x17   : > { %3468 = vmatpush3.bf16.msra.mxu1 %v3948_v3  ;;  %3429 = vmatprep.subr.bf16.mxu0 %v3949_v4  ;;  %v3957_v12 = vld [vmem:[%s5301_s1 + $0x60] sm:$0xff]   ;;  %v3961_v16 = vld [vmem:[%s5301_s1 + $0x58] sm:$0xff]   ;;  %v3965_v20 = vld [vmem:[%s5301_s1 + $0x50] sm:$0xff]   ;;  %s3424_s13 = sshll.u32 %s5384_s17, 5  ;;  %s5260_s19 = scalar_lea.sflag [#allocation3], %s272_s8 }
  0x18   : > { %3469 = vmatprep.subr.bf16.mxu1 %v3950_v5  ;;  %v3958_v13 = vld [vmem:[%s5301_s1 + $0xe0] sm:$0xff]   ;;  %v3962_v17 = vld [vmem:[%s5301_s1 + $0xd8] sm:$0xff]   ;;  %v3966_v21 = vld [vmem:[%s5301_s1 + $0xd0] sm:$0xff]   ;;  %s4371_s23 = scalar_lea.vmem %s5300_s0, %s3424_s13  ;;  %s5231_s13 = scalar_lea.vmem [#allocation2], %s2940_s9 }
  0x19   : > { %v3959_v14 = vld [vmem:[%s5301_s1 + $0x20] sm:$0xff]   ;;  %v3963_v18 = vld [vmem:[%s5301_s1 + $0x18] sm:$0xff]   ;;  %v3967_v22 = vld [vmem:[%s5301_s1 + $0x10] sm:$0xff]   ;;  %s2874_s14 = sshll.u32 %s5231_s13, 4  ;;  %s5254_s14 = int_to_ptr.vmem [resolvable:$true] %s2874_s14 }
  0x1a   : > { %3430 = vmatpush3.bf16.msra.mxu0 %v3951_v6  ;;  %v3960_v15 = vld [vmem:[%s5301_s1 + $0xa0] sm:$0xff]   ;;  %v3964_v19 = vld [vmem:[%s5301_s1 + $0x98] sm:$0xff]   ;;  %v3968_v23 = vld [vmem:[%s5301_s1 + $0x90] sm:$0xff]   ;;  %s4121_s20 = scalar_lea.vmem %s5254_s14, 1024 }
  0x1b   : > { %3470 = vmatpush3.bf16.msra.mxu1 %v3952_v7  ;;  %3431 = vmatprep.subr.bf16.mxu0 %v3953_v8  ;;  %v3969_v24 = vld [vmem:[%s5301_s1 + $0x48] sm:$0xff]   ;;  %v3973_v28 = vld [vmem:[%s5301_s1 + $0x40] sm:$0xff]   ;;  %v287_v33 = vld [vmem:[%s4371_s23 + $0x18] sm:$0xff]  ;;  %p4122_p11 = scmp.ne.s32.totalorder %s5254_s14, %s4121_s20 }
  0x1c   : > { %3471 = vmatprep.subr.bf16.mxu1 %v3954_v9  ;;  %v3970_v25 = vld [vmem:[%s5301_s1 + $0xc8] sm:$0xff]   ;;  %v3974_v29 = vld [vmem:[%s5301_s1 + $0xc0] sm:$0xff]   ;;  %v286_v36 = vld [vmem:[%s4371_s23 + $0x10] sm:$0xff] }
  0x1d   : > { %v3971_v26 = vld [vmem:[%s5301_s1 + $0x8] sm:$0xff]   ;;  %v3975_v30 = vld [vmem:[%s5301_s1] sm:$0xff]   ;;  %v3977_v38 = vld [vmem:[%s5301_s1 + $0x178] sm:$0xff]   ;;  %p4123_p12 = pnand %p4122_p11, %p4267_p5 }
  0x1e   : > { %3432 = vmatpush3.bf16.msra.mxu0 %v3955_v10  ;;  %v3972_v27 = vld [vmem:[%s5301_s1 + $0x88] sm:$0xff]   ;;  %v3976_v31 = vld [vmem:[%s5301_s1 + $0x80] sm:$0xff]   ;;  %v3978_v39 = vld [vmem:[%s5301_s1 + $0x1f8] sm:$0xff]  }
  0x1f   : > { %3472 = vmatpush3.bf16.msra.mxu1 %v3956_v11  ;;  %3433 = vmatprep.subr.bf16.mxu0 %v3957_v12  ;;  %v285_v32 = vld [vmem:[%s4371_s23 + $0x8] sm:$0xff]  ;;  %v284_v34 = vld [vmem:[%s4371_s23] sm:$0xff]  ;;  %v3979_v40 = vld [vmem:[%s5301_s1 + $0x138] sm:$0xff]   ;;  %p4124_p13 = pneg %p4123_p12 }
  0x20   : > { %3473 = vmatprep.subr.bf16.mxu1 %v3958_v13  ;;  %v4382_v35 = vpack.c.bf16 %v287_v33, %v285_v32  ;;  %v4385_v37 = vpack.c.bf16 %v286_v36, %v284_v34  ;;  %v3980_v41 = vld [vmem:[%s5301_s1 + $0x1b8] sm:$0xff]   ;;  %v3981_v42 = vld [vmem:[%s5301_s1 + $0x170] sm:$0xff]   ;;  %v289_v46 = vld [vmem:[%s4371_s23 + $0x28] sm:$0xff] }
  0x21   : > { %v3982_v43 = vld [vmem:[%s5301_s1 + $0x1f0] sm:$0xff]   ;;  %v291_v47 = vld [vmem:[%s4371_s23 + $0x38] sm:$0xff]  ;;  %v288_v49 = vld [vmem:[%s4371_s23 + $0x20] sm:$0xff] }
  0x22   : > { %3434 = vmatpush3.bf16.msra.mxu0 %v3959_v14  ;;  %468 = vmatprep.mubr.bf16.mxu0 %v4382_v35  ;;  %v3983_v44 = vld [vmem:[%s5301_s1 + $0x130] sm:$0xff]   ;;  %v4417_v48 = vpack.c.bf16 %v291_v47, %v289_v46  ;;  %v3985_v52 = vld [vmem:[%s5301_s1 + $0x168] sm:$0xff]   ;;  %v3989_v56 = vld [vmem:[%s5301_s1 + $0x160] sm:$0xff]  }
  0x23   : > { %3474 = vmatpush3.bf16.msra.mxu1 %v3960_v15  ;;  %3435 = vmatprep.subr.bf16.mxu0 %v3961_v16  ;;  %v3984_v45 = vld [vmem:[%s5301_s1 + $0x1b0] sm:$0xff]   ;;  %v3986_v53 = vld [vmem:[%s5301_s1 + $0x1e8] sm:$0xff]   ;;  %v3990_v57 = vld [vmem:[%s5301_s1 + $0x1e0] sm:$0xff]  }
  0x24   : > { %3475 = vmatprep.subr.bf16.mxu1 %v3962_v17  ;;  %662 = vmatprep.mubr.bf16.mxu1 %v4382_v35  ;;  %v290_v50 = vld [vmem:[%s4371_s23 + $0x30] sm:$0xff]  ;;  %v3987_v54 = vld [vmem:[%s5301_s1 + $0x128] sm:$0xff]   ;;  %v3991_v58 = vld [vmem:[%s5301_s1 + $0x120] sm:$0xff]  }
  0x25   : > { %v4421_v51 = vpack.c.bf16 %v290_v50, %v288_v49  ;;  %v3988_v55 = vld [vmem:[%s5301_s1 + $0x1a8] sm:$0xff]   ;;  %v3992_v59 = vld [vmem:[%s5301_s1 + $0x1a0] sm:$0xff]   ;;  %v295_v61 = vld [vmem:[%s4371_s23 + $0x58] sm:$0xff] }
  0x26   : > { %3436 = vmatpush3.bf16.msra.mxu0 %v3963_v18  ;;  %v293_v60 = vld [vmem:[%s4371_s23 + $0x48] sm:$0xff]  ;;  %v292_v62 = vld [vmem:[%s4371_s23 + $0x40] sm:$0xff]  ;;  %v294_v63 = vld [vmem:[%s4371_s23 + $0x50] sm:$0xff] }
  0x27   : > { %3476 = vmatpush3.bf16.msra.mxu1 %v3964_v19  ;;  %3437 = vmatprep.subr.bf16.mxu0 %v3965_v20  ;;  %v4455_v0 = vpack.c.bf16 %v295_v61, %v293_v60  ;;  %v4457_v1 = vpack.c.bf16 %v294_v63, %v292_v62  ;;  %v3993_v2 = vld [vmem:[%s5301_s1 + $0x158] sm:$0xff]   ;;  %v3997_v6 = vld [vmem:[%s5301_s1 + $0x150] sm:$0xff]   ;;  %v297_v10 = vld [vmem:[%s4371_s23 + $0x68] sm:$0xff] }
  0x28   : > { %3477 = vmatprep.subr.bf16.mxu1 %v3966_v21  ;;  %v3994_v3 = vld [vmem:[%s5301_s1 + $0x1d8] sm:$0xff]   ;;  %v3998_v7 = vld [vmem:[%s5301_s1 + $0x1d0] sm:$0xff]   ;;  %v296_v12 = vld [vmem:[%s4371_s23 + $0x60] sm:$0xff] }
  0x29   : > { %v3995_v4 = vld [vmem:[%s5301_s1 + $0x118] sm:$0xff]   ;;  %v3999_v8 = vld [vmem:[%s5301_s1 + $0x110] sm:$0xff]   ;;  %v4001_v16 = vld [vmem:[%s5301_s1 + $0x148] sm:$0xff]  }
  0x2a   : > { %3438 = vmatpush3.bf16.msra.mxu0 %v3967_v22  ;;  %v3996_v5 = vld [vmem:[%s5301_s1 + $0x198] sm:$0xff]   ;;  %v4000_v9 = vld [vmem:[%s5301_s1 + $0x190] sm:$0xff]   ;;  %v4002_v17 = vld [vmem:[%s5301_s1 + $0x1c8] sm:$0xff]  }
  0x2b   : > { %3478 = vmatpush3.bf16.msra.mxu1 %v3968_v23  ;;  %3439 = vmatprep.subr.bf16.mxu0 %v3969_v24  ;;  %v299_v11 = vld [vmem:[%s4371_s23 + $0x78] sm:$0xff]  ;;  %v298_v14 = vld [vmem:[%s4371_s23 + $0x70] sm:$0xff]  ;;  %v4003_v18 = vld [vmem:[%s5301_s1 + $0x108] sm:$0xff]   ;;  %s3426_s23 = sshll.u32 %s4250_s28, 10  ;;  %s4186_s28 = smov [#allocation2]  }
  0x2c   : > { %3479 = vmatprep.subr.bf16.mxu1 %v3970_v25  ;;  %v4490_v13 = vpack.c.bf16 %v299_v11, %v297_v10  ;;  %v4493_v15 = vpack.c.bf16 %v298_v14, %v296_v12  ;;  %v4004_v19 = vld [vmem:[%s5301_s1 + $0x188] sm:$0xff]   ;;  %v4005_v20 = vld [vmem:[%s5301_s1 + $0x140] sm:$0xff]   ;;  %v4009_v24 = vld [vmem:[%s5301_s1 + $0x278] sm:$0xff]   ;;  %s5252_s18 = scalar_lea.hbm %s5307_s7, %s3426_s23  ;;  %s4125_s21 = sshll.u32 %s4186_s28, 4  ;;  %s4126_s21 = int_to_ptr.vmem [resolvable:$false] %s4125_s21 }
  0x2d   : > { %v4006_v21 = vld [vmem:[%s5301_s1 + $0x1c0] sm:$0xff]   ;;  %v4010_v25 = vld [vmem:[%s5301_s1 + $0x2f8] sm:$0xff]   ;;  %v4017_v32 = vld [vmem:[%s5301_s1 + $0x268] sm:$0xff]   ;;  %s4127_s22 = scalar_lea.vmem %s4126_s21, 2048  ;;  %p4128_p0 = scmp.lt.s32.totalorder %s5254_s14, %s4126_s21 }
  0x2e   : > { %3440 = vmatpush3.bf16.msra.mxu0 %v3971_v26  ;;  %v4007_v22 = vld [vmem:[%s5301_s1 + $0x100] sm:$0xff]   ;;  %v4011_v26 = vld [vmem:[%s5301_s1 + $0x238] sm:$0xff]   ;;  %v4018_v33 = vld [vmem:[%s5301_s1 + $0x2e8] sm:$0xff]   ;;  %p4129_p1 = scmp.lt.s32.totalorder %s4127_s22, %s4121_s20 }
  0x2f   : > { %3480 = vmatpush3.bf16.msra.mxu1 %v3972_v27  ;;  %3441 = vmatprep.subr.bf16.mxu0 %v3973_v28  ;;  %v4008_v23 = vld [vmem:[%s5301_s1 + $0x180] sm:$0xff]   ;;  %v4012_v27 = vld [vmem:[%s5301_s1 + $0x2b8] sm:$0xff]   ;;  %v4013_v28 = vld [vmem:[%s5301_s1 + $0x270] sm:$0xff]  }
  0x30   : > { %3481 = vmatprep.subr.bf16.mxu1 %v3974_v29  ;;  %v4014_v29 = vld [vmem:[%s5301_s1 + $0x2f0] sm:$0xff]   ;;  %v4019_v34 = vld [vmem:[%s5301_s1 + $0x228] sm:$0xff]   ;;  %v4041_v60 = vld [vmem:[%s5301_s1 + $0x378] sm:$0xff]   ;;  %p4130_p2 = por %p4129_p1, %p4128_p0 }
  0x31   : > { %v4020_v36 = vld [vmem:[%s5301_s1 + $0x2a8] sm:$0xff]   ;;  %v4029_v46 = vld [vmem:[%s5301_s1 + $0x250] sm:$0xff]   ;;  %v4042_v61 = vld [vmem:[%s5301_s1 + $0x3f8] sm:$0xff]  }
  0x32   : > { %3442 = vmatpush3.bf16.msra.mxu0 %v3975_v30  ;;  %v4015_v30 = vld [vmem:[%s5301_s1 + $0x230] sm:$0xff]   ;;  %v4043_v62 = vld [vmem:[%s5301_s1 + $0x338] sm:$0xff]   ;;  %v4053_v10 = vld [vmem:[%s5301_s1 + $0x360] sm:$0xff]   ;;  %p4131_p3 = pnand %p4130_p2, %p4124_p13 }
  0x33   : > { %3482 = vmatpush3.bf16.msra.mxu1 %v3976_v31  ;;  %3507 = vmatprep.subr.bf16.mxu0 %v3977_v38  ;;  %v4016_v31 = vld [vmem:[%s5301_s1 + $0x2b0] sm:$0xff]   ;;  %v4021_v38 = vld [vmem:[%s5301_s1 + $0x260] sm:$0xff]   ;;  %v4044_v63 = vld [vmem:[%s5301_s1 + $0x3b8] sm:$0xff]  }
  0x34   : > { %3547 = vmatprep.subr.bf16.mxu1 %v3978_v39  ;;  %v4022_v39 = vld [vmem:[%s5301_s1 + $0x2e0] sm:$0xff]   ;;  %v4030_v47 = vld [vmem:[%s5301_s1 + $0x2d0] sm:$0xff]  }
  0x35   : > { %469 = vmatmul.mubr.bf16.vlgmr.msra.gmra.mxu0 %v4385_v37  ;;  %v4031_v49 = vld [vmem:[%s5301_s1 + $0x210] sm:$0xff]   ;;  %v4054_v11 = vld [vmem:[%s5301_s1 + $0x3e0] sm:$0xff]  }
  0x36   : > { %663 = vmatmul.mubr.bf16.vlgmr.msra.gmra.mxu1 %v4385_v37  ;;  %3508 = vmatpush3.bf16.msra.mxu0 %v3979_v40  ;;  %v4023_v40 = vld [vmem:[%s5301_s1 + $0x220] sm:$0xff]   ;;  %v4032_v50 = vld [vmem:[%s5301_s1 + $0x290] sm:$0xff]  }
  0x37   : > { %3548 = vmatpush3.bf16.msra.mxu1 %v3980_v41  ;;  %3509 = vmatprep.subr.bf16.mxu0 %v3981_v42  ;;  %v4024_v41 = vld [vmem:[%s5301_s1 + $0x2a0] sm:$0xff]   ;;  %v4025_v42 = vld [vmem:[%s5301_s1 + $0x258] sm:$0xff]  }
  0x38   : > { %3549 = vmatprep.subr.bf16.mxu1 %v3982_v43  ;;  %476 = vmatprep.mubr.bf16.mxu0 %v4417_v48  ;;  %v4026_v43 = vld [vmem:[%s5301_s1 + $0x2d8] sm:$0xff]   ;;  %v4055_v12 = vld [vmem:[%s5301_s1 + $0x320] sm:$0xff]  }
  0x39   : > { %670 = vmatprep.mubr.bf16.mxu1 %v4417_v48  ;;  %v4056_v14 = vld [vmem:[%s5301_s1 + $0x3a0] sm:$0xff]  }
  0x3a   : > { %3510 = vmatpush3.bf16.msra.mxu0 %v3983_v44  ;;  %v4027_v44 = vld [vmem:[%s5301_s1 + $0x218] sm:$0xff]  }
  0x3b   : > { %3550 = vmatpush3.bf16.msra.mxu1 %v3984_v45  ;;  %3511 = vmatprep.subr.bf16.mxu0 %v3985_v52  ;;  %v4028_v45 = vld [vmem:[%s5301_s1 + $0x298] sm:$0xff]   ;;  %v4033_v52 = vld [vmem:[%s5301_s1 + $0x248] sm:$0xff]  }
  0x3c   : > { %3551 = vmatprep.subr.bf16.mxu1 %v3986_v53  ;;  %v4034_v53 = vld [vmem:[%s5301_s1 + $0x2c8] sm:$0xff]  }
  0x3d   : > { %477 = vmatmul.mubr.bf16.gmra.mxu0 %v4421_v51 }
  0x3e   : > { %671 = vmatmul.mubr.bf16.gmra.mxu1 %v4421_v51  ;;  %3512 = vmatpush3.bf16.msra.mxu0 %v3987_v54  ;;  %v4035_v54 = vld [vmem:[%s5301_s1 + $0x208] sm:$0xff]  }
  0x3f   : > { %3552 = vmatpush3.bf16.msra.mxu1 %v3988_v55  ;;  %3513 = vmatprep.subr.bf16.mxu0 %v3989_v56  ;;  %v4036_v55 = vld [vmem:[%s5301_s1 + $0x288] sm:$0xff]   ;;  %v4037_v56 = vld [vmem:[%s5301_s1 + $0x240] sm:$0xff]  }
  0x40   : > { %3553 = vmatprep.subr.bf16.mxu1 %v3990_v57  ;;  %484 = vmatprep.mubr.bf16.mxu0 %v4455_v0  ;;  %v4038_v57 = vld [vmem:[%s5301_s1 + $0x2c0] sm:$0xff]  }
  0x41   : > { %678 = vmatprep.mubr.bf16.mxu1 %v4455_v0 }
  0x42   : > { %3514 = vmatpush3.bf16.msra.mxu0 %v3991_v58  ;;  %v4039_v58 = vld [vmem:[%s5301_s1 + $0x200] sm:$0xff]  }
  0x43   : > { %3554 = vmatpush3.bf16.msra.mxu1 %v3992_v59  ;;  %3515 = vmatprep.subr.bf16.mxu0 %v3993_v2  ;;  %v4040_v59 = vld [vmem:[%s5301_s1 + $0x280] sm:$0xff]   ;;  %v4045_v2 = vld [vmem:[%s5301_s1 + $0x370] sm:$0xff]  }
  0x44   : > { %3555 = vmatprep.subr.bf16.mxu1 %v3994_v3  ;;  %v4046_v3 = vld [vmem:[%s5301_s1 + $0x3f0] sm:$0xff]  }
  0x45   : > { %485 = vmatmul.mubr.bf16.gmra.mxu0 %v4457_v1 }
  0x46   : > { %679 = vmatmul.mubr.bf16.gmra.mxu1 %v4457_v1  ;;  %3516 = vmatpush3.bf16.msra.mxu0 %v3995_v4  ;;  %v4047_v4 = vld [vmem:[%s5301_s1 + $0x330] sm:$0xff]  }
  0x47   : > { %3556 = vmatpush3.bf16.msra.mxu1 %v3996_v5  ;;  %3517 = vmatprep.subr.bf16.mxu0 %v3997_v6  ;;  %v4048_v5 = vld [vmem:[%s5301_s1 + $0x3b0] sm:$0xff]   ;;  %v4049_v6 = vld [vmem:[%s5301_s1 + $0x368] sm:$0xff]  }
  0x48   : > { %3557 = vmatprep.subr.bf16.mxu1 %v3998_v7  ;;  %492 = vmatprep.mubr.bf16.mxu0 %v4490_v13  ;;  %v4050_v7 = vld [vmem:[%s5301_s1 + $0x3e8] sm:$0xff]  }
  0x49   : > { %686 = vmatprep.mubr.bf16.mxu1 %v4490_v13 }
  0x4a   : > { %3518 = vmatpush3.bf16.msra.mxu0 %v3999_v8  ;;  %v4051_v8 = vld [vmem:[%s5301_s1 + $0x328] sm:$0xff]  }
  0x4b   : > { %3558 = vmatpush3.bf16.msra.mxu1 %v4000_v9  ;;  %3519 = vmatprep.subr.bf16.mxu0 %v4001_v16  ;;  %v4052_v9 = vld [vmem:[%s5301_s1 + $0x3a8] sm:$0xff]   ;;  %v4057_v16 = vld [vmem:[%s5301_s1 + $0x358] sm:$0xff]  }
  0x4c   : > { %3559 = vmatprep.subr.bf16.mxu1 %v4002_v17  ;;  %v4058_v17 = vld [vmem:[%s5301_s1 + $0x3d8] sm:$0xff]  }
  0x4d   : > { %493 = vmatmul.mubr.bf16.gmra.mxu0 %v4493_v15 }
  0x4e   : > { %687 = vmatmul.mubr.bf16.gmra.mxu1 %v4493_v15  ;;  %3520 = vmatpush3.bf16.msra.mxu0 %v4003_v18  ;;  %v4059_v18 = vld [vmem:[%s5301_s1 + $0x318] sm:$0xff]  }
  0x4f   : > { %856 = vmatprep.mubr.bf16.mxu0 %v4382_v35  ;;  %3560 = vmatpush3.bf16.msra.mxu1 %v4004_v19  ;;  %v4060_v19 = vld [vmem:[%s5301_s1 + $0x398] sm:$0xff]  }
  0x50   : > { %1050 = vmatprep.mubr.bf16.mxu1 %v4382_v35  ;;  %3521 = vmatprep.subr.bf16.mxu0 %v4005_v20  ;;  %v4061_v20 = vld [vmem:[%s5301_s1 + $0x350] sm:$0xff]  }
  0x51   : > { %3561 = vmatprep.subr.bf16.mxu1 %v4006_v21  ;;  %v4062_v21 = vld [vmem:[%s5301_s1 + $0x3d0] sm:$0xff]  }
  0x52   : > { %3522 = vmatpush3.bf16.msra.mxu0 %v4007_v22  ;;  %v4063_v22 = vld [vmem:[%s5301_s1 + $0x310] sm:$0xff]  }
  0x53   : > { %3562 = vmatpush3.bf16.msra.mxu1 %v4008_v23  ;;  %3587 = vmatprep.subr.bf16.mxu0 %v4009_v24  ;;  %v4064_v23 = vld [vmem:[%s5301_s1 + $0x390] sm:$0xff]   ;;  %v4065_v24 = vld [vmem:[%s5301_s1 + $0x348] sm:$0xff]  }
  0x54   : > { %3627 = vmatprep.subr.bf16.mxu1 %v4010_v25  ;;  %v4066_v25 = vld [vmem:[%s5301_s1 + $0x3c8] sm:$0xff]  }
  0x55   : > { %857 = vmatmul.mubr.bf16.vlgmr.msra.gmra.mxu0 %v4385_v37 }
  0x56   : > { %1051 = vmatmul.mubr.bf16.vlgmr.msra.gmra.mxu1 %v4385_v37  ;;  %3588 = vmatpush3.bf16.msra.mxu0 %v4011_v26  ;;  %v4067_v26 = vld [vmem:[%s5301_s1 + $0x308] sm:$0xff]  }
  0x57   : > { %3628 = vmatpush3.bf16.msra.mxu1 %v4012_v27  ;;  %864 = vmatprep.mubr.bf16.mxu0 %v4417_v48  ;;  %v4068_v27 = vld [vmem:[%s5301_s1 + $0x388] sm:$0xff]  }
  0x58   : > { %3589 = vmatprep.subr.bf16.mxu0 %v4013_v28  ;;  %1058 = vmatprep.mubr.bf16.mxu1 %v4417_v48  ;;  %v4069_v28 = vld [vmem:[%s5301_s1 + $0x340] sm:$0xff]  }
  0x59   : > { %3629 = vmatprep.subr.bf16.mxu1 %v4014_v29  ;;  %v4070_v29 = vld [vmem:[%s5301_s1 + $0x3c0] sm:$0xff]  }
  0x5a   : > { %3590 = vmatpush3.bf16.msra.mxu0 %v4015_v30  ;;  %v4071_v30 = vld [vmem:[%s5301_s1 + $0x300] sm:$0xff]  }
  0x5b   : > { %3630 = vmatpush3.bf16.msra.mxu1 %v4016_v31  ;;  %3591 = vmatprep.subr.bf16.mxu0 %v4017_v32  ;;  %v4072_v31 = vld [vmem:[%s5301_s1 + $0x380] sm:$0xff]   ;;  %v4073_v32 = vld [vmem:[%s5301_s1 + $0x478] sm:$0xff]  }
  0x5c   : > { %3631 = vmatprep.subr.bf16.mxu1 %v4018_v33  ;;  %v4074_v33 = vld [vmem:[%s5301_s1 + $0x438] sm:$0xff]  }
  0x5d   : > { %865 = vmatmul.mubr.bf16.gmra.mxu0 %v4421_v51 }
  0x5e   : > { %1059 = vmatmul.mubr.bf16.gmra.mxu1 %v4421_v51  ;;  %3592 = vmatpush3.bf16.msra.mxu0 %v4019_v34  ;;  %v4075_v34 = vld [vmem:[%s5301_s1 + $0x470] sm:$0xff]  }
  0x5f   : > { %3632 = vmatpush3.bf16.msra.mxu1 %v4020_v36  ;;  %872 = vmatprep.mubr.bf16.mxu0 %v4455_v0  ;;  %v4076_v36 = vld [vmem:[%s5301_s1 + $0x430] sm:$0xff]  }
  0x60   : > { %3593 = vmatprep.subr.bf16.mxu0 %v4021_v38  ;;  %1066 = vmatprep.mubr.bf16.mxu1 %v4455_v0  ;;  %v4077_v38 = vld [vmem:[%s5301_s1 + $0x468] sm:$0xff]  }
  0x61   : > { %3633 = vmatprep.subr.bf16.mxu1 %v4022_v39  ;;  %v4078_v39 = vld [vmem:[%s5301_s1 + $0x428] sm:$0xff]  }
  0x62   : > { %3594 = vmatpush3.bf16.msra.mxu0 %v4023_v40  ;;  %v4079_v40 = vld [vmem:[%s5301_s1 + $0x460] sm:$0xff]  }
  0x63   : > { %3634 = vmatpush3.bf16.msra.mxu1 %v4024_v41  ;;  %3595 = vmatprep.subr.bf16.mxu0 %v4025_v42  ;;  %v4080_v41 = vld [vmem:[%s5301_s1 + $0x420] sm:$0xff]   ;;  %v4081_v42 = vld [vmem:[%s5301_s1 + $0x458] sm:$0xff]  }
  0x64   : > { %3635 = vmatprep.subr.bf16.mxu1 %v4026_v43  ;;  %v4082_v43 = vld [vmem:[%s5301_s1 + $0x418] sm:$0xff]  }
  0x65   : > { %873 = vmatmul.mubr.bf16.gmra.mxu0 %v4457_v1 }
  0x66   : > { %1067 = vmatmul.mubr.bf16.gmra.mxu1 %v4457_v1  ;;  %3596 = vmatpush3.bf16.msra.mxu0 %v4027_v44  ;;  %v4083_v44 = vld [vmem:[%s5301_s1 + $0x450] sm:$0xff]  }
  0x67   : > { %3636 = vmatpush3.bf16.msra.mxu1 %v4028_v45  ;;  %880 = vmatprep.mubr.bf16.mxu0 %v4490_v13  ;;  %v4084_v45 = vld [vmem:[%s5301_s1 + $0x410] sm:$0xff]  }
  0x68   : > { %3597 = vmatprep.subr.bf16.mxu0 %v4029_v46  ;;  %1074 = vmatprep.mubr.bf16.mxu1 %v4490_v13  ;;  %v4085_v46 = vld [vmem:[%s5301_s1 + $0x448] sm:$0xff]  }
  0x69   : > { %3637 = vmatprep.subr.bf16.mxu1 %v4030_v47  ;;  %v4086_v47 = vld [vmem:[%s5301_s1 + $0x408] sm:$0xff]  }
  0x6a   : > { %3598 = vmatpush3.bf16.msra.mxu0 %v4031_v49  ;;  %v4087_v49 = vld [vmem:[%s5301_s1 + $0x440] sm:$0xff]  }
  0x6b   : > { %3638 = vmatpush3.bf16.msra.mxu1 %v4032_v50  ;;  %3599 = vmatprep.subr.bf16.mxu0 %v4033_v52  ;;  %v4088_v50 = vld [vmem:[%s5301_s1 + $0x400] sm:$0xff]  }
  0x6c   : > { %3639 = vmatprep.subr.bf16.mxu1 %v4034_v53 }
  0x6d   : > { %881 = vmatmul.mubr.bf16.gmra.mxu0 %v4493_v15 }
  0x6e   : > { %1075 = vmatmul.mubr.bf16.gmra.mxu1 %v4493_v15  ;;  %3600 = vmatpush3.bf16.msra.mxu0 %v4035_v54 }
  0x6f   : > { %3640 = vmatpush3.bf16.msra.mxu1 %v4036_v55  ;;  %1244 = vmatprep.mubr.bf16.mxu0 %v4382_v35 }
  0x70   : > { %3601 = vmatprep.subr.bf16.mxu0 %v4037_v56  ;;  %1438 = vmatprep.mubr.bf16.mxu1 %v4382_v35 }
  0x71   : > { %3641 = vmatprep.subr.bf16.mxu1 %v4038_v57 }
  0x72   : > { %3602 = vmatpush3.bf16.msra.mxu0 %v4039_v58 }
  0x73   : > { %3642 = vmatpush3.bf16.msra.mxu1 %v4040_v59  ;;  %3667 = vmatprep.subr.bf16.mxu0 %v4041_v60 }
  0x74   : > { %3707 = vmatprep.subr.bf16.mxu1 %v4042_v61 }
  0x75   : > { %1245 = vmatmul.mubr.bf16.vlgmr.msra.gmra.mxu0 %v4385_v37 }
  0x76   : > { %1439 = vmatmul.mubr.bf16.vlgmr.msra.gmra.mxu1 %v4385_v37  ;;  %3668 = vmatpush3.bf16.msra.mxu0 %v4043_v62 }
  0x77   : > { %3708 = vmatpush3.bf16.msra.mxu1 %v4044_v63  ;;  %1252 = vmatprep.mubr.bf16.mxu0 %v4417_v48 }
  0x78   : > { %3669 = vmatprep.subr.bf16.mxu0 %v4045_v2  ;;  %1446 = vmatprep.mubr.bf16.mxu1 %v4417_v48 }
  0x79   : > { %3709 = vmatprep.subr.bf16.mxu1 %v4046_v3  ;;  %v5308_v3 = vmov 0.0  }
  0x7a   : > { %3670 = vmatpush3.bf16.msra.mxu0 %v4047_v4 }
  0x7b   : > { %3710 = vmatpush3.bf16.msra.mxu1 %v4048_v5  ;;  %3671 = vmatprep.subr.bf16.mxu0 %v4049_v6 }
  0x7c   : > { %3711 = vmatprep.subr.bf16.mxu1 %v4050_v7 }
  0x7d   : > { %1253 = vmatmul.mubr.bf16.gmra.mxu0 %v4421_v51 }
  0x7e   : > { %1447 = vmatmul.mubr.bf16.gmra.mxu1 %v4421_v51  ;;  %3672 = vmatpush3.bf16.msra.mxu0 %v4051_v8 }
  0x7f   : > { %3712 = vmatpush3.bf16.msra.mxu1 %v4052_v9  ;;  %1260 = vmatprep.mubr.bf16.mxu0 %v4455_v0 }
  0x80   : > { %3673 = vmatprep.subr.bf16.mxu0 %v4053_v10  ;;  %1454 = vmatprep.mubr.bf16.mxu1 %v4455_v0 }
  0x81   : > { %3713 = vmatprep.subr.bf16.mxu1 %v4054_v11 }
  0x82   : > { %3674 = vmatpush3.bf16.msra.mxu0 %v4055_v12 }
  0x83   : > { %3714 = vmatpush3.bf16.msra.mxu1 %v4056_v14  ;;  %3675 = vmatprep.subr.bf16.mxu0 %v4057_v16 }
  0x84   : > { %3715 = vmatprep.subr.bf16.mxu1 %v4058_v17 }
  0x85   : > { %1261 = vmatmul.mubr.bf16.gmra.mxu0 %v4457_v1 }
  0x86   : > { %1455 = vmatmul.mubr.bf16.gmra.mxu1 %v4457_v1  ;;  %3676 = vmatpush3.bf16.msra.mxu0 %v4059_v18 }
  0x87   : > { %3716 = vmatpush3.bf16.msra.mxu1 %v4060_v19  ;;  %1268 = vmatprep.mubr.bf16.mxu0 %v4490_v13 }
  0x88   : > { %3677 = vmatprep.subr.bf16.mxu0 %v4061_v20  ;;  %1462 = vmatprep.mubr.bf16.mxu1 %v4490_v13 }
  0x89   : > { %3717 = vmatprep.subr.bf16.mxu1 %v4062_v21 }
  0x8a   : > { %3678 = vmatpush3.bf16.msra.mxu0 %v4063_v22 }
  0x8b   : > { %3718 = vmatpush3.bf16.msra.mxu1 %v4064_v23  ;;  %3679 = vmatprep.subr.bf16.mxu0 %v4065_v24 }
  0x8c   : > { %3719 = vmatprep.subr.bf16.mxu1 %v4066_v25 }
  0x8d   : > { %1269 = vmatmul.mubr.bf16.gmra.mxu0 %v4493_v15 }
  0x8e   : > { %1463 = vmatmul.mubr.bf16.gmra.mxu1 %v4493_v15  ;;  %3680 = vmatpush3.bf16.msra.mxu0 %v4067_v26 }
  0x8f   : > { %3720 = vmatpush3.bf16.msra.mxu1 %v4068_v27  ;;  %1632 = vmatprep.mubr.bf16.mxu0 %v4382_v35 }
  0x90   : > { %3681 = vmatprep.subr.bf16.mxu0 %v4069_v28  ;;  %1826 = vmatprep.mubr.bf16.mxu1 %v4382_v35 }
  0x91   : > { %3721 = vmatprep.subr.bf16.mxu1 %v4070_v29 }
  0x92   : > { %3682 = vmatpush3.bf16.msra.mxu0 %v4071_v30 }
  0x93   : > { %3722 = vmatpush3.bf16.msra.mxu1 %v4072_v31  ;;  %3747 = vmatprep.subr.bf16.mxu0 %v4073_v32 }
  0x94   : > { %3819 = vmatprep.subr.bf16.mxu1 %v5308_v3 }
  0x95   : > { %1633 = vmatmul.mubr.bf16.vlgmr.msra.gmra.mxu0 %v4385_v37 }
  0x96   : > { %1827 = vmatmul.mubr.bf16.vlgmr.msra.gmra.mxu1 %v4385_v37  ;;  %3748 = vmatpush3.bf16.msra.mxu0 %v4074_v33 }
  0x97   : > { %3749 = vmatprep.subr.bf16.mxu0 %v4075_v34  ;;  %1640 = vmatprep.mubr.bf16.mxu0 %v4417_v48 }
  0x98   : > { %1834 = vmatprep.mubr.bf16.mxu1 %v4417_v48 }
  0x9a   : > { %3750 = vmatpush3.bf16.msra.mxu0 %v4076_v36 }
  0x9b   : > { %3751 = vmatprep.subr.bf16.mxu0 %v4077_v38 }
  0x9d   : > { %1641 = vmatmul.mubr.bf16.gmra.mxu0 %v4421_v51 }
  0x9e   : > { %1835 = vmatmul.mubr.bf16.gmra.mxu1 %v4421_v51  ;;  %3752 = vmatpush3.bf16.msra.mxu0 %v4078_v39 }
  0x9f   : > { %3753 = vmatprep.subr.bf16.mxu0 %v4079_v40  ;;  %1648 = vmatprep.mubr.bf16.mxu0 %v4455_v0 }
  0xa0   : > { %1842 = vmatprep.mubr.bf16.mxu1 %v4455_v0 }
  0xa2   : > { %3754 = vmatpush3.bf16.msra.mxu0 %v4080_v41 }
  0xa3   : > { %3755 = vmatprep.subr.bf16.mxu0 %v4081_v42 }
  0xa5   : > { %1649 = vmatmul.mubr.bf16.gmra.mxu0 %v4457_v1 }
  0xa6   : > { %1843 = vmatmul.mubr.bf16.gmra.mxu1 %v4457_v1  ;;  %3756 = vmatpush3.bf16.msra.mxu0 %v4082_v43 }
  0xa7   : > { %3757 = vmatprep.subr.bf16.mxu0 %v4083_v44  ;;  %1656 = vmatprep.mubr.bf16.mxu0 %v4490_v13 }
  0xa8   : > { %1850 = vmatprep.mubr.bf16.mxu1 %v4490_v13 }
  0xaa   : > { %3758 = vmatpush3.bf16.msra.mxu0 %v4084_v45 }
  0xab   : > { %3759 = vmatprep.subr.bf16.mxu0 %v4085_v46 }
  0xad   : > { %1657 = vmatmul.mubr.bf16.gmra.mxu0 %v4493_v15 }
  0xae   : > { %1851 = vmatmul.mubr.bf16.gmra.mxu1 %v4493_v15  ;;  %3760 = vmatpush3.bf16.msra.mxu0 %v4086_v47 }
  0xaf   : > { %3761 = vmatprep.subr.bf16.mxu0 %v4087_v49  ;;  %2020 = vmatprep.mubr.bf16.mxu0 %v4382_v35 }
  0xb0   : > { %3829 = vmatprep.mubr.msk.bf16.mxu1 %vm4184_vm0, %v5308_v3 }
  0xb2   : > { %3762 = vmatpush3.bf16.msra.mxu0 %v4088_v50 }
  0xb3   : > { %3853 = vmatprep.subr.bf16.mxu0 %v5308_v3 }
  0xb5   : > { %2021 = vmatmul.mubr.bf16.vlgmr.msra.gmra.mxu0 %v4385_v37 }
  0xb6   : > { %2028 = vmatprep.mubr.bf16.mxu0 %v4417_v48 }
  0xbd   : > { %2029 = vmatmul.mubr.bf16.gmra.mxu0 %v4421_v51 }
  0xbe   : > { %2036 = vmatprep.mubr.bf16.mxu0 %v4455_v0 }
  0xc5   : > { %2037 = vmatmul.mubr.bf16.gmra.mxu0 %v4457_v1 }
  0xc6   : > { %2044 = vmatprep.mubr.bf16.mxu0 %v4490_v13 }
  0xcd   : > { %2045 = vmatmul.mubr.bf16.gmra.mxu0 %v4493_v15 }
  0xce   : > { %3855 = vmatprep.mubr.msk.bf16.mxu0 %vm4184_vm0, %v5308_v3 }
  0xf5   : > { %v3443_v52 = vpop.f32.mrf.mxu0 }
  0xf6   : > { %v3483_v53 = vpop.f32.mrf.mxu1 }
  0xf7   : > { %v3444_v54 = vpop.f32.mrf.mxu0 }
  0xf8   : > { %v3484_v55 = vpop.f32.mrf.mxu1  ;;  %v4819_v35 = vadd.f32 %v3444_v54, %v3443_v52 }
  0xf9   : > { %v4821_v56 = vadd.f32 %v3484_v55, %v3483_v53  ;;  %v3446_v37 = vpop.f32.mrf.mxu0 }
  0xfa   : > { %v3486_v48 = vpop.f32.mrf.mxu1 }
  0xfb   : > { %v3447_v0 = vpop.f32.mrf.mxu0 }
  0xfc   : > { %v3487_v57 = vpop.f32.mrf.mxu1  ;;  %v4825_v1 = vadd.f32 %v3447_v0, %v3446_v37 }
  0xfd   : > { %v4827_v13 = vadd.f32 %v3487_v57, %v3486_v48  ;;  %v3449_v15 = vpop.f32.mrf.mxu0 }
  0xfe   : > { %v3489_v58 = vpop.f32.mrf.mxu1 }
  0xff   : > { %v3450_v59 = vpop.f32.mrf.mxu0 }
 0x100   : > { %v3490_v60 = vpop.f32.mrf.mxu1  ;;  %v4829_v61 = vadd.f32 %v3450_v59, %v3449_v15 }
 0x101   : > { %v4831_v62 = vadd.f32 %v3490_v60, %v3489_v58  ;;  %v3452_v63 = vpop.f32.mrf.mxu0 }
 0x102   : > { %5328 = vst [vmem:[#allocation5_spill] sm:$0xff] %v4829_v61  ;;  %v3492_v2 = vpop.f32.mrf.mxu1 }
 0x103   : > { %5329 = vst [vmem:[#allocation6_spill] sm:$0xff] %v4831_v62  ;;  %v3453_v5 = vpop.f32.mrf.mxu0 }
 0x104   : > { %v3493_v6 = vpop.f32.mrf.mxu1  ;;  %v4837_v7 = vadd.f32 %v3453_v5, %v3452_v63 }
 0x105   : > { %v4839_v8 = vadd.f32 %v3493_v6, %v3492_v2  ;;  %v3455_v9 = vpop.f32.mrf.mxu0 }
 0x106   : > { %v3495_v10 = vpop.f32.mrf.mxu1 }
 0x107   : > { %v3456_v11 = vpop.f32.mrf.mxu0 }
 0x108   : > { %v3496_v12 = vpop.f32.mrf.mxu1  ;;  %v4841_v14 = vadd.f32 %v3456_v11, %v3455_v9 }
 0x109   : > { %v4843_v16 = vadd.f32 %v3496_v12, %v3495_v10  ;;  %v3458_v17 = vpop.f32.mrf.mxu0 }
 0x10a   : > { %5330 = vst [vmem:[#allocation7_spill] sm:$0xff] %v4841_v14  ;;  %v3498_v18 = vpop.f32.mrf.mxu1 }
 0x10b   : > { %5331 = vst [vmem:[#allocation8_spill] sm:$0xff] %v4843_v16  ;;  %v3459_v20 = vpop.f32.mrf.mxu0 }
 0x10c   : > { %v3499_v21 = vpop.f32.mrf.mxu1  ;;  %v4847_v22 = vadd.f32 %v3459_v20, %v3458_v17 }
 0x10d   : > { %v4849_v23 = vadd.f32 %v3499_v21, %v3498_v18  ;;  %v3461_v24 = vpop.f32.mrf.mxu0 }
 0x10e   : > { %v3501_v25 = vpop.f32.mrf.mxu1 }
 0x10f   : > { %v3462_v26 = vpop.f32.mrf.mxu0 }
 0x110   : > { %v3502_v27 = vpop.f32.mrf.mxu1  ;;  %v4851_v28 = vadd.f32 %v3462_v26, %v3461_v24 }
 0x111   : > { %v4853_v29 = vadd.f32 %v3502_v27, %v3501_v25  ;;  %v3464_v30 = vpop.f32.mrf.mxu0 }
 0x112   : > { %5332 = vst [vmem:[#allocation9_spill] sm:$0xff] %v4851_v28  ;;  %v3504_v31 = vpop.f32.mrf.mxu1 }
 0x113   : > { %5333 = vst [vmem:[#allocation10_spill] sm:$0xff] %v4853_v29  ;;  %v3465_v33 = vpop.f32.mrf.mxu0  ;;  %v5035_v29 = vld [vmem:[%s5302_s2 + $0x6] ss:$0 sm:$0xff] }
 0x114   : > { %v3505_v34 = vpop.f32.mrf.mxu1  ;;  %v4861_v36 = vadd.f32 %v3465_v33, %v3464_v30 }
 0x115   : > { %v4863_v38 = vadd.f32 %v3505_v34, %v3504_v31  ;;  %v3523_v39 = vpop.f32.mrf.mxu0 }
 0x116   : > { %v3563_v40 = vpop.f32.mrf.mxu1 }
 0x117   : > { %v3524_v41 = vpop.f32.mrf.mxu0 }
 0x118   : > { %v4865_v42 = vadd.f32 %v3524_v41, %v3523_v39  ;;  %v3564_v43 = vpop.f32.mrf.mxu1 }
 0x119   : > { %v4867_v44 = vadd.f32 %v3564_v43, %v3563_v40  ;;  %v3526_v45 = vpop.f32.mrf.mxu0 }
 0x11a   : > { %v3566_v46 = vpop.f32.mrf.mxu1 }
 0x11b   : > { %v3527_v49 = vpop.f32.mrf.mxu0 }
 0x11c   : > { %v3528_v50 = vadd.f32 %v3527_v49, %v3526_v45  ;;  %v3567_v52 = vpop.f32.mrf.mxu1 }
 0x11d   : > { %v4871_v53 = vadd.f32 %v3567_v52, %v3566_v46  ;;  %v3529_v54 = vpop.f32.mrf.mxu0 }
 0x11e   : > { %v3569_v55 = vpop.f32.mrf.mxu1 }
 0x11f   : > { %v3530_v37 = vpop.f32.mrf.mxu0 }
 0x120   : > { %v4873_v48 = vadd.f32 %v3530_v37, %v3529_v54  ;;  %v3570_v0 = vpop.f32.mrf.mxu1 }
 0x121   : > { %v4875_v57 = vadd.f32 %v3570_v0, %v3569_v55  ;;  %v3532_v15 = vpop.f32.mrf.mxu0 }
 0x122   : > { %5334 = vst [vmem:[#allocation11_spill] sm:$0xff] %v4873_v48  ;;  %v4877_v58 = vpop.f32.mrf.mxu1 }
 0x123   : > { %5335 = vst [vmem:[#allocation12_spill] sm:$0xff] %v4875_v57  ;;  %v3533_v60 = vpop.f32.mrf.mxu0 }
 0x124   : > { %v4881_v63 = vadd.f32 %v3533_v60, %v3532_v15  ;;  %v4883_v2 = vpop.f32.mrf.mxu1  ;;  %v4916_v15 = vld [vmem:[%s5302_s2] ss:$0 sm:$0xff] }
 0x125   : > { %v3535_v5 = vpop.f32.mrf.mxu0  ;;  %v2731_v51 = vadd.f32 %v4861_v36, %v4916_v15  ;;  %v5011_v36 = vld [vmem:[%s5302_s2 + $0x5] ss:$0 sm:$0xff] }
 0x126   : > { %v3575_v6 = vpop.f32.mrf.mxu1 }
 0x127   : > { %v3536_v9 = vpop.f32.mrf.mxu0 }
 0x128   : > { %v4885_v10 = vadd.f32 %v3536_v9, %v3535_v5  ;;  %v3576_v11 = vpop.f32.mrf.mxu1 }
 0x129   : > { %v4887_v12 = vadd.f32 %v3576_v11, %v3575_v6  ;;  %v3538_v17 = vpop.f32.mrf.mxu0  ;;  %v4923_v6 = vld [vmem:[%s5302_s2 + $0x1] ss:$0 sm:$0xff]  ;;  %v2126_v11 = vadd.f32 %v4825_v1, %v4916_v15 }
 0x12a   : > { %5336 = vst [vmem:[#allocation13_spill] sm:$0xff] %v4885_v10  ;;  %v4889_v18 = vpop.f32.mrf.mxu1 }
 0x12b   : > { %5337 = vst [vmem:[#allocation14_spill] sm:$0xff] %v4887_v12  ;;  %v3539_v21 = vpop.f32.mrf.mxu0 }
 0x12c   : > { %v4893_v24 = vadd.f32 %v3539_v21, %v3538_v17  ;;  %v4895_v25 = vpop.f32.mrf.mxu1 }
 0x12d   : > { %v3541_v26 = vpop.f32.mrf.mxu0 }
 0x12e   : > { %v3581_v27 = vpop.f32.mrf.mxu1 }
 0x12f   : > { %v3542_v30 = vpop.f32.mrf.mxu0 }
 0x130   : > { %v4897_v31 = vadd.f32 %v3542_v30, %v3541_v26  ;;  %v3582_v33 = vpop.f32.mrf.mxu1  ;;  %v4932_v26 = vld [vmem:[%s5302_s2 + $0x2] ss:$0 sm:$0xff]  ;;  %v2136_v30 = vadd.f32 %v4827_v13, %v4923_v6 }
 0x131   : > { %v4899_v34 = vadd.f32 %v3582_v33, %v3581_v27  ;;  %v3544_v39 = vpop.f32.mrf.mxu0  ;;  %v4992_v59 = vadd.f32 %v4893_v24, %v4932_v26 }
 0x132   : > { %5338 = vst [vmem:[#allocation15_spill] sm:$0xff] %v4897_v31  ;;  %v3584_v40 = vpop.f32.mrf.mxu1 }
 0x133   : > { %5339 = vst [vmem:[#allocation16_spill] sm:$0xff] %v4899_v34  ;;  %v3545_v43 = vpop.f32.mrf.mxu0 }
 0x134   : > { %v4903_v45 = vadd.f32 %v3545_v43, %v3544_v39  ;;  %v3585_v46 = vpop.f32.mrf.mxu1  ;;  %v2146_v43 = vadd.f32 %v3528_v50, %v4932_v26  ;;  %v2333_v50 = vadd.f32 %v4837_v7, %v4916_v15 }
 0x135   : > { %v4905_v49 = vadd.f32 %v3585_v46, %v3584_v40  ;;  %v3603_v52 = vpop.f32.mrf.mxu0  ;;  %v4939_v40 = vld [vmem:[%s5302_s2 + $0x3] ss:$0 sm:$0xff] }
 0x136   : > { %v4907_v54 = vpop.f32.mrf.mxu1  ;;  %v2156_v13 = vadd.f32 %v4871_v53, %v4939_v40 }
 0x137   : > { %v3604_v55 = vpop.f32.mrf.mxu0 }
 0x138   : > { %v4909_v37 = vadd.f32 %v3604_v55, %v3603_v52  ;;  %v4911_v0 = vpop.f32.mrf.mxu1 }
 0x139   : > { %v3606_v60 = vpop.f32.mrf.mxu0 }
 0x13a   : > { %v4918_v5 = vpop.f32.mrf.mxu1 }
 0x13b   : > { %v3607_v9 = vpop.f32.mrf.mxu0 }
 0x13c   : > { %v3608_v17 = vadd.f32 %v3607_v9, %v3606_v60  ;;  %v4927_v21 = vpop.f32.mrf.mxu1 }
 0x13d   : > { %v3609_v27 = vpop.f32.mrf.mxu0  ;;  %v3648_v62 = vadd.f32 %v4927_v21, %v4918_v5 }
 0x13e   : > { %v2127_v33 = vmax.f32 %v3608_v17, %v2126_v11  ;;  %v3649_v39 = vpop.f32.mrf.mxu1 }
 0x13f   : > { %v3610_v1 = vpop.f32.mrf.mxu0 }
 0x140   : > { %v2137_v46 = vmax.f32 %v2127_v33, %v2136_v30  ;;  %v4942_v52 = vadd.f32 %v3610_v1, %v3609_v27  ;;  %v3650_v55 = vpop.f32.mrf.mxu1  ;;  %v2342_v1 = vadd.f32 %v4839_v8, %v4923_v6  ;;  %v4185_v8 = vmov 0  }
 0x141   : > { %v4944_v60 = vadd.f32 %v3650_v55, %v3649_v39  ;;  %v3612_v9 = vpop.f32.mrf.mxu0  ;;  %v4962_v55 = vadd.f32 %v4881_v63, %v4932_v26  ;;  %3943 = vset.pattern.permute.xlu0 %v4185_v8  ;;  %3944 = vset.pattern.permute.xlu1 %v4185_v8 }
 0x142   : > { %5340 = vst [vmem:[#allocation17_spill] sm:$0xff] %v4942_v52  ;;  %v2147_v11 = vmax.f32 %v2137_v46, %v2146_v43  ;;  %v4948_v17 = vpop.f32.mrf.mxu1 }
 0x143   : > { %5341 = vst [vmem:[#allocation18_spill] sm:$0xff] %v4944_v60  ;;  %v3613_v20 = vpop.f32.mrf.mxu0 }
 0x144   : > { %v4954_v30 = vmax.f32 %v2147_v11, %v2156_v13  ;;  %v3614_v27 = vadd.f32 %v3613_v20, %v3612_v9  ;;  %v4956_v33 = vpop.f32.mrf.mxu1  ;;  %v2059_v20 = vld [vmem:[%s5304_s4] sm:$0xff] }
 0x145   : > { %v3615_v39 = vpop.f32.mrf.mxu0  ;;  %2062 = vperm.xlu0 %3943, %v2059_v20   ;;  %2271 = vperm.xlu1 %3944, %v2059_v20  }
 0x146   : > { %v2334_v53 = vmax.f32 %v3614_v27, %v2333_v50  ;;  %v3655_v43 = vpop.f32.mrf.mxu1 }
 0x147   : > { %v3616_v46 = vpop.f32.mrf.mxu0 }
 0x148   : > { %v4964_v32 = vmax.f32 %v2334_v53, %v2342_v1  ;;  %v4966_v4 = vadd.f32 %v3616_v46, %v3615_v39  ;;  %v3656_v7 = vpop.f32.mrf.mxu1  ;;  %v2400_v39 = vld [vmem:[%s5306_s6] sm:$0xff]  ;;  %v2532_v1 = vadd.f32 %v4847_v22, %v4916_v15 }
 0x149   : > { %v4971_v9 = vadd.f32 %v3656_v7, %v3655_v43  ;;  %v3618_v13 = vpop.f32.mrf.mxu0  ;;  %v2541_v7 = vadd.f32 %v4849_v23, %v4923_v6  ;;  %2403 = vperm.xlu1 %3944, %v2400_v39   ;;  %2203 = vperm.xlu0 %3943, %v2400_v39   ;;  %v2749_v23 = vadd.f32 %v4903_v45, %v4932_v26 }
 0x14a   : > { %5342 = vst [vmem:[#allocation19_spill] sm:$0xff] %v4966_v4  ;;  %v4975_v63 = vpop.f32.mrf.mxu1  ;;  %v5347_v21 = vmax.f32 %v4964_v32, %v4962_v55 }
 0x14b   : > { %5343 = vst [vmem:[#allocation20_spill] sm:$0xff] %v4971_v9  ;;  %v3619_v27 = vpop.f32.mrf.mxu0 }
 0x14c   : > { %v3620_v53 = vadd.f32 %v3619_v27, %v3618_v13  ;;  %v4984_v43 = vpop.f32.mrf.mxu1 }
 0x14d   : > { %v3621_v46 = vpop.f32.mrf.mxu0  ;;  %2602 = vperm.xlu1 %3944, %v2400_v39   ;;  %2470 = vperm.xlu0 %3943, %v2059_v20  }
 0x14e   : > { %v2533_v8 = vmax.f32 %v3620_v53, %v2532_v1  ;;  %v4988_v41 = vpop.f32.mrf.mxu1 }
 0x14f   : > { %v3622_v50 = vpop.f32.mrf.mxu0 }
 0x150   : > { %v4994_v19 = vmax.f32 %v2533_v8, %v2541_v7  ;;  %v4996_v22 = vadd.f32 %v3622_v50, %v3621_v46  ;;  %v4998_v13 = vpop.f32.mrf.mxu1  ;;  %v2740_v50 = vadd.f32 %v4863_v38, %v4923_v6 }
 0x151   : > { %v3624_v27 = vpop.f32.mrf.mxu0  ;;  %2669 = vperm.xlu0 %3943, %v2059_v20   ;;  %2801 = vperm.xlu1 %3944, %v2400_v39  }
 0x152   : > { %v3664_v1 = vpop.f32.mrf.mxu1 }
 0x153   : > { %v3625_v53 = vpop.f32.mrf.mxu0 }
 0x154   : > { %v3626_v47 = vadd.f32 %v3625_v53, %v3624_v27  ;;  %v3665_v24 = vpop.f32.mrf.mxu1  ;;  %v2758_v27 = vadd.f32 %v4905_v49, %v4939_v40 }
 0x155   : > { %v3666_v3 = vadd.f32 %v3665_v24, %v3664_v1  ;;  %v3683_v7 = vpop.f32.mrf.mxu0 }
 0x156   : > { %v2732_v46 = vmax.f32 %v3626_v47, %v2731_v51  ;;  %v3723_v8 = vpop.f32.mrf.mxu1 }
 0x157   : > { %v3684_v11 = vpop.f32.mrf.mxu0  ;;  %v2767_v51 = vadd.f32 %v3666_v3, %v5011_v36 }
 0x158   : > { %v2741_v14 = vmax.f32 %v2732_v46, %v2740_v50  ;;  %v3724_v16 = vpop.f32.mrf.mxu1 }
 0x159   : > { %v3686_v15 = vpop.f32.mrf.mxu0  ;;  %v3725_v60 = vadd.f32 %v3724_v16, %v3723_v8  ;;  %v5063_v16 = vld [vmem:[%s5302_s2 + $0x7] ss:$0 sm:$0xff] }
 0x15a   : > { %v2750_v38 = vmax.f32 %v2741_v14, %v2749_v23  ;;  %v3726_v47 = vpop.f32.mrf.mxu1 }
 0x15b   : > { %v3687_v6 = vpop.f32.mrf.mxu0 }
 0x15c   : > { %v2759_v20 = vmax.f32 %v2750_v38, %v2758_v27  ;;  %v3727_v39 = vpop.f32.mrf.mxu1  ;;  %v3688_v34 = vadd.f32 %v3687_v6, %v3686_v15 }
 0x15d   : > { %v5016_v1 = vpop.f32.mrf.mxu0  ;;  %v3728_v6 = vadd.f32 %v3727_v39, %v3726_v47 }
 0x15e   : > { %v2768_v45 = vmax.f32 %v2759_v20, %v2767_v51  ;;  %v5020_v53 = vpop.f32.mrf.mxu1  ;;  %v2176_v15 = vadd.f32 %v3688_v34, %v5035_v29  ;;  %v3645_v34 = vadd.f32 %v4911_v0, %v4907_v54 }
 0x15f   : > { %v5018_v26 = vpop.f32.mrf.mxu0  ;;  %v2186_v39 = vadd.f32 %v3728_v6, %v5063_v16 }
 0x160   : > { %v5022_v46 = vpop.f32.mrf.mxu1 }
 0x161   : > { %v3692_v24 = vpop.f32.mrf.mxu0 }
 0x162   : > { %v3732_v3 = vpop.f32.mrf.mxu1 }
 0x163   : > { %v3693_v50 = vpop.f32.mrf.mxu0 }
 0x164   : > { %v3733_v27 = vpop.f32.mrf.mxu1  ;;  %v3694_v52 = vadd.f32 %v3693_v50, %v3692_v24 }
 0x165   : > { %v3695_v10 = vpop.f32.mrf.mxu0 }
 0x166   : > { %v5030_v51 = vpop.f32.mrf.mxu1  ;;  %v2378_v32 = vadd.f32 %v3694_v52, %v5035_v29  ;;  %v5078_v52 = vld [vmem:[%s5302_s2 + $0x8] ss:$0 sm:$0xff] }
 0x167   : > { %v3696_v49 = vpop.f32.mrf.mxu0  ;;  %5345 = vst [vmem:[#allocation22_spill] sm:$0xff] %v5030_v51 }
 0x168   : > { %v5024_v14 = vadd.f32 %v3696_v49, %v3695_v10  ;;  %v5037_v10 = vpop.f32.mrf.mxu1 }
 0x169   : > { %v3698_v23 = vpop.f32.mrf.mxu0  ;;  %5346 = vst [vmem:[#allocation23_spill] sm:$0xff] %v5037_v10 }
 0x16a   : > { %5344 = vst [vmem:[#allocation21_spill] sm:$0xff] %v5024_v14  ;;  %v3574_v14 = vadd.f32 %v4883_v2, %v4877_v58  ;;  %v3738_v48 = vpop.f32.mrf.mxu1  ;;  %v3685_v2 = vadd.f32 %v3684_v11, %v3683_v7 }
 0x16b   : > { %v3699_v12 = vpop.f32.mrf.mxu0 }
 0x16c   : > { %v2360_v57 = vadd.f32 %v3574_v14, %v4939_v40  ;;  %v2057_v11 = vpack.c.bf16 %v3725_v60, %v3685_v2  ;;  %v3700_v50 = vadd.f32 %v3699_v12, %v3698_v23 }
 0x16d   : > { %v5026_v38 = vpop.f32.mrf.mxu0 }
 0x16e   : > { %v2577_v23 = vadd.f32 %v3700_v50, %v5035_v29  ;;  %v2198_v50 = vld [vmem:[%s5305_s5] sm:$0xf] }
 0x16f   : > { %v5028_v4 = vpop.f32.mrf.mxu0 }
 0x171   : > { %v3704_v20 = vpop.f32.mrf.mxu0 }
 0x173   : > { %v3705_v9 = vpop.f32.mrf.mxu0 }
 0x174   : > { %v3706_v28 = vadd.f32 %v3705_v9, %v3704_v20  ;;  %v3654_v9 = vadd.f32 %v4956_v33, %v4948_v17  ;;  %v2361_v17 = vmax.f32 %v5347_v21, %v2360_v57  ;;  %v3734_v57 = vadd.f32 %v3733_v27, %v3732_v3 }
 0x175   : > { %v3763_v49 = vpop.f32.mrf.mxu0  ;;  %v5349_v3 = vmax.f32 %v4994_v19, %v4992_v59 }
 0x176   : > { %v2776_v61 = vadd.f32 %v3706_v28, %v5035_v29  ;;  %v2166_v28 = vadd.f32 %v3648_v62, %v5011_v36  ;;  %v3580_v62 = vadd.f32 %v4895_v25, %v4889_v18  ;;  %v3660_v18 = vadd.f32 %v4984_v43, %v4975_v63 }
 0x177   : > { %v3764_v51 = vpop.f32.mrf.mxu0  ;;  %v2056_v63 = vpack.c.bf16 %v3645_v34, %v4909_v37 }
 0x178   : > { %v5046_v20 = vmax.f32 %v2768_v45, %v2776_v61  ;;  %v3765_v31 = vadd.f32 %v3764_v51, %v3763_v49  ;;  %v2369_v61 = vadd.f32 %v3654_v9, %v5011_v36  ;;  %v3739_v45 = vpop.f32.mrf.mxu1  ;;  %v2167_v55 = vmax.f32 %v4954_v30, %v2166_v28 }
 0x179   : > { %v3766_v10 = vpop.f32.mrf.mxu0  ;;  %v2559_v0 = vadd.f32 %v3580_v62, %v4939_v40  ;;  %v2387_v30 = vadd.f32 %v3734_v57, %v5063_v16  ;;  %v2568_v51 = vadd.f32 %v3660_v18, %v5011_v36  ;;  %v3740_v37 = vadd.f32 %v3739_v45, %v3738_v48 }
 0x17a   : > { %v2058_v58 = vpack.c.bf16 %v3765_v31, %v3765_v31  ;;  %v5348_v31 = vmov 0.0   ;;  %v2370_v8 = vmax.f32 %v2361_v17, %v2369_v61  ;;  %v2177_v47 = vmax.f32 %v2167_v55, %v2176_v15  ;;  %v5073_v24 = vpop.f32.mrf.mxu1 }
 0x17b   : > { %v3767_v5 = vpop.f32.mrf.mxu0  ;;  %v2560_v27 = vmax.f32 %v5349_v3, %v2559_v0  ;;  %v5350_v17 = vpack.c.bf16 %v4867_v44, %v4865_v42  ;;  %v5351_v57 = vpack.c.bf16 %v4821_v56, %v4819_v35  ;;  %v2053_v42 = vld [vmem:[%s5303_s3] sm:$0xf] }
 0x17c   : > { %v2071_v33 = vsel %vm2069_vm1, %v2058_v58, 0  ;;  %v3768_v25 = vadd.f32 %v3767_v5, %v3766_v10  ;;  %v2379_v60 = vmax.f32 %v2370_v8, %v2378_v32  ;;  %v2187_v9 = vmax.f32 %v2177_v47, %v2186_v39  ;;  %v5089_v40 = vpop.f32.mrf.mxu1  ;;  %v2398_v44 = vld [vmem:[%s5305_s5] sm:$0xf] }
 0x17d   : > { %v5056_v14 = vpop.f32.mrf.mxu0  ;;  %3820 = vmatpush3.bf16.msra.mxu1 %v2071_v33  ;;  %v2569_v36 = vmax.f32 %v2560_v27, %v2568_v51  ;;  %v2586_v33 = vadd.f32 %v3740_v37, %v5063_v16  ;;  %v3691_v27 = vadd.f32 %v5018_v26, %v5016_v1  ;;  %v3731_v51 = vadd.f32 %v5022_v46, %v5020_v53  ;;  %v5358_v37 = vld [vmem:[#allocation16_spill] sm:$0xff] }
 0x17e   : > { %3821 = vmatprep.subr.bf16.mxu1 %v5348_v31  ;;  %v2196_v10 = vadd.f32 %v3768_v25, %v5078_v52  ;;  %v2388_v12 = vmax.f32 %v2379_v60, %v2387_v30  ;;  %v3744_v19 = vpop.f32.mrf.mxu1 }
 0x17f   : > { %v3770_v7 = vpop.f32.mrf.mxu0  ;;  %v2578_v61 = vmax.f32 %v2569_v36, %v2577_v23  ;;  %v2266_v1 = vpack.c.bf16 %v3731_v51, %v3691_v27  ;;  %v5361_v36 = vld [vmem:[#allocation6_spill] sm:$0xff] }
 0x180   : > { %v2197_v2 = vmax.f32 %v2187_v9, %v2196_v10  ;;  %v3745_v48 = vpop.f32.mrf.mxu1  ;;  %v3771_v56 = vadd.f32 %v3770_v7, %v5056_v14  ;;  %v3703_v10 = vadd.f32 %v5028_v4, %v5026_v38  ;;  %v3663_v4 = vadd.f32 %v4998_v13, %v4988_v41  ;;  %v5352_v38 = vld [vmem:[#allocation18_spill] sm:$0xff]  ;;  %v5353_v41 = vld [vmem:[#allocation17_spill] sm:$0xff] }
 0x181   : > { %v3772_v54 = vpop.f32.mrf.mxu0  ;;  %3822 = vmatpush3.bf16.msra.mxu1 %v2057_v11  ;;  %v2587_v34 = vmax.f32 %v2578_v61, %v2586_v33  ;;  %v3746_v55 = vadd.f32 %v3745_v48, %v3744_v19  ;;  %v5354_v13 = vpack.c.bf16 %v5352_v38, %v5353_v41  ;;  %v2660_v61 = vld [vmem:[%s5303_s3] sm:$0xf]  ;;  %v5367_v33 = vld [vmem:[#allocation22_spill] sm:$0xff] }
 0x182   : > { %3823 = vmatprep.subr.bf16.mxu1 %v5348_v31  ;;  %v2199_v6 = vpack.c.bf16 %v2197_v2, %v2197_v2  ;;  %v2267_v7 = vpack.c.bf16 %v3771_v56, %v3771_v56  ;;  %v2663_v46 = vpack.c.bf16 %v3663_v4, %v4996_v22  ;;  %v5362_v2 = vld [vmem:[#allocation5_spill] sm:$0xff] }
 0x183   : > { %v3773_v43 = vpop.f32.mrf.mxu0  ;;  %v2785_v39 = vadd.f32 %v3746_v55, %v5063_v16  ;;  %v2597_v16 = vld [vmem:[%s5305_s5] sm:$0xf]  ;;  %v5376_v55 = vld [vmem:[#allocation8_spill] sm:$0xff] }
 0x184   : > { %v3774_v49 = vadd.f32 %v3773_v43, %v3772_v54  ;;  %v2211_v25 = vsel %vm2069_vm1, %v2199_v6, 0  ;;  %v5369_v6 = vld [vmem:[#allocation21_spill] sm:$0xff] }
 0x185   : > { %v5091_v58 = vpop.f32.mrf.mxu0  ;;  %3824 = vmatpush3.bf16.msra.mxu1 %v2056_v63  ;;  %v2786_v63 = vmax.f32 %v5046_v20, %v2785_v39  ;;  %v2278_v20 = vsel %vm2069_vm1, %v2267_v7, 0  ;;  %v2461_v56 = vld [vmem:[%s5303_s3] sm:$0xf] }
 0x186   : > { %v2396_v28 = vadd.f32 %v3774_v49, %v5078_v52  ;;  %3825 = vmatprep.subr.bf16.mxu1 %v5348_v31  ;;  %v3743_v49 = vadd.f32 %v5089_v40, %v5073_v24  ;;  %v5355_v40 = vld [vmem:[#allocation12_spill] sm:$0xff] }
 0x187   : > { %v5096_v59 = vpop.f32.mrf.mxu0 }
 0x188   : > { %v2397_v5 = vmax.f32 %v2388_v12, %v2396_v28  ;;  %v2664_v26 = vpack.c.bf16 %v3743_v49, %v3703_v10  ;;  %v3777_v24 = vadd.f32 %v5096_v59, %v5091_v58  ;;  %v5356_v12 = vld [vmem:[#allocation11_spill] sm:$0xff]  ;;  %v2262_v59 = vld [vmem:[%s5303_s3] sm:$0xf] }
 0x189   : > { %v3778_v21 = vpop.f32.mrf.mxu0  ;;  %3826 = vmatpush3.bf16.msra.mxu1 %v5350_v17  ;;  %v5357_v23 = vpack.c.bf16 %v5355_v40, %v5356_v12  ;;  %v5359_v28 = vld [vmem:[#allocation15_spill] sm:$0xff]  ;;  %v5365_v17 = vld [vmem:[#allocation9_spill] sm:$0xff] }
 0x18a   : > { %v2399_v29 = vpack.c.bf16 %v2397_v5, %v2397_v5  ;;  %3827 = vmatprep.subr.bf16.mxu1 %v5348_v31  ;;  %v5360_v19 = vpack.c.bf16 %v5358_v37, %v5359_v28  ;;  %v2466_v22 = vpack.c.bf16 %v3777_v24, %v3777_v24  ;;  %v5363_v5 = vpack.c.bf16 %v5361_v36, %v5362_v2 }
 0x18b   : > { %v3779_v15 = vpop.f32.mrf.mxu0 }
 0x18c   : > { %v3780_v45 = vadd.f32 %v3779_v15, %v3778_v21  ;;  %v2410_v62 = vsel %vm2069_vm1, %v2399_v29, 0  ;;  %v5364_v21 = vld [vmem:[#allocation10_spill] sm:$0xff]  ;;  %v5368_v29 = vld [vmem:[#allocation23_spill] sm:$0xff]  ;;  %v2477_v15 = vsel %vm2069_vm1, %v2466_v22, 0 }
 0x18d   : > { %v3781_v32 = vpop.f32.mrf.mxu0  ;;  %3828 = vmatpush3.bf16.msra.mxu1 %v5351_v57  ;;  %3854 = vmatpush3.bf16.msra.mxu0 %v2410_v62  ;;  %v5366_v58 = vpack.c.bf16 %v5364_v21, %v5365_v17  ;;  %v3737_v48 = vadd.f32 %v5368_v29, %v5367_v33  ;;  %v5370_v62 = vld [vmem:[#allocation20_spill] sm:$0xff] }
 0x18e   : > { %v2595_v11 = vadd.f32 %v3780_v45, %v5078_v52  ;;  %3833 = vmatprep.subr.bf16.mxu1 %v5348_v31  ;;  %3873 = vmatprep.subr.bf16.mxu0 %v5348_v31 }
 0x18f   : > { %v3782_v35 = vpop.f32.mrf.mxu0  ;;  %v2465_v45 = vpack.c.bf16 %v3737_v48, %v5369_v6 }
 0x190   : > { %v2596_v8 = vmax.f32 %v2587_v34, %v2595_v11  ;;  %v3783_v18 = vadd.f32 %v3782_v35, %v3781_v32  ;;  %3830 = vmatmul.mubr.msk.bf16.vlgmr.msra.gmra.mxu1 %vm2065_vm2, %v2053_v42  ;;  %3856 = vmatmul.mubr.msk.bf16.vlgmr.msra.gmra.mxu0 %vm2206_vm3, %v2398_v44  ;;  %v5371_v32 = vld [vmem:[#allocation19_spill] sm:$0xff]  ;;  %v5373_v42 = vld [vmem:[#allocation14_spill] sm:$0xff]  ;;  %v5374_v44 = vld [vmem:[#allocation13_spill] sm:$0xff] }
 0x191   : > { %v3784_v47 = vpop.f32.mrf.mxu0  ;;  %3834 = vmatpush3.bf16.msra.mxu1 %v2211_v25  ;;  %3835 = vmatprep.mubr.msk.bf16.mxu1 %vm4184_vm0, %v5348_v31  ;;  %v5372_v57 = vpack.c.bf16 %v5370_v62, %v5371_v32  ;;  %v5375_v34 = vpack.c.bf16 %v5373_v42, %v5374_v44  ;;  %v5377_v11 = vld [vmem:[#allocation7_spill] sm:$0xff] }
 0x192   : > { %v2598_v54 = vpack.c.bf16 %v2596_v8, %v2596_v8  ;;  %v2665_v0 = vpack.c.bf16 %v3783_v18, %v3783_v18  ;;  %3839 = vmatprep.subr.bf16.mxu1 %v5348_v31  ;;  %3875 = vmatprep.mubr.msk.bf16.mxu0 %vm4184_vm0, %v5348_v31  ;;  %v5378_v35 = vpack.c.bf16 %v5376_v55, %v5377_v11  ;;  %v2796_v8 = vld [vmem:[%s5305_s5] sm:$0xf] }
 0x193   : > { %v3785_v14 = vpop.f32.mrf.mxu0 }
 0x194   : > { %v3786_v60 = vadd.f32 %v3785_v14, %v3784_v47  ;;  %v2609_v30 = vsel %vm2069_vm1, %v2598_v54, 0  ;;  %v2676_v43 = vsel %vm2069_vm1, %v2665_v0, 0 }
 0x195   : > { %3874 = vmatpush3.bf16.msra.mxu0 %v2609_v30 }
 0x196   : > { %v2794_v3 = vadd.f32 %v3786_v60, %v5078_v52  ;;  %3879 = vmatprep.subr.bf16.mxu0 %v5348_v31 }
 0x198   : > { %v2795_v9 = vmax.f32 %v2786_v63, %v2794_v3  ;;  %3836 = vmatmul.mubr.msk.bf16.vlgmr.msra.gmra.mxu1 %vm2206_vm3, %v2198_v50  ;;  %3876 = vmatmul.mubr.msk.bf16.vlgmr.msra.gmra.mxu0 %vm2206_vm3, %v2597_v16 }
 0x199   : > { %3840 = vmatpush3.bf16.msra.mxu1 %v2278_v20  ;;  %3880 = vmatpush3.bf16.msra.mxu0 %v2676_v43 }
 0x19a   : > { %v2797_v52 = vpack.c.bf16 %v2795_v9, %v2795_v9  ;;  %3841 = vmatprep.subr.bf16.mxu1 %v5348_v31  ;;  %3881 = vmatprep.subr.bf16.mxu0 %v5348_v31 }
 0x19b   : > { %3849 = vmatprep.mubr.msk.bf16.mxu1 %vm4184_vm0, %v5348_v31  ;;  %3889 = vmatprep.mubr.msk.bf16.mxu0 %vm4184_vm0, %v5348_v31 }
 0x19c   : > { %v2808_v53 = vsel %vm2069_vm1, %v2797_v52, 0 }
 0x19d   : > { %3842 = vmatpush3.bf16.msra.mxu1 %v2266_v1  ;;  %3882 = vmatpush3.bf16.msra.mxu0 %v2664_v26 }
 0x19e   : > { %3843 = vmatprep.subr.bf16.mxu1 %v5348_v31  ;;  %3883 = vmatprep.subr.bf16.mxu0 %v5348_v31 }
 0x1a1   : > { %3844 = vmatpush3.bf16.msra.mxu1 %v5354_v13  ;;  %3884 = vmatpush3.bf16.msra.mxu0 %v2663_v46 }
 0x1a2   : > { %3845 = vmatprep.subr.bf16.mxu1 %v5348_v31  ;;  %3885 = vmatprep.subr.bf16.mxu0 %v5348_v31 }
 0x1a5   : > { %3846 = vmatpush3.bf16.msra.mxu1 %v5357_v23  ;;  %3886 = vmatpush3.bf16.msra.mxu0 %v5360_v19 }
 0x1a6   : > { %3847 = vmatprep.subr.bf16.mxu1 %v5348_v31  ;;  %3887 = vmatprep.subr.bf16.mxu0 %v5348_v31 }
 0x1a9   : > { %3848 = vmatpush3.bf16.msra.mxu1 %v5363_v5  ;;  %3888 = vmatpush3.bf16.msra.mxu0 %v5366_v58 }
 0x1aa   : > { %3859 = vmatprep.subr.bf16.mxu1 %v5348_v31 }
 0x1ac   : > { %3850 = vmatmul.mubr.msk.bf16.vlgmr.msra.gmra.mxu1 %vm2065_vm2, %v2262_v59  ;;  %3890 = vmatmul.mubr.msk.bf16.vlgmr.msra.gmra.mxu0 %vm2065_vm2, %v2660_v61 }
 0x1ad   : > { %3860 = vmatpush3.bf16.msra.mxu1 %v2477_v15  ;;  %3869 = vmatprep.mubr.msk.bf16.mxu1 %vm4184_vm0, %v5348_v31 }
 0x1ae   : > { %3861 = vmatprep.subr.bf16.mxu1 %v5348_v31 }
 0x1b1   : > { %3862 = vmatpush3.bf16.msra.mxu1 %v2465_v45 }
 0x1b2   : > { %3863 = vmatprep.subr.bf16.mxu1 %v5348_v31 }
 0x1b5   : > { %3864 = vmatpush3.bf16.msra.mxu1 %v5372_v57 }
 0x1b6   : > { %3865 = vmatprep.subr.bf16.mxu1 %v5348_v31 }
 0x1b9   : > { %3866 = vmatpush3.bf16.msra.mxu1 %v5375_v34 }
 0x1ba   : > { %3867 = vmatprep.subr.bf16.mxu1 %v5348_v31 }
 0x1bd   : > { %3868 = vmatpush3.bf16.msra.mxu1 %v5378_v35 }
 0x1be   : > { %3893 = vmatprep.subr.bf16.mxu1 %v5348_v31 }
 0x1c0   : > { %3870 = vmatmul.mubr.msk.bf16.vlgmr.msra.gmra.mxu1 %vm2065_vm2, %v2461_v56  ;;  %v2272_v18 = vpop.permute.xlu1 %2271  ;;  %v2063_v25 = vpop.permute.xlu0 %2062 }
 0x1c1   : > { %3894 = vmatpush3.bf16.msra.mxu1 %v2808_v53  ;;  %3895 = vmatprep.mubr.msk.bf16.mxu1 %vm4184_vm0, %v5348_v31 }
 0x1c4   : > { %v2404_v47 = vpop.permute.xlu1 %2403  ;;  %v2204_v3 = vpop.permute.xlu0 %2203 }
 0x1c8   : > { %3896 = vmatmul.mubr.msk.bf16.vlgmr.msra.gmra.mxu1 %vm2206_vm3, %v2796_v8  ;;  %v2603_v27 = vpop.permute.xlu1 %2602  ;;  %v2471_v23 = vpop.permute.xlu0 %2470 }
 0x1cc   : > { %v2670_v22 = vpop.permute.xlu0 %2669 }
 0x250   : > { %v2107_v39 = vpop.f32.mrf.mxu1  ;;  %v2446_v54 = vpop.f32.mrf.mxu0 }
 0x251   : > { %v5220_v0 = vadd.f32 %v2107_v39, %v2063_v25  ;;  %v5222_v14 = vadd.f32 %v2446_v54, %v2404_v47 }
 0x252   : > { %v3831_v7 = vpop.f32.mrf.mxu1  ;;  %v3857_v60 = vpop.f32.mrf.mxu0 }
 0x253   : > { %v2113_v30 = vsub.f32 0.0, %v5220_v0  ;;  %v2452_v31 = vsub.f32 0.0, %v5222_v14 }
 0x254   : > { %v2110_v50 = vpop.f32.mrf.mxu1  ;;  %v2449_v16 = vpop.f32.mrf.mxu0 }
 0x255   : > { %v2114_v63 = vmul.f32 1.442695, %v2113_v30  ;;  %v2453_v43 = vmul.f32 1.442695, %v2452_v31  ;;  %v2802_v16 = vpop.permute.xlu1 %2801 }
 0x256   : > { %v3832_v51 = vpop.f32.mrf.mxu1  ;;  %v3858_v10 = vpop.f32.mrf.mxu0 }
 0x257   : > { %4089 = vpow2.f32 %v2114_v63 }
 0x258   : > { %4091 = vpow2.f32 %v2453_v43  ;;  %v2247_v49 = vpop.f32.mrf.mxu1  ;;  %v2645_v20 = vpop.f32.mrf.mxu0 }
 0x259   : > { %v2248_v9 = vadd.f32 %v2247_v49, %v2204_v3  ;;  %v2646_v52 = vadd.f32 %v2645_v20, %v2603_v27 }
 0x25a   : > { %v3837_v4 = vpop.f32.mrf.mxu1  ;;  %v3877_v1 = vpop.f32.mrf.mxu0 }
 0x25b   : > { %v2253_v26 = vsub.f32 0.0, %v2248_v9  ;;  %v2651_v53 = vsub.f32 0.0, %v2646_v52 }
 0x25c   : > { %v2250_v46 = vpop.f32.mrf.mxu1  ;;  %v2648_v38 = vpop.f32.mrf.mxu0 }
 0x25d   : > { %v2254_v41 = vmul.f32 1.442695, %v2253_v26  ;;  %v2652_v13 = vmul.f32 1.442695, %v2651_v53 }
 0x25e   : > { %v3838_v24 = vpop.f32.mrf.mxu1  ;;  %v3878_v40 = vpop.f32.mrf.mxu0 }
 0x25f   : > { %4093 = vpow2.f32 %v2254_v41 }
 0x260   : > { %4095 = vpow2.f32 %v2652_v13 }
 0x264   : > { %v4090_v12 = vpop.eup %4089 }
 0x265   : > { %v4092_v37 = vpop.eup %4091  ;;  %v2116_v28 = vadd.f32 1.0, %v4090_v12 }
 0x266   : > { %v2455_v19 = vadd.f32 1.0, %v4092_v37 }
 0x267   : > { %4097 = vrcp.f32 %v2116_v28 }
 0x268   : > { %4099 = vrcp.f32 %v2455_v19 }
 0x26c   : > { %v4094_v36 = vpop.eup %4093  ;;  %v2314_v2 = vpop.f32.mrf.mxu1 }
 0x26d   : > { %v2712_v5 = vpop.f32.mrf.mxu0  ;;  %v4096_v21 = vpop.eup %4095  ;;  %v2256_v17 = vadd.f32 1.0, %v4094_v36  ;;  %v2315_v58 = vadd.f32 %v2314_v2, %v2272_v18 }
 0x26e   : > { %v2713_v59 = vadd.f32 %v2712_v5, %v2670_v22  ;;  %v2654_v61 = vadd.f32 1.0, %v4096_v21  ;;  %v3851_v33 = vpop.f32.mrf.mxu1 }
 0x26f   : > { %v3891_v29 = vpop.f32.mrf.mxu0  ;;  %4101 = vrcp.f32 %v2256_v17  ;;  %v2320_v48 = vsub.f32 0.0, %v2315_v58 }
 0x270   : > { %v2718_v15 = vsub.f32 0.0, %v2713_v59  ;;  %4103 = vrcp.f32 %v2654_v61  ;;  %v2317_v6 = vpop.f32.mrf.mxu1 }
 0x271   : > { %v2715_v45 = vpop.f32.mrf.mxu0  ;;  %v2321_v62 = vmul.f32 1.442695, %v2320_v48 }
 0x272   : > { %v2719_v32 = vmul.f32 1.442695, %v2718_v15  ;;  %v3852_v57 = vpop.f32.mrf.mxu1 }
 0x273   : > { %v3892_v42 = vpop.f32.mrf.mxu0  ;;  %4105 = vpow2.f32 %v2321_v62 }
 0x274   : > { %v4098_v44 = vpop.eup %4097  ;;  %4107 = vpow2.f32 %v2719_v32 }
 0x275   : > { %v4100_v34 = vpop.eup %4099  ;;  %v2118_v55 = vmul.f32 %v4098_v44, %v5220_v0 }
 0x276   : > { %v2457_v11 = vmul.f32 %v4100_v34, %v5222_v14 }
 0x277   : > { %2260 = vst.msk [vmem:[%s5231_s13] sm:$0xff] %vm2259_vm4, %v2118_v55 }
 0x278   : > { %3379 = vst.msk [vmem:[%s5231_s13 + $0x18] sm:$0xff] %vm2259_vm4, %v2457_v11 }
 0x27c   : > { %v4102_v35 = vpop.eup %4101 }
 0x27d   : > { %v4104_v56 = vpop.eup %4103  ;;  %v2258_v8 = vmul.f32 %v4102_v35, %v2248_v9 }
 0x27e   : > { %v2656_v18 = vmul.f32 %v4104_v56, %v2646_v52 }
 0x27f   : > { %2261 = vst.msk [vmem:[%s5231_s13 + $0x8] sm:$0xff] %vm2259_vm4, %v2258_v8 }
 0x280   : > { %v4106_v25 = vpop.eup %4105  ;;  %3398 = vst.msk [vmem:[%s5231_s13 + $0x28] sm:$0xff] %vm2259_vm4, %v2656_v18  ;;  %v2513_v47 = vpop.f32.mrf.mxu1 }
 0x281   : > { %v4108_v39 = vpop.eup %4107  ;;  %v2323_v54 = vadd.f32 1.0, %v4106_v25  ;;  %v2514_v0 = vadd.f32 %v2513_v47, %v2471_v23 }
 0x282   : > { %v2721_v14 = vadd.f32 1.0, %v4108_v39  ;;  %v3871_v7 = vpop.f32.mrf.mxu1 }
 0x283   : > { %4109 = vrcp.f32 %v2323_v54  ;;  %v2519_v60 = vsub.f32 0.0, %v2514_v0 }
 0x284   : > { %4111 = vrcp.f32 %v2721_v14  ;;  %v2516_v30 = vpop.f32.mrf.mxu1 }
 0x285   : > { %v2520_v31 = vmul.f32 1.442695, %v2519_v60 }
 0x286   : > { %v3872_v50 = vpop.f32.mrf.mxu1 }
 0x287   : > { %4113 = vpow2.f32 %v2520_v31 }
 0x288   : > { %v2844_v63 = vpop.f32.mrf.mxu1 }
 0x289   : > { %v2845_v43 = vadd.f32 %v2844_v63, %v2802_v16 }
 0x28a   : > { %v3897_v3 = vpop.f32.mrf.mxu1 }
 0x28b   : > { %v2850_v27 = vsub.f32 0.0, %v2845_v43 }
 0x28c   : > { %v2847_v51 = vpop.f32.mrf.mxu1 }
 0x28d   : > { %v2851_v10 = vmul.f32 1.442695, %v2850_v27 }
 0x28e   : > { %v3898_v49 = vpop.f32.mrf.mxu1 }
 0x28f   : > { %4115 = vpow2.f32 %v2851_v10 }
 0x290   : > { %v4110_v20 = vpop.eup %4109 }
 0x291   : > { %v4112_v9 = vpop.eup %4111  ;;  %v2325_v52 = vmul.f32 %v4110_v20, %v2315_v58 }
 0x292   : > { %v2723_v4 = vmul.f32 %v4112_v9, %v2713_v59 }
 0x293   : > { %3378 = vst.msk [vmem:[%s5231_s13 + $0x10] sm:$0xff] %vm2259_vm4, %v2325_v52 }
 0x294   : > { %v4114_v1 = vpop.eup %4113  ;;  %3416 = vst.msk [vmem:[%s5231_s13 + $0x30] sm:$0xff] %vm2259_vm4, %v2723_v4 }
 0x295   : > { %v2522_v26 = vadd.f32 1.0, %v4114_v1 }
 0x297   : > { %4117 = vrcp.f32 %v2522_v26 }
 0x29c   : > { %v4116_v53 = vpop.eup %4115 }
 0x29d   : > { %v2853_v46 = vadd.f32 1.0, %v4116_v53 }
 0x29f   : > { %4119 = vrcp.f32 %v2853_v46 }
 0x2a4   : > { %v4118_v38 = vpop.eup %4117 }
 0x2a5   : > { %v2524_v41 = vmul.f32 %v4118_v38, %v2514_v0 }
 0x2a7   : > { %3397 = vst.msk [vmem:[%s5231_s13 + $0x20] sm:$0xff] %vm2259_vm4, %v2524_v41 }
 0x2ac   : > { %v4120_v13 = vpop.eup %4119 }
 0x2ad   : > { %v2855_v24 = vmul.f32 %v4120_v13, %v2845_v43 }
 0x2af   : > { %3417 = vst.msk [vmem:[%s5231_s13 + $0x38] sm:$0xff] %vm2259_vm4, %v2855_v24 }
 0x2b0   : > { %4134 = shalt.err (!%p4131_p3)
}
 0x2b1   : > { %s4135_s17 = scalar_lea.hbm %s5252_s18, 1024  ;;  %s4139_s9 = scalar_lea.hbm %s5307_s7, 2048 }
 0x2b2   : > { %p4136_p4 = scmp.ne.s32.totalorder %s5252_s18, %s4135_s17  ;;  %p4140_p9 = scmp.lt.s32.totalorder %s5252_s18, %s5307_s7 }
 0x2b3   : > { %p4141_p10 = scmp.lt.s32.totalorder %s4139_s9, %s4135_s17 }
 0x2b4   : > { %p4137_p7 = pnand %p4136_p4, %p4267_p5 }
 0x2b5   : > { %p4142_p11 = por %p4141_p10, %p4140_p9 }
 0x2b6   : > { %p4138_p8 = pneg %p4137_p7 }
 0x2b8   : > { %p4143_p12 = pnand %p4142_p11, %p4138_p8 }
 0x2ba   : > { %4146 = shalt.err (!%p4143_p12)
}
 0x2bb   : > { %s4187_s15 = smov 128   ;;  %s4188_s16 = smov 8  }
 0x2bc   : > { %3899 = dma.vmem_to_hbm [thread:$0]  (%p4267_p5), %s5254_s14, 1024, %s5252_s18, %s5260_s19, %s4187_s15, %s4187_s15, %s4188_s16  }
 0x2bd PF: > { %p3905_p13 = scmp.ge.s32.totalorder %s4181_s27, 2  ;;  %s2889_s20 = sand.u32 1, %s4169_s24  }
 0x2be   : > { %s2890_s28 = scalar_lea.sflag [#allocation3], %s2889_s20 }
 0x2bf   : > { %p3902_p0 = pnand %p3905_p13, %p4271_p6 }
 0x2c1   : > { %p3903_p1 = pneg %p3902_p0 }
 0x2c3   : > { %4164 = dma.done.wait (%p3903_p1), %s2890_s28, 1024  }
 0x2c4   : > { %4166 = vsyncadd (%p3903_p1), %s2890_s28, 4294966272  ;;  %p17_p2 = scmp.ge.s32.totalorder %s4254_s30, 4   ;;  %s5379_s24 = smov %s4173_s25 }
 0x2c5   : > { %s5380_s25 = smov %s4177_s26  ;;  %s5381_s26 = smov %s4265_s10 }
 0x2c6   : > { %s5382_s27 = smov %s4254_s30  ;;  %19 = sbr.rel (!%p17_p2) target bundleno = 3 (0x3), region = 101 }
 0x2cb   :  { %2895 = vsyncpa [#allocation3], 1 }
 0x2cc   :  { %2897 = vsyncpa [#allocation3 + $0x1], 1 }

</bundles_post_ra>
